<compile_context>
chip_gen: v7x
topology: tpu7x:2x2x1
jax: 0.10.0
libtpu: 0.0.40
codegen_flags: <defaults>
</compile_context>

<pallas_src>
import functools
import numpy as np
import jax
import jax.numpy as jnp
from jax import lax
from jax.experimental import pallas as pl
from jax.experimental.pallas import tpu as pltpu

_LANE = 128


def _round_up(x, m):
    return (x + m - 1) // m * m


def _bilstm_kernel(x_ref, wih_ref, whh_ref, b_ref, wemb_ref, bemb_ref,
                   out_ref, gx_scr, hf_scr, hb_scr, *, T, B, Hp):
    # ---- prologue: one big input-projection matmul for BOTH directions ----------------
    # x_ref: (T*B, 2*nIn), row t*B+b = [x[t,b] | x[T-1-t,b]]  (bwd input pre-reversed)
    # wih_ref: (2*nIn, 8*Hp) packed/interleaved, b_ref: (1, 8*Hp) combined biases.
    gx = (jnp.dot(x_ref[...], wih_ref[...], preferred_element_type=jnp.float32)
          + b_ref[...])                                   # bias folded in, once
    gx_scr[...] = gx.reshape(T, B, 8 * Hp)

    whh = whh_ref[...]                                    # (2*Hp, 8*Hp), read once

    h0 = jnp.zeros((B, 2 * Hp), jnp.float32)              # [h_fwd | h_bwd]
    c0 = jnp.zeros((B, 2 * Hp), jnp.float32)

    # ---- fused recurrence: iteration i = fwd step t=i AND bwd step t=T-1-i -------------
    def body(i, carry):
        h_cat, c_cat = carry
        gates = gx_scr[i] + jnp.dot(h_cat, whh, preferred_element_type=jnp.float32)
        # 128-lane-aligned gate blocks: [i_f,i_b | f_f,f_b | g_f,g_b | o_f,o_b]
        i_g = jax.nn.sigmoid(gates[:, 0 * Hp:2 * Hp])
        f_g = jax.nn.sigmoid(gates[:, 2 * Hp:4 * Hp])
        g_g = jnp.tanh(gates[:, 4 * Hp:6 * Hp])
        o_g = jax.nn.sigmoid(gates[:, 6 * Hp:8 * Hp])
        c_new = f_g * c_cat + i_g * g_g
        h_new = o_g * jnp.tanh(c_new)
        hf_scr[i] = h_new[:, :Hp]                          # fwd hidden at time i
        hb_scr[T - 1 - i] = h_new[:, Hp:]                  # bwd hidden at time T-1-i
        return (h_new, c_new)

    lax.fori_loop(0, T, body, (h0, c0), unroll=True if T <= 32 else 4)

    # ---- epilogue: flat, lane-dense embedding matmul -----------------------------------
    hf2d = hf_scr[...].reshape(T * B, Hp)
    hb2d = hb_scr[...].reshape(T * B, Hp)
    out = (jnp.dot(hf2d, wemb_ref[0:Hp, :], preferred_element_type=jnp.float32)
           + jnp.dot(hb2d, wemb_ref[Hp:2 * Hp, :], preferred_element_type=jnp.float32)
           + bemb_ref[...])
    out_ref[...] = out.astype(out_ref.dtype)


def _pack_params(p, nIn, H, Hp, nOut, nOutP):
    """Pre-transpose, zero-pad (H->Hp, nOut->nOutP) and interleave PyTorch-layout weights."""
    f32 = jnp.float32
    wih = jnp.zeros((2 * nIn, 8 * Hp), f32)    # rows [x_fwd | x_bwd(reversed time)]
    whh = jnp.zeros((2 * Hp, 8 * Hp), f32)     # block-diag rows [h_fwd | h_bwd]
    b = jnp.zeros((1, 8 * Hp), f32)
    for k in range(4):                          # PyTorch gate order i, f, g, o
        cf = (2 * k) * Hp                       # fwd column block for gate k
        cb = (2 * k + 1) * Hp                   # bwd column block for gate k
        wih = wih.at[0:nIn, cf:cf + H].set(p['wih_f'][k * H:(k + 1) * H, :].T)
        wih = wih.at[nIn:2 * nIn, cb:cb + H].set(p['wih_b'][k * H:(k + 1) * H, :].T)
        whh = whh.at[0:H, cf:cf + H].set(p['whh_f'][k * H:(k + 1) * H, :].T)
        whh = whh.at[Hp:Hp + H, cb:cb + H].set(p['whh_b'][k * H:(k + 1) * H, :].T)
        b = b.at[0, cf:cf + H].set(p['b_f'][0, k * H:(k + 1) * H])
        b = b.at[0, cb:cb + H].set(p['b_b'][0, k * H:(k + 1) * H])
    wemb = jnp.zeros((2 * Hp, nOutP), f32)      # rows [h_fwd | h_bwd], cols padded to nOutP
    wemb = wemb.at[0:H, 0:nOut].set(p['wemb'][:, 0:H].T)
    wemb = wemb.at[Hp:Hp + H, 0:nOut].set(p['wemb'][:, H:2 * H].T)
    bemb = jnp.zeros((1, nOutP), f32).at[0, 0:nOut].set(p['bemb'][0])
    return wih, whh, b, wemb, bemb


def bidirectional_lstm(x, params):
    T, B, nIn = x.shape
    H = params['whh_f'].shape[1]
    nOut = params['wemb'].shape[0]
    Hp = _round_up(H, _LANE)
    nOutP = _round_up(nOut, _LANE)

    wih, whh, b, wemb, bemb = _pack_params(params, nIn, H, Hp, nOut, nOutP)

    # Pair each timestep's fwd input with the time-reversed bwd input (layout plumbing in
    # XLA) so one prologue matmul yields gates_x for both directions.
    x_pair = jnp.concatenate([x, x[::-1]], axis=-1).reshape(T * B, 2 * nIn)

    # Resident VMEM footprint (f32): inputs + out + scratches. v7x has 64 MiB physical VMEM.
    # NOTE: at production T*B this should switch to a batch-tiled grid ('parallel' over B).
    resident_f32 = (x_pair.size + wih.size + whh.size + b.size + wemb.size + bemb.size
                    + T * B * nOutP + T * B * 8 * Hp + 2 * T * B * Hp)
    vmem_limit = int(min(max(resident_f32 * 4 * 2, 32 * 1024 * 1024), 64 * 1024 * 1024))

    kernel = functools.partial(_bilstm_kernel, T=T, B=B, Hp=Hp)
    out2d = pl.pallas_call(
        kernel,
        out_shape=jax.ShapeDtypeStruct((T * B, nOutP), jnp.float32),
        in_specs=[pl.BlockSpec(memory_space=pltpu.MemorySpace.VMEM)] * 6,
        out_specs=pl.BlockSpec(memory_space=pltpu.MemorySpace.VMEM),
        scratch_shapes=[pltpu.VMEM((T, B, 8 * Hp), jnp.float32),   # gates_x both dirs
                        pltpu.VMEM((T, B, Hp), jnp.float32),       # h_fwd per step
                        pltpu.VMEM((T, B, Hp), jnp.float32)],      # h_bwd per step
        compiler_params=pltpu.CompilerParams(vmem_limit_bytes=vmem_limit),
    )(x_pair, wih, whh, b, wemb, bemb)

    return out2d.reshape(T, B, nOutP)[:, :, :nOut]


def init_params(key, nIn, H, nOut):
    """Deterministic synthetic init mirroring PyTorch shapes.
    b_f / b_b are the combined (b_ih + b_hh) biases per direction."""
    ks = jax.random.split(key, 10)
    s = 1.0 / np.sqrt(H)
    u = lambda k, shape, sc: jax.random.uniform(k, shape, jnp.float32, -sc, sc)
    se = 1.0 / np.sqrt(2 * H)
    return dict(
        wih_f=u(ks[0], (4 * H, nIn), s),
        whh_f=u(ks[1], (4 * H, H), s),
        b_f=u(ks[2], (1, 4 * H), s) + u(ks[3], (1, 4 * H), s),
        wih_b=u(ks[4], (4 * H, nIn), s),
        whh_b=u(ks[5], (4 * H, H), s),
        b_b=u(ks[6], (1, 4 * H), s) + u(ks[7], (1, 4 * H), s),
        wemb=u(ks[8], (nOut, 2 * H), se),
        bemb=u(ks[9], (1, nOut), se),
    )


def reference(x, p):
    """Pure-JAX reference of the PyTorch forward (for correctness check)."""
    T, B, _ = x.shape
    H = p['whh_f'].shape[1]

    def run(wih, whh, bias, reverse):
        def cell(carry, x_t):
            h, c = carry
            gates = x_t @ wih.T + h @ whh.T + bias
            i, f, g, o = jnp.split(gates, 4, axis=-1)
            i = jax.nn.sigmoid(i); f = jax.nn.sigmoid(f)
            g = jnp.tanh(g); o = jax.nn.sigmoid(o)
            c = f * c + i * g
            h = o * jnp.tanh(c)
            return (h, c), h
        h0 = jnp.zeros((B, H), jnp.float32)
        c0 = jnp.zeros((B, H), jnp.float32)
        xs = x[::-1] if reverse else x
        _, hs = lax.scan(cell, (h0, c0), xs)
        return hs[::-1] if reverse else hs

    hf = run(p['wih_f'], p['whh_f'], p['b_f'], False)
    hb = run(p['wih_b'], p['whh_b'], p['b_b'], True)
    rec = jnp.concatenate([hf, hb], axis=-1)            # (T, B, 2H)
    out = jnp.einsum('tbh,oh->tbo', rec, p['wemb']) + p['bemb']
    return out                                           # (T, B, nOut)


if __name__ == "__main__":
    T, B, nIn, H, nOut = 8, 2, 16, 32, 16
    key = jax.random.PRNGKey(0)
    kx, kp = jax.random.split(key)
    x = jax.random.normal(kx, (T, B, nIn), jnp.float32)
    params = init_params(kp, nIn, H, nOut)

    out = jax.block_until_ready(bidirectional_lstm(x, params))
    ref = reference(x, params)
    np.testing.assert_allclose(np.asarray(out), np.asarray(ref), atol=1e-4, rtol=1e-4)
    print("KERNEL_OK")
</pallas_src>

<mosaic_0001>
module attributes {stable_mosaic.version = 11 : i64} {
  func.func @_bilstm_kernel(%arg0: memref<16x32xf32, #tpu.memory_space<vmem>>, %arg1: memref<32x1024xf32, #tpu.memory_space<vmem>>, %arg2: memref<256x1024xf32, #tpu.memory_space<vmem>>, %arg3: memref<1x1024xf32, #tpu.memory_space<vmem>>, %arg4: memref<256x128xf32, #tpu.memory_space<vmem>>, %arg5: memref<1x128xf32, #tpu.memory_space<vmem>>, %arg6: memref<16x128xf32, #tpu.memory_space<vmem>>, %arg7: memref<8x2x1024xf32, #tpu.memory_space<vmem>>, %arg8: memref<8x2x128xf32, #tpu.memory_space<vmem>>, %arg9: memref<8x2x128xf32, #tpu.memory_space<vmem>>) attributes {dimension_semantics = [], scalar_prefetch = 0 : i64, scratch_operands = 3 : i64, tpu.core_type = #tpu.core_type<tc>} {
    %c0 = arith.constant 0 : index
    %c0_0 = arith.constant 0 : index
    %0 = vector.load %arg0[%c0, %c0_0] : memref<16x32xf32, #tpu.memory_space<vmem>>, vector<16x32xf32>
    %c0_1 = arith.constant 0 : index
    %c0_2 = arith.constant 0 : index
    %1 = vector.load %arg1[%c0_1, %c0_2] : memref<32x1024xf32, #tpu.memory_space<vmem>>, vector<32x1024xf32>
    %cst = arith.constant dense<0.000000e+00> : vector<16x1024xf32>
    %2 = tpu.matmul %0, %1, %cst {dimension_numbers = #tpu.dot_dimension_numbers<[1], [0], [0], [1], [0, 0, 1, 1], [], []>} : vector<16x32xf32>, vector<32x1024xf32>, vector<16x1024xf32> -> vector<16x1024xf32>
    %c0_3 = arith.constant 0 : index
    %c0_4 = arith.constant 0 : index
    %3 = vector.load %arg3[%c0_3, %c0_4] : memref<1x1024xf32, #tpu.memory_space<vmem>>, vector<1x1024xf32>
    %4 = vector.broadcast %3 : vector<1x1024xf32> to vector<16x1024xf32>
    %5 = arith.addf %2, %4 : vector<16x1024xf32>
    %6 = vector.shape_cast %5 : vector<16x1024xf32> to vector<8x2x1024xf32>
    %c0_5 = arith.constant 0 : index
    %c0_6 = arith.constant 0 : index
    %c0_7 = arith.constant 0 : index
    %7 = vector.load %arg7[%c0_5, %c0_6, %c0_7] : memref<8x2x1024xf32, #tpu.memory_space<vmem>>, vector<8x2x1024xf32>
    tpu.vector_store %arg7[%c0_5, %c0_6, %c0_7], %6 {strides = array<i32>} : memref<8x2x1024xf32, #tpu.memory_space<vmem>>, vector<8x2x1024xf32>,
    %c0_8 = arith.constant 0 : index
    %c0_9 = arith.constant 0 : index
    %8 = vector.load %arg2[%c0_8, %c0_9] : memref<256x1024xf32, #tpu.memory_space<vmem>>, vector<256x1024xf32>
    %cst_10 = arith.constant 0.000000e+00 : f32
    %9 = vector.broadcast %cst_10 : f32 to vector<2x256xf32>
    %cst_11 = arith.constant 0.000000e+00 : f32
    %10 = vector.broadcast %cst_11 : f32 to vector<2x256xf32>
    %c0_i32 = arith.constant 0 : i32
    %11 = arith.index_cast %c0_i32 : i32 to index
    %c0_12 = arith.constant 0 : index
    %c0_13 = arith.constant 0 : index
    %12 = vector.load %arg7[%11, %c0_12, %c0_13] : memref<8x2x1024xf32, #tpu.memory_space<vmem>>, vector<1x2x1024xf32>
    %13 = vector.shape_cast %12 : vector<1x2x1024xf32> to vector<2x1024xf32>
    %cst_14 = arith.constant dense<0.000000e+00> : vector<2x1024xf32>
    %14 = tpu.matmul %9, %8, %cst_14 {dimension_numbers = #tpu.dot_dimension_numbers<[1], [0], [0], [1], [0, 0, 1, 1], [], []>} : vector<2x256xf32>, vector<256x1024xf32>, vector<2x1024xf32> -> vector<2x1024xf32>
    %15 = arith.addf %13, %14 : vector<2x1024xf32>
    %16 = vector.extract_strided_slice %15 {offsets = [0, 0], sizes = [2, 256], strides = [1, 1]} : vector<2x1024xf32> to vector<2x256xf32>
    %17 = arith.negf %16 : vector<2x256xf32>
    %18 = math.exp %17 : vector<2x256xf32>
    %cst_15 = arith.constant 1.000000e+00 : f32
    %19 = vector.broadcast %cst_15 : f32 to vector<2x256xf32>
    %20 = arith.addf %19, %18 : vector<2x256xf32>
    %21 = arith.divf %19, %20 : vector<2x256xf32>
    %22 = vector.extract_strided_slice %15 {offsets = [0, 256], sizes = [2, 256], strides = [1, 1]} : vector<2x1024xf32> to vector<2x256xf32>
    %23 = arith.negf %22 : vector<2x256xf32>
    %24 = math.exp %23 : vector<2x256xf32>
    %cst_16 = arith.constant 1.000000e+00 : f32
    %25 = vector.broadcast %cst_16 : f32 to vector<2x256xf32>
    %26 = arith.addf %25, %24 : vector<2x256xf32>
    %27 = arith.divf %25, %26 : vector<2x256xf32>
    %28 = vector.extract_strided_slice %15 {offsets = [0, 512], sizes = [2, 256], strides = [1, 1]} : vector<2x1024xf32> to vector<2x256xf32>
    %29 = math.tanh %28 : vector<2x256xf32>
    %30 = vector.extract_strided_slice %15 {offsets = [0, 768], sizes = [2, 256], strides = [1, 1]} : vector<2x1024xf32> to vector<2x256xf32>
    %31 = arith.negf %30 : vector<2x256xf32>
    %32 = math.exp %31 : vector<2x256xf32>
    %cst_17 = arith.constant 1.000000e+00 : f32
    %33 = vector.broadcast %cst_17 : f32 to vector<2x256xf32>
    %34 = arith.addf %33, %32 : vector<2x256xf32>
    %35 = arith.divf %33, %34 : vector<2x256xf32>
    %36 = arith.mulf %27, %10 : vector<2x256xf32>
    %37 = arith.mulf %21, %29 : vector<2x256xf32>
    %38 = arith.addf %36, %37 : vector<2x256xf32>
    %39 = math.tanh %38 : vector<2x256xf32>
    %40 = arith.mulf %35, %39 : vector<2x256xf32>
    %41 = vector.extract_strided_slice %40 {offsets = [0, 0], sizes = [2, 128], strides = [1, 1]} : vector<2x256xf32> to vector<2x128xf32>
    %42 = arith.index_cast %c0_i32 : i32 to index
    %c0_18 = arith.constant 0 : index
    %c0_19 = arith.constant 0 : index
    %43 = vector.load %arg8[%42, %c0_18, %c0_19] : memref<8x2x128xf32, #tpu.memory_space<vmem>>, vector<1x2x128xf32>
    %44 = vector.shape_cast %43 : vector<1x2x128xf32> to vector<2x128xf32>
    %45 = vector.shape_cast %41 : vector<2x128xf32> to vector<1x2x128xf32>
    tpu.vector_store %arg8[%42, %c0_18, %c0_19], %45 {strides = array<i32>} : memref<8x2x128xf32, #tpu.memory_space<vmem>>, vector<1x2x128xf32>,
    %46 = vector.extract_strided_slice %40 {offsets = [0, 128], sizes = [2, 128], strides = [1, 1]} : vector<2x256xf32> to vector<2x128xf32>
    %c7_i32 = arith.constant 7 : i32
    %47 = arith.subi %c7_i32, %c0_i32 : i32
    %48 = arith.index_cast %47 : i32 to index
    %c0_20 = arith.constant 0 : index
    %c0_21 = arith.constant 0 : index
    %49 = vector.load %arg9[%48, %c0_20, %c0_21] : memref<8x2x128xf32, #tpu.memory_space<vmem>>, vector<1x2x128xf32>
    %50 = vector.shape_cast %49 : vector<1x2x128xf32> to vector<2x128xf32>
    %51 = vector.shape_cast %46 : vector<2x128xf32> to vector<1x2x128xf32>
    tpu.vector_store %arg9[%48, %c0_20, %c0_21], %51 {strides = array<i32>} : memref<8x2x128xf32, #tpu.memory_space<vmem>>, vector<1x2x128xf32>,
    %c1_i32 = arith.constant 1 : i32
    %52 = arith.index_cast %c1_i32 : i32 to index
    %c0_22 = arith.constant 0 : index
    %c0_23 = arith.constant 0 : index
    %53 = vector.load %arg7[%52, %c0_22, %c0_23] : memref<8x2x1024xf32, #tpu.memory_space<vmem>>, vector<1x2x1024xf32>
    %54 = vector.shape_cast %53 : vector<1x2x1024xf32> to vector<2x1024xf32>
    %cst_24 = arith.constant dense<0.000000e+00> : vector<2x1024xf32>
    %55 = tpu.matmul %40, %8, %cst_24 {dimension_numbers = #tpu.dot_dimension_numbers<[1], [0], [0], [1], [0, 0, 1, 1], [], []>} : vector<2x256xf32>, vector<256x1024xf32>, vector<2x1024xf32> -> vector<2x1024xf32>
    %56 = arith.addf %54, %55 : vector<2x1024xf32>
    %57 = vector.extract_strided_slice %56 {offsets = [0, 0], sizes = [2, 256], strides = [1, 1]} : vector<2x1024xf32> to vector<2x256xf32>
    %58 = arith.negf %57 : vector<2x256xf32>
    %59 = math.exp %58 : vector<2x256xf32>
    %cst_25 = arith.constant 1.000000e+00 : f32
    %60 = vector.broadcast %cst_25 : f32 to vector<2x256xf32>
    %61 = arith.addf %60, %59 : vector<2x256xf32>
    %62 = arith.divf %60, %61 : vector<2x256xf32>
    %63 = vector.extract_strided_slice %56 {offsets = [0, 256], sizes = [2, 256], strides = [1, 1]} : vector<2x1024xf32> to vector<2x256xf32>
    %64 = arith.negf %63 : vector<2x256xf32>
    %65 = math.exp %64 : vector<2x256xf32>
    %cst_26 = arith.constant 1.000000e+00 : f32
    %66 = vector.broadcast %cst_26 : f32 to vector<2x256xf32>
    %67 = arith.addf %66, %65 : vector<2x256xf32>
    %68 = arith.divf %66, %67 : vector<2x256xf32>
    %69 = vector.extract_strided_slice %56 {offsets = [0, 512], sizes = [2, 256], strides = [1, 1]} : vector<2x1024xf32> to vector<2x256xf32>
    %70 = math.tanh %69 : vector<2x256xf32>
    %71 = vector.extract_strided_slice %56 {offsets = [0, 768], sizes = [2, 256], strides = [1, 1]} : vector<2x1024xf32> to vector<2x256xf32>
    %72 = arith.negf %71 : vector<2x256xf32>
    %73 = math.exp %72 : vector<2x256xf32>
    %cst_27 = arith.constant 1.000000e+00 : f32
    %74 = vector.broadcast %cst_27 : f32 to vector<2x256xf32>
    %75 = arith.addf %74, %73 : vector<2x256xf32>
    %76 = arith.divf %74, %75 : vector<2x256xf32>
    %77 = arith.mulf %68, %38 : vector<2x256xf32>
    %78 = arith.mulf %62, %70 : vector<2x256xf32>
    %79 = arith.addf %77, %78 : vector<2x256xf32>
    %80 = math.tanh %79 : vector<2x256xf32>
    %81 = arith.mulf %76, %80 : vector<2x256xf32>
    %82 = vector.extract_strided_slice %81 {offsets = [0, 0], sizes = [2, 128], strides = [1, 1]} : vector<2x256xf32> to vector<2x128xf32>
    %83 = arith.index_cast %c1_i32 : i32 to index
    %c0_28 = arith.constant 0 : index
    %c0_29 = arith.constant 0 : index
    %84 = vector.load %arg8[%83, %c0_28, %c0_29] : memref<8x2x128xf32, #tpu.memory_space<vmem>>, vector<1x2x128xf32>
    %85 = vector.shape_cast %84 : vector<1x2x128xf32> to vector<2x128xf32>
    %86 = vector.shape_cast %82 : vector<2x128xf32> to vector<1x2x128xf32>
    tpu.vector_store %arg8[%83, %c0_28, %c0_29], %86 {strides = array<i32>} : memref<8x2x128xf32, #tpu.memory_space<vmem>>, vector<1x2x128xf32>,
    %87 = vector.extract_strided_slice %81 {offsets = [0, 128], sizes = [2, 128], strides = [1, 1]} : vector<2x256xf32> to vector<2x128xf32>
    %c7_i32_30 = arith.constant 7 : i32
    %88 = arith.subi %c7_i32_30, %c1_i32 : i32
    %89 = arith.index_cast %88 : i32 to index
    %c0_31 = arith.constant 0 : index
    %c0_32 = arith.constant 0 : index
    %90 = vector.load %arg9[%89, %c0_31, %c0_32] : memref<8x2x128xf32, #tpu.memory_space<vmem>>, vector<1x2x128xf32>
    %91 = vector.shape_cast %90 : vector<1x2x128xf32> to vector<2x128xf32>
    %92 = vector.shape_cast %87 : vector<2x128xf32> to vector<1x2x128xf32>
    tpu.vector_store %arg9[%89, %c0_31, %c0_32], %92 {strides = array<i32>} : memref<8x2x128xf32, #tpu.memory_space<vmem>>, vector<1x2x128xf32>,
    %c2_i32 = arith.constant 2 : i32
    %93 = arith.index_cast %c2_i32 : i32 to index
    %c0_33 = arith.constant 0 : index
    %c0_34 = arith.constant 0 : index
    %94 = vector.load %arg7[%93, %c0_33, %c0_34] : memref<8x2x1024xf32, #tpu.memory_space<vmem>>, vector<1x2x1024xf32>
    %95 = vector.shape_cast %94 : vector<1x2x1024xf32> to vector<2x1024xf32>
    %cst_35 = arith.constant dense<0.000000e+00> : vector<2x1024xf32>
    %96 = tpu.matmul %81, %8, %cst_35 {dimension_numbers = #tpu.dot_dimension_numbers<[1], [0], [0], [1], [0, 0, 1, 1], [], []>} : vector<2x256xf32>, vector<256x1024xf32>, vector<2x1024xf32> -> vector<2x1024xf32>
    %97 = arith.addf %95, %96 : vector<2x1024xf32>
    %98 = vector.extract_strided_slice %97 {offsets = [0, 0], sizes = [2, 256], strides = [1, 1]} : vector<2x1024xf32> to vector<2x256xf32>
    %99 = arith.negf %98 : vector<2x256xf32>
    %100 = math.exp %99 : vector<2x256xf32>
    %cst_36 = arith.constant 1.000000e+00 : f32
    %101 = vector.broadcast %cst_36 : f32 to vector<2x256xf32>
    %102 = arith.addf %101, %100 : vector<2x256xf32>
    %103 = arith.divf %101, %102 : vector<2x256xf32>
    %104 = vector.extract_strided_slice %97 {offsets = [0, 256], sizes = [2, 256], strides = [1, 1]} : vector<2x1024xf32> to vector<2x256xf32>
    %105 = arith.negf %104 : vector<2x256xf32>
    %106 = math.exp %105 : vector<2x256xf32>
    %cst_37 = arith.constant 1.000000e+00 : f32
    %107 = vector.broadcast %cst_37 : f32 to vector<2x256xf32>
    %108 = arith.addf %107, %106 : vector<2x256xf32>
    %109 = arith.divf %107, %108 : vector<2x256xf32>
    %110 = vector.extract_strided_slice %97 {offsets = [0, 512], sizes = [2, 256], strides = [1, 1]} : vector<2x1024xf32> to vector<2x256xf32>
    %111 = math.tanh %110 : vector<2x256xf32>
    %112 = vector.extract_strided_slice %97 {offsets = [0, 768], sizes = [2, 256], strides = [1, 1]} : vector<2x1024xf32> to vector<2x256xf32>
    %113 = arith.negf %112 : vector<2x256xf32>
    %114 = math.exp %113 : vector<2x256xf32>
    %cst_38 = arith.constant 1.000000e+00 : f32
    %115 = vector.broadcast %cst_38 : f32 to vector<2x256xf32>
    %116 = arith.addf %115, %114 : vector<2x256xf32>
    %117 = arith.divf %115, %116 : vector<2x256xf32>
    %118 = arith.mulf %109, %79 : vector<2x256xf32>
    %119 = arith.mulf %103, %111 : vector<2x256xf32>
    %120 = arith.addf %118, %119 : vector<2x256xf32>
    %121 = math.tanh %120 : vector<2x256xf32>
    %122 = arith.mulf %117, %121 : vector<2x256xf32>
    %123 = vector.extract_strided_slice %122 {offsets = [0, 0], sizes = [2, 128], strides = [1, 1]} : vector<2x256xf32> to vector<2x128xf32>
    %124 = arith.index_cast %c2_i32 : i32 to index
    %c0_39 = arith.constant 0 : index
    %c0_40 = arith.constant 0 : index
    %125 = vector.load %arg8[%124, %c0_39, %c0_40] : memref<8x2x128xf32, #tpu.memory_space<vmem>>, vector<1x2x128xf32>
    %126 = vector.shape_cast %125 : vector<1x2x128xf32> to vector<2x128xf32>
    %127 = vector.shape_cast %123 : vector<2x128xf32> to vector<1x2x128xf32>
    tpu.vector_store %arg8[%124, %c0_39, %c0_40], %127 {strides = array<i32>} : memref<8x2x128xf32, #tpu.memory_space<vmem>>, vector<1x2x128xf32>,
    %128 = vector.extract_strided_slice %122 {offsets = [0, 128], sizes = [2, 128], strides = [1, 1]} : vector<2x256xf32> to vector<2x128xf32>
    %c7_i32_41 = arith.constant 7 : i32
    %129 = arith.subi %c7_i32_41, %c2_i32 : i32
    %130 = arith.index_cast %129 : i32 to index
    %c0_42 = arith.constant 0 : index
    %c0_43 = arith.constant 0 : index
    %131 = vector.load %arg9[%130, %c0_42, %c0_43] : memref<8x2x128xf32, #tpu.memory_space<vmem>>, vector<1x2x128xf32>
    %132 = vector.shape_cast %131 : vector<1x2x128xf32> to vector<2x128xf32>
    %133 = vector.shape_cast %128 : vector<2x128xf32> to vector<1x2x128xf32>
    tpu.vector_store %arg9[%130, %c0_42, %c0_43], %133 {strides = array<i32>} : memref<8x2x128xf32, #tpu.memory_space<vmem>>, vector<1x2x128xf32>,
    %c3_i32 = arith.constant 3 : i32
    %134 = arith.index_cast %c3_i32 : i32 to index
    %c0_44 = arith.constant 0 : index
    %c0_45 = arith.constant 0 : index
    %135 = vector.load %arg7[%134, %c0_44, %c0_45] : memref<8x2x1024xf32, #tpu.memory_space<vmem>>, vector<1x2x1024xf32>
    %136 = vector.shape_cast %135 : vector<1x2x1024xf32> to vector<2x1024xf32>
    %cst_46 = arith.constant dense<0.000000e+00> : vector<2x1024xf32>
    %137 = tpu.matmul %122, %8, %cst_46 {dimension_numbers = #tpu.dot_dimension_numbers<[1], [0], [0], [1], [0, 0, 1, 1], [], []>} : vector<2x256xf32>, vector<256x1024xf32>, vector<2x1024xf32> -> vector<2x1024xf32>
    %138 = arith.addf %136, %137 : vector<2x1024xf32>
    %139 = vector.extract_strided_slice %138 {offsets = [0, 0], sizes = [2, 256], strides = [1, 1]} : vector<2x1024xf32> to vector<2x256xf32>
    %140 = arith.negf %139 : vector<2x256xf32>
    %141 = math.exp %140 : vector<2x256xf32>
    %cst_47 = arith.constant 1.000000e+00 : f32
    %142 = vector.broadcast %cst_47 : f32 to vector<2x256xf32>
    %143 = arith.addf %142, %141 : vector<2x256xf32>
    %144 = arith.divf %142, %143 : vector<2x256xf32>
    %145 = vector.extract_strided_slice %138 {offsets = [0, 256], sizes = [2, 256], strides = [1, 1]} : vector<2x1024xf32> to vector<2x256xf32>
    %146 = arith.negf %145 : vector<2x256xf32>
    %147 = math.exp %146 : vector<2x256xf32>
    %cst_48 = arith.constant 1.000000e+00 : f32
    %148 = vector.broadcast %cst_48 : f32 to vector<2x256xf32>
    %149 = arith.addf %148, %147 : vector<2x256xf32>
    %150 = arith.divf %148, %149 : vector<2x256xf32>
    %151 = vector.extract_strided_slice %138 {offsets = [0, 512], sizes = [2, 256], strides = [1, 1]} : vector<2x1024xf32> to vector<2x256xf32>
    %152 = math.tanh %151 : vector<2x256xf32>
    %153 = vector.extract_strided_slice %138 {offsets = [0, 768], sizes = [2, 256], strides = [1, 1]} : vector<2x1024xf32> to vector<2x256xf32>
    %154 = arith.negf %153 : vector<2x256xf32>
    %155 = math.exp %154 : vector<2x256xf32>
    %cst_49 = arith.constant 1.000000e+00 : f32
    %156 = vector.broadcast %cst_49 : f32 to vector<2x256xf32>
    %157 = arith.addf %156, %155 : vector<2x256xf32>
    %158 = arith.divf %156, %157 : vector<2x256xf32>
    %159 = arith.mulf %150, %120 : vector<2x256xf32>
    %160 = arith.mulf %144, %152 : vector<2x256xf32>
    %161 = arith.addf %159, %160 : vector<2x256xf32>
    %162 = math.tanh %161 : vector<2x256xf32>
    %163 = arith.mulf %158, %162 : vector<2x256xf32>
    %164 = vector.extract_strided_slice %163 {offsets = [0, 0], sizes = [2, 128], strides = [1, 1]} : vector<2x256xf32> to vector<2x128xf32>
    %165 = arith.index_cast %c3_i32 : i32 to index
    %c0_50 = arith.constant 0 : index
    %c0_51 = arith.constant 0 : index
    %166 = vector.load %arg8[%165, %c0_50, %c0_51] : memref<8x2x128xf32, #tpu.memory_space<vmem>>, vector<1x2x128xf32>
    %167 = vector.shape_cast %166 : vector<1x2x128xf32> to vector<2x128xf32>
    %168 = vector.shape_cast %164 : vector<2x128xf32> to vector<1x2x128xf32>
    tpu.vector_store %arg8[%165, %c0_50, %c0_51], %168 {strides = array<i32>} : memref<8x2x128xf32, #tpu.memory_space<vmem>>, vector<1x2x128xf32>,
    %169 = vector.extract_strided_slice %163 {offsets = [0, 128], sizes = [2, 128], strides = [1, 1]} : vector<2x256xf32> to vector<2x128xf32>
    %c7_i32_52 = arith.constant 7 : i32
    %170 = arith.subi %c7_i32_52, %c3_i32 : i32
    %171 = arith.index_cast %170 : i32 to index
    %c0_53 = arith.constant 0 : index
    %c0_54 = arith.constant 0 : index
    %172 = vector.load %arg9[%171, %c0_53, %c0_54] : memref<8x2x128xf32, #tpu.memory_space<vmem>>, vector<1x2x128xf32>
    %173 = vector.shape_cast %172 : vector<1x2x128xf32> to vector<2x128xf32>
    %174 = vector.shape_cast %169 : vector<2x128xf32> to vector<1x2x128xf32>
    tpu.vector_store %arg9[%171, %c0_53, %c0_54], %174 {strides = array<i32>} : memref<8x2x128xf32, #tpu.memory_space<vmem>>, vector<1x2x128xf32>,
    %c4_i32 = arith.constant 4 : i32
    %175 = arith.index_cast %c4_i32 : i32 to index
    %c0_55 = arith.constant 0 : index
    %c0_56 = arith.constant 0 : index
    %176 = vector.load %arg7[%175, %c0_55, %c0_56] : memref<8x2x1024xf32, #tpu.memory_space<vmem>>, vector<1x2x1024xf32>
    %177 = vector.shape_cast %176 : vector<1x2x1024xf32> to vector<2x1024xf32>
    %cst_57 = arith.constant dense<0.000000e+00> : vector<2x1024xf32>
    %178 = tpu.matmul %163, %8, %cst_57 {dimension_numbers = #tpu.dot_dimension_numbers<[1], [0], [0], [1], [0, 0, 1, 1], [], []>} : vector<2x256xf32>, vector<256x1024xf32>, vector<2x1024xf32> -> vector<2x1024xf32>
    %179 = arith.addf %177, %178 : vector<2x1024xf32>
    %180 = vector.extract_strided_slice %179 {offsets = [0, 0], sizes = [2, 256], strides = [1, 1]} : vector<2x1024xf32> to vector<2x256xf32>
    %181 = arith.negf %180 : vector<2x256xf32>
    %182 = math.exp %181 : vector<2x256xf32>
    %cst_58 = arith.constant 1.000000e+00 : f32
    %183 = vector.broadcast %cst_58 : f32 to vector<2x256xf32>
    %184 = arith.addf %183, %182 : vector<2x256xf32>
    %185 = arith.divf %183, %184 : vector<2x256xf32>
    %186 = vector.extract_strided_slice %179 {offsets = [0, 256], sizes = [2, 256], strides = [1, 1]} : vector<2x1024xf32> to vector<2x256xf32>
    %187 = arith.negf %186 : vector<2x256xf32>
    %188 = math.exp %187 : vector<2x256xf32>
    %cst_59 = arith.constant 1.000000e+00 : f32
    %189 = vector.broadcast %cst_59 : f32 to vector<2x256xf32>
    %190 = arith.addf %189, %188 : vector<2x256xf32>
    %191 = arith.divf %189, %190 : vector<2x256xf32>
    %192 = vector.extract_strided_slice %179 {offsets = [0, 512], sizes = [2, 256], strides = [1, 1]} : vector<2x1024xf32> to vector<2x256xf32>
    %193 = math.tanh %192 : vector<2x256xf32>
    %194 = vector.extract_strided_slice %179 {offsets = [0, 768], sizes = [2, 256], strides = [1, 1]} : vector<2x1024xf32> to vector<2x256xf32>
    %195 = arith.negf %194 : vector<2x256xf32>
    %196 = math.exp %195 : vector<2x256xf32>
    %cst_60 = arith.constant 1.000000e+00 : f32
    %197 = vector.broadcast %cst_60 : f32 to vector<2x256xf32>
    %198 = arith.addf %197, %196 : vector<2x256xf32>
    %199 = arith.divf %197, %198 : vector<2x256xf32>
    %200 = arith.mulf %191, %161 : vector<2x256xf32>
    %201 = arith.mulf %185, %193 : vector<2x256xf32>
    %202 = arith.addf %200, %201 : vector<2x256xf32>
    %203 = math.tanh %202 : vector<2x256xf32>
    %204 = arith.mulf %199, %203 : vector<2x256xf32>
    %205 = vector.extract_strided_slice %204 {offsets = [0, 0], sizes = [2, 128], strides = [1, 1]} : vector<2x256xf32> to vector<2x128xf32>
    %206 = arith.index_cast %c4_i32 : i32 to index
    %c0_61 = arith.constant 0 : index
    %c0_62 = arith.constant 0 : index
    %207 = vector.load %arg8[%206, %c0_61, %c0_62] : memref<8x2x128xf32, #tpu.memory_space<vmem>>, vector<1x2x128xf32>
    %208 = vector.shape_cast %207 : vector<1x2x128xf32> to vector<2x128xf32>
    %209 = vector.shape_cast %205 : vector<2x128xf32> to vector<1x2x128xf32>
    tpu.vector_store %arg8[%206, %c0_61, %c0_62], %209 {strides = array<i32>} : memref<8x2x128xf32, #tpu.memory_space<vmem>>, vector<1x2x128xf32>,
    %210 = vector.extract_strided_slice %204 {offsets = [0, 128], sizes = [2, 128], strides = [1, 1]} : vector<2x256xf32> to vector<2x128xf32>
    %c7_i32_63 = arith.constant 7 : i32
    %211 = arith.subi %c7_i32_63, %c4_i32 : i32
    %212 = arith.index_cast %211 : i32 to index
    %c0_64 = arith.constant 0 : index
    %c0_65 = arith.constant 0 : index
    %213 = vector.load %arg9[%212, %c0_64, %c0_65] : memref<8x2x128xf32, #tpu.memory_space<vmem>>, vector<1x2x128xf32>
    %214 = vector.shape_cast %213 : vector<1x2x128xf32> to vector<2x128xf32>
    %215 = vector.shape_cast %210 : vector<2x128xf32> to vector<1x2x128xf32>
    tpu.vector_store %arg9[%212, %c0_64, %c0_65], %215 {strides = array<i32>} : memref<8x2x128xf32, #tpu.memory_space<vmem>>, vector<1x2x128xf32>,
    %c5_i32 = arith.constant 5 : i32
    %216 = arith.index_cast %c5_i32 : i32 to index
    %c0_66 = arith.constant 0 : index
    %c0_67 = arith.constant 0 : index
    %217 = vector.load %arg7[%216, %c0_66, %c0_67] : memref<8x2x1024xf32, #tpu.memory_space<vmem>>, vector<1x2x1024xf32>
    %218 = vector.shape_cast %217 : vector<1x2x1024xf32> to vector<2x1024xf32>
    %cst_68 = arith.constant dense<0.000000e+00> : vector<2x1024xf32>
    %219 = tpu.matmul %204, %8, %cst_68 {dimension_numbers = #tpu.dot_dimension_numbers<[1], [0], [0], [1], [0, 0, 1, 1], [], []>} : vector<2x256xf32>, vector<256x1024xf32>, vector<2x1024xf32> -> vector<2x1024xf32>
    %220 = arith.addf %218, %219 : vector<2x1024xf32>
    %221 = vector.extract_strided_slice %220 {offsets = [0, 0], sizes = [2, 256], strides = [1, 1]} : vector<2x1024xf32> to vector<2x256xf32>
    %222 = arith.negf %221 : vector<2x256xf32>
    %223 = math.exp %222 : vector<2x256xf32>
    %cst_69 = arith.constant 1.000000e+00 : f32
    %224 = vector.broadcast %cst_69 : f32 to vector<2x256xf32>
    %225 = arith.addf %224, %223 : vector<2x256xf32>
    %226 = arith.divf %224, %225 : vector<2x256xf32>
    %227 = vector.extract_strided_slice %220 {offsets = [0, 256], sizes = [2, 256], strides = [1, 1]} : vector<2x1024xf32> to vector<2x256xf32>
    %228 = arith.negf %227 : vector<2x256xf32>
    %229 = math.exp %228 : vector<2x256xf32>
    %cst_70 = arith.constant 1.000000e+00 : f32
    %230 = vector.broadcast %cst_70 : f32 to vector<2x256xf32>
    %231 = arith.addf %230, %229 : vector<2x256xf32>
    %232 = arith.divf %230, %231 : vector<2x256xf32>
    %233 = vector.extract_strided_slice %220 {offsets = [0, 512], sizes = [2, 256], strides = [1, 1]} : vector<2x1024xf32> to vector<2x256xf32>
    %234 = math.tanh %233 : vector<2x256xf32>
    %235 = vector.extract_strided_slice %220 {offsets = [0, 768], sizes = [2, 256], strides = [1, 1]} : vector<2x1024xf32> to vector<2x256xf32>
    %236 = arith.negf %235 : vector<2x256xf32>
    %237 = math.exp %236 : vector<2x256xf32>
    %cst_71 = arith.constant 1.000000e+00 : f32
    %238 = vector.broadcast %cst_71 : f32 to vector<2x256xf32>
    %239 = arith.addf %238, %237 : vector<2x256xf32>
    %240 = arith.divf %238, %239 : vector<2x256xf32>
    %241 = arith.mulf %232, %202 : vector<2x256xf32>
    %242 = arith.mulf %226, %234 : vector<2x256xf32>
    %243 = arith.addf %241, %242 : vector<2x256xf32>
    %244 = math.tanh %243 : vector<2x256xf32>
    %245 = arith.mulf %240, %244 : vector<2x256xf32>
    %246 = vector.extract_strided_slice %245 {offsets = [0, 0], sizes = [2, 128], strides = [1, 1]} : vector<2x256xf32> to vector<2x128xf32>
    %247 = arith.index_cast %c5_i32 : i32 to index
    %c0_72 = arith.constant 0 : index
    %c0_73 = arith.constant 0 : index
    %248 = vector.load %arg8[%247, %c0_72, %c0_73] : memref<8x2x128xf32, #tpu.memory_space<vmem>>, vector<1x2x128xf32>
    %249 = vector.shape_cast %248 : vector<1x2x128xf32> to vector<2x128xf32>
    %250 = vector.shape_cast %246 : vector<2x128xf32> to vector<1x2x128xf32>
    tpu.vector_store %arg8[%247, %c0_72, %c0_73], %250 {strides = array<i32>} : memref<8x2x128xf32, #tpu.memory_space<vmem>>, vector<1x2x128xf32>,
    %251 = vector.extract_strided_slice %245 {offsets = [0, 128], sizes = [2, 128], strides = [1, 1]} : vector<2x256xf32> to vector<2x128xf32>
    %c7_i32_74 = arith.constant 7 : i32
    %252 = arith.subi %c7_i32_74, %c5_i32 : i32
    %253 = arith.index_cast %252 : i32 to index
    %c0_75 = arith.constant 0 : index
    %c0_76 = arith.constant 0 : index
    %254 = vector.load %arg9[%253, %c0_75, %c0_76] : memref<8x2x128xf32, #tpu.memory_space<vmem>>, vector<1x2x128xf32>
    %255 = vector.shape_cast %254 : vector<1x2x128xf32> to vector<2x128xf32>
    %256 = vector.shape_cast %251 : vector<2x128xf32> to vector<1x2x128xf32>
    tpu.vector_store %arg9[%253, %c0_75, %c0_76], %256 {strides = array<i32>} : memref<8x2x128xf32, #tpu.memory_space<vmem>>, vector<1x2x128xf32>,
    %c6_i32 = arith.constant 6 : i32
    %257 = arith.index_cast %c6_i32 : i32 to index
    %c0_77 = arith.constant 0 : index
    %c0_78 = arith.constant 0 : index
    %258 = vector.load %arg7[%257, %c0_77, %c0_78] : memref<8x2x1024xf32, #tpu.memory_space<vmem>>, vector<1x2x1024xf32>
    %259 = vector.shape_cast %258 : vector<1x2x1024xf32> to vector<2x1024xf32>
    %cst_79 = arith.constant dense<0.000000e+00> : vector<2x1024xf32>
    %260 = tpu.matmul %245, %8, %cst_79 {dimension_numbers = #tpu.dot_dimension_numbers<[1], [0], [0], [1], [0, 0, 1, 1], [], []>} : vector<2x256xf32>, vector<256x1024xf32>, vector<2x1024xf32> -> vector<2x1024xf32>
    %261 = arith.addf %259, %260 : vector<2x1024xf32>
    %262 = vector.extract_strided_slice %261 {offsets = [0, 0], sizes = [2, 256], strides = [1, 1]} : vector<2x1024xf32> to vector<2x256xf32>
    %263 = arith.negf %262 : vector<2x256xf32>
    %264 = math.exp %263 : vector<2x256xf32>
    %cst_80 = arith.constant 1.000000e+00 : f32
    %265 = vector.broadcast %cst_80 : f32 to vector<2x256xf32>
    %266 = arith.addf %265, %264 : vector<2x256xf32>
    %267 = arith.divf %265, %266 : vector<2x256xf32>
    %268 = vector.extract_strided_slice %261 {offsets = [0, 256], sizes = [2, 256], strides = [1, 1]} : vector<2x1024xf32> to vector<2x256xf32>
    %269 = arith.negf %268 : vector<2x256xf32>
    %270 = math.exp %269 : vector<2x256xf32>
    %cst_81 = arith.constant 1.000000e+00 : f32
    %271 = vector.broadcast %cst_81 : f32 to vector<2x256xf32>
    %272 = arith.addf %271, %270 : vector<2x256xf32>
    %273 = arith.divf %271, %272 : vector<2x256xf32>
    %274 = vector.extract_strided_slice %261 {offsets = [0, 512], sizes = [2, 256], strides = [1, 1]} : vector<2x1024xf32> to vector<2x256xf32>
    %275 = math.tanh %274 : vector<2x256xf32>
    %276 = vector.extract_strided_slice %261 {offsets = [0, 768], sizes = [2, 256], strides = [1, 1]} : vector<2x1024xf32> to vector<2x256xf32>
    %277 = arith.negf %276 : vector<2x256xf32>
    %278 = math.exp %277 : vector<2x256xf32>
    %cst_82 = arith.constant 1.000000e+00 : f32
    %279 = vector.broadcast %cst_82 : f32 to vector<2x256xf32>
    %280 = arith.addf %279, %278 : vector<2x256xf32>
    %281 = arith.divf %279, %280 : vector<2x256xf32>
    %282 = arith.mulf %273, %243 : vector<2x256xf32>
    %283 = arith.mulf %267, %275 : vector<2x256xf32>
    %284 = arith.addf %282, %283 : vector<2x256xf32>
    %285 = math.tanh %284 : vector<2x256xf32>
    %286 = arith.mulf %281, %285 : vector<2x256xf32>
    %287 = vector.extract_strided_slice %286 {offsets = [0, 0], sizes = [2, 128], strides = [1, 1]} : vector<2x256xf32> to vector<2x128xf32>
    %288 = arith.index_cast %c6_i32 : i32 to index
    %c0_83 = arith.constant 0 : index
    %c0_84 = arith.constant 0 : index
    %289 = vector.load %arg8[%288, %c0_83, %c0_84] : memref<8x2x128xf32, #tpu.memory_space<vmem>>, vector<1x2x128xf32>
    %290 = vector.shape_cast %289 : vector<1x2x128xf32> to vector<2x128xf32>
    %291 = vector.shape_cast %287 : vector<2x128xf32> to vector<1x2x128xf32>
    tpu.vector_store %arg8[%288, %c0_83, %c0_84], %291 {strides = array<i32>} : memref<8x2x128xf32, #tpu.memory_space<vmem>>, vector<1x2x128xf32>,
    %292 = vector.extract_strided_slice %286 {offsets = [0, 128], sizes = [2, 128], strides = [1, 1]} : vector<2x256xf32> to vector<2x128xf32>
    %c7_i32_85 = arith.constant 7 : i32
    %293 = arith.subi %c7_i32_85, %c6_i32 : i32
    %294 = arith.index_cast %293 : i32 to index
    %c0_86 = arith.constant 0 : index
    %c0_87 = arith.constant 0 : index
    %295 = vector.load %arg9[%294, %c0_86, %c0_87] : memref<8x2x128xf32, #tpu.memory_space<vmem>>, vector<1x2x128xf32>
    %296 = vector.shape_cast %295 : vector<1x2x128xf32> to vector<2x128xf32>
    %297 = vector.shape_cast %292 : vector<2x128xf32> to vector<1x2x128xf32>
    tpu.vector_store %arg9[%294, %c0_86, %c0_87], %297 {strides = array<i32>} : memref<8x2x128xf32, #tpu.memory_space<vmem>>, vector<1x2x128xf32>,
    %c7_i32_88 = arith.constant 7 : i32
    %298 = arith.index_cast %c7_i32_88 : i32 to index
    %c0_89 = arith.constant 0 : index
    %c0_90 = arith.constant 0 : index
    %299 = vector.load %arg7[%298, %c0_89, %c0_90] : memref<8x2x1024xf32, #tpu.memory_space<vmem>>, vector<1x2x1024xf32>
    %300 = vector.shape_cast %299 : vector<1x2x1024xf32> to vector<2x1024xf32>
    %cst_91 = arith.constant dense<0.000000e+00> : vector<2x1024xf32>
    %301 = tpu.matmul %286, %8, %cst_91 {dimension_numbers = #tpu.dot_dimension_numbers<[1], [0], [0], [1], [0, 0, 1, 1], [], []>} : vector<2x256xf32>, vector<256x1024xf32>, vector<2x1024xf32> -> vector<2x1024xf32>
    %302 = arith.addf %300, %301 : vector<2x1024xf32>
    %303 = vector.extract_strided_slice %302 {offsets = [0, 0], sizes = [2, 256], strides = [1, 1]} : vector<2x1024xf32> to vector<2x256xf32>
    %304 = arith.negf %303 : vector<2x256xf32>
    %305 = math.exp %304 : vector<2x256xf32>
    %cst_92 = arith.constant 1.000000e+00 : f32
    %306 = vector.broadcast %cst_92 : f32 to vector<2x256xf32>
    %307 = arith.addf %306, %305 : vector<2x256xf32>
    %308 = arith.divf %306, %307 : vector<2x256xf32>
    %309 = vector.extract_strided_slice %302 {offsets = [0, 256], sizes = [2, 256], strides = [1, 1]} : vector<2x1024xf32> to vector<2x256xf32>
    %310 = arith.negf %309 : vector<2x256xf32>
    %311 = math.exp %310 : vector<2x256xf32>
    %cst_93 = arith.constant 1.000000e+00 : f32
    %312 = vector.broadcast %cst_93 : f32 to vector<2x256xf32>
    %313 = arith.addf %312, %311 : vector<2x256xf32>
    %314 = arith.divf %312, %313 : vector<2x256xf32>
    %315 = vector.extract_strided_slice %302 {offsets = [0, 512], sizes = [2, 256], strides = [1, 1]} : vector<2x1024xf32> to vector<2x256xf32>
    %316 = math.tanh %315 : vector<2x256xf32>
    %317 = vector.extract_strided_slice %302 {offsets = [0, 768], sizes = [2, 256], strides = [1, 1]} : vector<2x1024xf32> to vector<2x256xf32>
    %318 = arith.negf %317 : vector<2x256xf32>
    %319 = math.exp %318 : vector<2x256xf32>
    %cst_94 = arith.constant 1.000000e+00 : f32
    %320 = vector.broadcast %cst_94 : f32 to vector<2x256xf32>
    %321 = arith.addf %320, %319 : vector<2x256xf32>
    %322 = arith.divf %320, %321 : vector<2x256xf32>
    %323 = arith.mulf %314, %284 : vector<2x256xf32>
    %324 = arith.mulf %308, %316 : vector<2x256xf32>
    %325 = arith.addf %323, %324 : vector<2x256xf32>
    %326 = math.tanh %325 : vector<2x256xf32>
    %327 = arith.mulf %322, %326 : vector<2x256xf32>
    %328 = vector.extract_strided_slice %327 {offsets = [0, 0], sizes = [2, 128], strides = [1, 1]} : vector<2x256xf32> to vector<2x128xf32>
    %329 = arith.index_cast %c7_i32_88 : i32 to index
    %c0_95 = arith.constant 0 : index
    %c0_96 = arith.constant 0 : index
    %330 = vector.load %arg8[%329, %c0_95, %c0_96] : memref<8x2x128xf32, #tpu.memory_space<vmem>>, vector<1x2x128xf32>
    %331 = vector.shape_cast %330 : vector<1x2x128xf32> to vector<2x128xf32>
    %332 = vector.shape_cast %328 : vector<2x128xf32> to vector<1x2x128xf32>
    tpu.vector_store %arg8[%329, %c0_95, %c0_96], %332 {strides = array<i32>} : memref<8x2x128xf32, #tpu.memory_space<vmem>>, vector<1x2x128xf32>,
    %333 = vector.extract_strided_slice %327 {offsets = [0, 128], sizes = [2, 128], strides = [1, 1]} : vector<2x256xf32> to vector<2x128xf32>
    %c7_i32_97 = arith.constant 7 : i32
    %334 = arith.subi %c7_i32_97, %c7_i32_88 : i32
    %335 = arith.index_cast %334 : i32 to index
    %c0_98 = arith.constant 0 : index
    %c0_99 = arith.constant 0 : index
    %336 = vector.load %arg9[%335, %c0_98, %c0_99] : memref<8x2x128xf32, #tpu.memory_space<vmem>>, vector<1x2x128xf32>
    %337 = vector.shape_cast %336 : vector<1x2x128xf32> to vector<2x128xf32>
    %338 = vector.shape_cast %333 : vector<2x128xf32> to vector<1x2x128xf32>
    tpu.vector_store %arg9[%335, %c0_98, %c0_99], %338 {strides = array<i32>} : memref<8x2x128xf32, #tpu.memory_space<vmem>>, vector<1x2x128xf32>,
    %c8_i32 = arith.constant 8 : i32
    %c0_100 = arith.constant 0 : index
    %c0_101 = arith.constant 0 : index
    %c0_102 = arith.constant 0 : index
    %339 = vector.load %arg8[%c0_100, %c0_101, %c0_102] : memref<8x2x128xf32, #tpu.memory_space<vmem>>, vector<8x2x128xf32>
    %340 = vector.shape_cast %339 : vector<8x2x128xf32> to vector<16x128xf32>
    %c0_103 = arith.constant 0 : index
    %c0_104 = arith.constant 0 : index
    %c0_105 = arith.constant 0 : index
    %341 = vector.load %arg9[%c0_103, %c0_104, %c0_105] : memref<8x2x128xf32, #tpu.memory_space<vmem>>, vector<8x2x128xf32>
    %342 = vector.shape_cast %341 : vector<8x2x128xf32> to vector<16x128xf32>
    %c0_106 = arith.constant 0 : index
    %c0_107 = arith.constant 0 : index
    %343 = vector.load %arg4[%c0_106, %c0_107] : memref<256x128xf32, #tpu.memory_space<vmem>>, vector<128x128xf32>
    %cst_108 = arith.constant dense<0.000000e+00> : vector<16x128xf32>
    %344 = tpu.matmul %340, %343, %cst_108 {dimension_numbers = #tpu.dot_dimension_numbers<[1], [0], [0], [1], [0, 0, 1, 1], [], []>} : vector<16x128xf32>, vector<128x128xf32>, vector<16x128xf32> -> vector<16x128xf32>
    %c128 = arith.constant 128 : index
    %c0_109 = arith.constant 0 : index
    %345 = vector.load %arg4[%c128, %c0_109] : memref<256x128xf32, #tpu.memory_space<vmem>>, vector<128x128xf32>
    %cst_110 = arith.constant dense<0.000000e+00> : vector<16x128xf32>
    %346 = tpu.matmul %342, %345, %cst_110 {dimension_numbers = #tpu.dot_dimension_numbers<[1], [0], [0], [1], [0, 0, 1, 1], [], []>} : vector<16x128xf32>, vector<128x128xf32>, vector<16x128xf32> -> vector<16x128xf32>
    %347 = arith.addf %344, %346 : vector<16x128xf32>
    %c0_111 = arith.constant 0 : index
    %c0_112 = arith.constant 0 : index
    %348 = vector.load %arg5[%c0_111, %c0_112] : memref<1x128xf32, #tpu.memory_space<vmem>>, vector<1x128xf32>
    %349 = vector.broadcast %348 : vector<1x128xf32> to vector<16x128xf32>
    %350 = arith.addf %347, %349 : vector<16x128xf32>
    %c0_113 = arith.constant 0 : index
    %c0_114 = arith.constant 0 : index
    %351 = vector.load %arg6[%c0_113, %c0_114] : memref<16x128xf32, #tpu.memory_space<vmem>>, vector<16x128xf32>
    tpu.vector_store %arg6[%c0_113, %c0_114], %350 {strides = array<i32>} : memref<16x128xf32, #tpu.memory_space<vmem>>, vector<16x128xf32>,
    return
  }
}

</mosaic_0001>

<bundles_post_ra>
// kernel: tpu_custom_call.1
= control target key start
LH: loop header
LB: loop body
LE: loop exit
PB: predicated region body
PF: predicated region fallthrough
CT: control target
= control target key end

     0   :  { %11 = vsyncpa [#allocation6], 0  ;;  %s8508_s0 = inlined_call_operand.hbm [shape: f32[16,32], index: 0, kind: input, shape index: {}]   ;;  %s8509_s1 = inlined_call_operand.hbm [shape: f32[32,1024], index: 1, kind: input, shape index: {}]   ;;  %s8510_s2 = inlined_call_operand.hbm [shape: f32[256,1024], index: 2, kind: input, shape index: {}]   ;;  %s8511_s3 = inlined_call_operand.vmem [shape: f32[1,1024], index: 3, kind: input, shape index: {}]   ;;  %s8512_s4 = inlined_call_operand.hbm [shape: f32[256,128], index: 4, kind: input, shape index: {}]   ;;  %s8513_s5 = inlined_call_operand.vmem [shape: f32[1,128], index: 5, kind: input, shape index: {}]   ;;  %s8514_s6 = inlined_call_operand.hbm [shape: f32[16,128], index: 6, kind: output, shape index: {}]  }
   0x1   :  { %12 = vsyncpa [#allocation9], 0 }
   0x2   :  { %13 = vsyncpa [#allocation12], 0 }
   0x3   :  { %14 = vsyncpa [#allocation7], 0  ;;  %s6803_s21 = smov [#allocation8]   ;;  %s6685_s25 = scalar_lea.hbm %s8509_s1, 4096 }
   0x4   :  { %s32_s22 = sshll.u32 %s6803_s21, 4  ;;  %p6686_p0 = scmp.ne.s32.totalorder %s8509_s1, %s6685_s25  ;;  %s33_s22 = int_to_ptr.vmem [resolvable:$true] %s32_s22 }
   0x5   :  { %p6689_p1 = scmp.lt.u32.totalorder %s6685_s25, %s8509_s1 }
   0x7   :  { %p6691_p2 = pnand %p6689_p1, %p6686_p0 }
   0x9   :  { %6694 = shalt.err (!%p6691_p2)
}
   0xa   :  { %s6695_s30 = scalar_lea.vmem %s33_s22, 4096  ;;  %p6700_p4 = scmp.lt.s32.totalorder %s33_s22, %s33_s22 }
   0xb   :  { %p6696_p3 = scmp.ne.s32.totalorder %s33_s22, %s6695_s30  ;;  %p6701_p5 = scmp.lt.s32.totalorder %s6695_s30, %s6695_s30 }
   0xd   :  { %p6702_p6 = por %p6701_p5, %p6700_p4 }
   0xf   :  { %p6703_p7 = pnand %p6702_p6, %p6696_p3 }
  0x11   :  { %6706 = shalt.err (!%p6703_p7)
}
  0x12   :  { %s6804_s7 = smov 1024   ;;  %s6805_s8 = smov 64  }
  0x13   :  { %38 = dma.hbm_to_vmem [thread:$0]  %s8509_s1, 4096, %s33_s22, [#allocation9], %s6804_s7, %s6804_s7, %s6805_s8  }
  0x14   :  { %s6806_s11 = smov [#allocation5]   ;;  %s6707_s15 = scalar_lea.hbm %s8508_s0, 256 }
  0x15   :  { %s20_s12 = sshll.u32 %s6806_s11, 4  ;;  %p6708_p8 = scmp.ne.s32.totalorder %s8508_s0, %s6707_s15  ;;  %s21_s12 = int_to_ptr.vmem [resolvable:$true] %s20_s12 }
  0x16   :  { %p6711_p9 = scmp.lt.u32.totalorder %s6707_s15, %s8508_s0 }
  0x18   :  { %p6713_p10 = pnand %p6711_p9, %p6708_p8 }
  0x1a   :  { %6716 = shalt.err (!%p6713_p10)
}
  0x1b   :  { %s6717_s20 = scalar_lea.vmem %s21_s12, 256  ;;  %p6722_p12 = scmp.lt.s32.totalorder %s21_s12, %s21_s12 }
  0x1c   :  { %p6718_p11 = scmp.ne.s32.totalorder %s21_s12, %s6717_s20  ;;  %p6723_p13 = scmp.lt.s32.totalorder %s6717_s20, %s6717_s20 }
  0x1e   :  { %p6724_p0 = por %p6723_p13, %p6722_p12 }
  0x20   :  { %p6725_p1 = pnand %p6724_p0, %p6718_p11 }
  0x22   :  { %6728 = shalt.err (!%p6725_p1)
}
  0x23   :  { %s6807_s1 = smov 128   ;;  %s6808_s21 = smov 8  }
  0x24   :  { %26 = dma.hbm_to_vmem [thread:$0]  %s8508_s0, 256, %s21_s12, [#allocation6], %s6807_s1, %s6807_s1, %s6808_s21  }
  0x25   :  { %s6809_s24 = smov [#allocation10]   ;;  %s6810_s26 = smov [#allocation11]  }
  0x26   :  { %s44_s25 = sshll.u32 %s6809_s24, 4  ;;  %s58_s27 = sshll.u32 %s6810_s26, 4  ;;  %s45_s25 = int_to_ptr.vmem [resolvable:$true] %s44_s25  ;;  %s6879_s27 = int_to_ptr.vmem [resolvable:$true] %s58_s27 }
  0x27   :  { %s6729_s30 = scalar_lea.hbm %s8510_s2, 32768 }
  0x28   :  { %p6730_p2 = scmp.ne.s32.totalorder %s8510_s2, %s6729_s30  ;;  %p6733_p3 = scmp.lt.u32.totalorder %s6729_s30, %s8510_s2 }
  0x2a   :  { %p6735_p4 = pnand %p6733_p3, %p6730_p2 }
  0x2c   :  { %6738 = shalt.err (!%p6735_p4)
}
  0x2d   :  { %s6739_s0 = scalar_lea.vmem %s45_s25, 32768  ;;  %p6744_p6 = scmp.lt.s32.totalorder %s45_s25, %s45_s25 }
  0x2e   :  { %p6740_p5 = scmp.ne.s32.totalorder %s45_s25, %s6739_s0  ;;  %p6745_p7 = scmp.lt.s32.totalorder %s6739_s0, %s6739_s0 }
  0x30   :  { %p6746_p8 = por %p6745_p7, %p6744_p6 }
  0x32   :  { %p6747_p9 = pnand %p6746_p8, %p6740_p5 }
  0x34   :  { %6750 = shalt.err (!%p6747_p9)
}
  0x35   :  { %50 = dma.hbm_to_vmem [thread:$0]  %s8510_s2, 32768, %s45_s25, [#allocation9], %s6804_s7, %s6804_s7, %s6805_s8  }
  0x36   :  { %s6751_s17 = scalar_lea.hbm %s8512_s4, 4096 }
  0x37   :  { %p6752_p10 = scmp.ne.s32.totalorder %s8512_s4, %s6751_s17  ;;  %p6755_p11 = scmp.lt.u32.totalorder %s6751_s17, %s8512_s4 }
  0x39   :  { %p6757_p12 = pnand %p6755_p11, %p6752_p10 }
  0x3b   :  { %6760 = shalt.err (!%p6757_p12)
}
  0x3c   :  { %s6761_s23 = scalar_lea.vmem %s6879_s27, 4096  ;;  %p6766_p0 = scmp.lt.s32.totalorder %s6879_s27, %s6879_s27 }
  0x3d   :  { %p6762_p13 = scmp.ne.s32.totalorder %s6879_s27, %s6761_s23  ;;  %p6767_p1 = scmp.lt.s32.totalorder %s6761_s23, %s6761_s23 }
  0x3f   :  { %p6768_p2 = por %p6767_p1, %p6766_p0 }
  0x41   :  { %p6769_p3 = pnand %p6768_p2, %p6762_p13 }
  0x43   :  { %6772 = shalt.err (!%p6769_p3)
}
  0x44   :  { %64 = dma.hbm_to_vmem [thread:$0]  %s8512_s4, 4096, %s6879_s27, [#allocation12], %s6807_s1, %s6807_s1, %s6808_s21  }
  0x45   :  { %6795 = dma.done.wait [#allocation6], 256  }
  0x46   :  { %6796 = vsyncadd [#allocation6], 4294967040 }
  0x47   :  { %6797 = dma.done.wait [#allocation9], 36864  }
  0x48   :  { %6798 = vsyncadd [#allocation9], 4294930432 }
  0x49   :  { %6799 = dma.done.wait [#allocation12], 4096  }
  0x4a   :  { %6800 = vsyncadd [#allocation12], 4294963200  ;;  %v8515_v0 = vmov 0.0   ;;  %v82_v1 = vld [vmem:[#allocation8 + $0x8] sm:$0xff]  ;;  %v84_v3 = vld [vmem:[#allocation8 + $0x18] sm:$0xff]  ;;  %vm155_vm0 = vcmask 261120  }
  0x4b   :  { %226 = vmatprep.mubr.f32.mxu0 %v8515_v0  ;;  %303 = vmatprep.mubr.f32.mxu1 %v8515_v0  ;;  %v90_v2 = vld [vmem:[#allocation8 + $0x48] sm:$0xff]  ;;  %v92_v5 = vld [vmem:[#allocation8 + $0x58] sm:$0xff]  ;;  %v81_v6 = vld [vmem:[#allocation8] sm:$0xff]  ;;  %s6813_s25 = smov [#allocation13]  }
  0x4c   :  { %v4400_v4 = vpack.c.bf16 %v90_v2, %v82_v1  ;;  %v89_v7 = vld [vmem:[#allocation8 + $0x40] sm:$0xff]  ;;  %v4408_v8 = vpack.c.bf16 %v92_v5, %v84_v3  ;;  %v83_v10 = vld [vmem:[#allocation8 + $0x10] sm:$0xff]  ;;  %v98_v12 = vld [vmem:[#allocation8 + $0x88] sm:$0xff]  ;;  %s4247_s26 = sshll.u32 %s6813_s25, 4  ;;  %s4248_s26 = int_to_ptr.vmem [resolvable:$true] %s4247_s26 }
  0x4d   :  { %v4402_v9 = vpack.c.bf16 %v89_v7, %v81_v6  ;;  %v91_v11 = vld [vmem:[#allocation8 + $0x50] sm:$0xff]  ;;  %v106_v14 = vld [vmem:[#allocation8 + $0xc8] sm:$0xff]  ;;  %v100_v15 = vld [vmem:[#allocation8 + $0x98] sm:$0xff]  ;;  %s6773_s27 = scalar_lea.vmem %s4248_s26, 256  ;;  %p6778_p5 = scmp.lt.s32.totalorder %s4248_s26, %s4248_s26 }
  0x4e   :  { %4401 = vmatprep.subr.bf16.mxu0 %v4400_v4  ;;  %v4410_v13 = vpack.c.bf16 %v91_v11, %v83_v10  ;;  %v108_v16 = vld [vmem:[#allocation8 + $0xd8] sm:$0xff]  ;;  %4409 = vmatprep.subr.bf16.mxu1 %v4408_v8  ;;  %v4404_v17 = vpack.c.bf16 %v106_v14, %v98_v12  ;;  %v97_v19 = vld [vmem:[#allocation8 + $0x80] sm:$0xff]  ;;  %v99_v21 = vld [vmem:[#allocation8 + $0x90] sm:$0xff]  ;;  %p6774_p4 = scmp.ne.s32.totalorder %s4248_s26, %s6773_s27  ;;  %p6779_p6 = scmp.lt.s32.totalorder %s6773_s27, %s6773_s27 }
  0x4f   :  { %4403 = vmatpush1.bf16.msra.mxu0 %v4402_v9  ;;  %v4412_v18 = vpack.c.bf16 %v108_v16, %v100_v15  ;;  %v105_v20 = vld [vmem:[#allocation8 + $0xc0] sm:$0xff]  ;;  %v107_v23 = vld [vmem:[#allocation8 + $0xd0] sm:$0xff]  ;;  %v86_v24 = vld [vmem:[#allocation8 + $0x28] sm:$0xff] }
  0x50   :  { %4411 = vmatpush1.bf16.msra.mxu1 %v4410_v13  ;;  %v4406_v22 = vpack.c.bf16 %v105_v20, %v97_v19  ;;  %4405 = vmatprep.subr.bf16.mxu0 %v4404_v17  ;;  %v4414_v25 = vpack.c.bf16 %v107_v23, %v99_v21  ;;  %v94_v26 = vld [vmem:[#allocation8 + $0x68] sm:$0xff]  ;;  %v88_v27 = vld [vmem:[#allocation8 + $0x38] sm:$0xff]  ;;  %v85_v31 = vld [vmem:[#allocation8 + $0x20] sm:$0xff]  ;;  %p6780_p7 = por %p6779_p6, %p6778_p5 }
  0x51   :  { %4413 = vmatprep.subr.bf16.mxu1 %v4412_v18  ;;  %v96_v28 = vld [vmem:[#allocation8 + $0x78] sm:$0xff]  ;;  %v4416_v29 = vpack.c.bf16 %v94_v26, %v86_v24  ;;  %v93_v32 = vld [vmem:[#allocation8 + $0x60] sm:$0xff]  ;;  %v87_v33 = vld [vmem:[#allocation8 + $0x30] sm:$0xff] }
  0x52   :  { %v4424_v30 = vpack.c.bf16 %v96_v28, %v88_v27  ;;  %v6918_v34 = vld [vmem:[#allocation5] sm:$0xff]  ;;  %v4418_v35 = vpack.c.bf16 %v93_v32, %v85_v31  ;;  %v102_v37 = vld [vmem:[#allocation8 + $0xa8] sm:$0xff]  ;;  %v104_v40 = vld [vmem:[#allocation8 + $0xb8] sm:$0xff]  ;;  %p6781_p8 = pnand %p6780_p7, %p6774_p4 }
  0x53   :  { %4407 = vmatpush1.bf16.msra.mxu0 %v4406_v22  ;;  %v95_v36 = vld [vmem:[#allocation8 + $0x70] sm:$0xff]  ;;  %v110_v39 = vld [vmem:[#allocation8 + $0xe8] sm:$0xff]  ;;  %v112_v41 = vld [vmem:[#allocation8 + $0xf8] sm:$0xff] }
  0x54   :  { %4415 = vmatpush1.bf16.msra.mxu1 %v4414_v25  ;;  %4417 = vmatprep.subr.bf16.mxu0 %v4416_v29  ;;  %v4426_v38 = vpack.c.bf16 %v95_v36, %v87_v33  ;;  %v4420_v42 = vpack.c.bf16 %v110_v39, %v102_v37  ;;  %v101_v43 = vld [vmem:[#allocation8 + $0xa0] sm:$0xff]  ;;  %v103_v45 = vld [vmem:[#allocation8 + $0xb0] sm:$0xff]  ;;  %v4428_v46 = vpack.c.bf16 %v112_v41, %v104_v40  ;;  %v663_v48 = vld [vmem:[#allocation10 + $0x8] sm:$0xff] }
  0x55   :  { %4425 = vmatprep.subr.bf16.mxu1 %v4424_v30  ;;  %v109_v44 = vld [vmem:[#allocation8 + $0xe0] sm:$0xff]  ;;  %v111_v47 = vld [vmem:[#allocation8 + $0xf0] sm:$0xff]  ;;  %v671_v49 = vld [vmem:[#allocation10 + $0x48] sm:$0xff] }
  0x56   :  { %4261 = vmatmul.mubr.msk.f32.vlgmr.msra.gmra.mrb[0].mxu0 %vm155_vm0, %v6918_v34  ;;  %v6924_v50 = vld [vmem:[#allocation5 + $0x8] sm:$0xff]  ;;  %v4422_v51 = vpack.c.bf16 %v109_v44, %v101_v43  ;;  %v4430_v54 = vpack.c.bf16 %v111_v47, %v103_v45  ;;  %v662_v55 = vld [vmem:[#allocation10] sm:$0xff]  ;;  %v664_v57 = vld [vmem:[#allocation10 + $0x10] sm:$0xff]  ;;  %v6928_v58 = vpack.c.bf16 %v671_v49, %v663_v48 }
  0x57   :  { %4263 = vmatmul.mubr.msk.f32.vlgmr.msra.gmra.mrb[0].mxu1 %vm155_vm0, %v6918_v34  ;;  %4419 = vmatpush1.bf16.msra.mxu0 %v4418_v35  ;;  %v665_v52 = vld [vmem:[#allocation10 + $0x18] sm:$0xff]  ;;  %v670_v56 = vld [vmem:[#allocation10 + $0x40] sm:$0xff]  ;;  %v672_v59 = vld [vmem:[#allocation10 + $0x50] sm:$0xff] }
  0x58   :  { %v673_v53 = vld [vmem:[#allocation10 + $0x58] sm:$0xff]  ;;  %4427 = vmatpush1.bf16.msra.mxu1 %v4426_v38  ;;  %232 = vmatprep.mubr.f32.mxu0 %v8515_v0  ;;  %8810 = vst [vmem:[#allocation18_spill] sm:$0xff] %v6928_v58  ;;  %v679_v60 = vld [vmem:[#allocation10 + $0x88] sm:$0xff]  ;;  %v6936_v2 = vpack.c.bf16 %v670_v56, %v662_v55  ;;  %v6939_v3 = vpack.c.bf16 %v672_v59, %v664_v57  ;;  %v678_v5 = vld [vmem:[#allocation10 + $0x80] sm:$0xff] }
  0x59   :  { %309 = vmatprep.mubr.f32.mxu1 %v8515_v0  ;;  %4421 = vmatprep.subr.bf16.mxu0 %v4420_v42  ;;  %v687_v61 = vld [vmem:[#allocation10 + $0xc8] sm:$0xff]  ;;  %v6932_v62 = vpack.c.bf16 %v673_v53, %v665_v52  ;;  %v681_v63 = vld [vmem:[#allocation10 + $0x98] sm:$0xff]  ;;  %v686_v6 = vld [vmem:[#allocation10 + $0xc0] sm:$0xff] }
  0x5a   :  { %4262 = vmatmul.mubr.msk.f32.gmra.mrb[2].mxu0 %vm155_vm0, %v6924_v50  ;;  %4429 = vmatprep.subr.bf16.mxu1 %v4428_v46  ;;  %v689_v1 = vld [vmem:[#allocation10 + $0xd8] sm:$0xff]  ;;  %8812 = vst [vmem:[#allocation20_spill] sm:$0xff] %v6936_v2  ;;  %8813 = vst [vmem:[#allocation21_spill] sm:$0xff] %v6939_v3  ;;  %v6941_v4 = vpack.c.bf16 %v687_v61, %v679_v60  ;;  %v680_v7 = vld [vmem:[#allocation10 + $0x90] sm:$0xff]  ;;  %v6953_v14 = vpack.c.bf16 %v686_v6, %v678_v5 }
  0x5b   :  { %8811 = vst [vmem:[#allocation19_spill] sm:$0xff] %v6932_v62  ;;  %4264 = vmatmul.mubr.msk.f32.gmra.mrb[2].mxu1 %vm155_vm0, %v6924_v50  ;;  %4423 = vmatpush1.bf16.msra.mxu0 %v4422_v51  ;;  %v6945_v8 = vpack.c.bf16 %v689_v1, %v681_v63  ;;  %v688_v9 = vld [vmem:[#allocation10 + $0xd0] sm:$0xff]  ;;  %v695_v10 = vld [vmem:[#allocation10 + $0x108] sm:$0xff]  ;;  %v697_v12 = vld [vmem:[#allocation10 + $0x118] sm:$0xff] }
  0x5c   :  { %4431 = vmatpush1.bf16.msra.mxu1 %v4430_v54  ;;  %380 = vmatprep.mubr.f32.mxu0 %v8515_v0  ;;  %8814 = vst [vmem:[#allocation22_spill] sm:$0xff] %v6941_v4  ;;  %v703_v11 = vld [vmem:[#allocation10 + $0x148] sm:$0xff]  ;;  %v705_v13 = vld [vmem:[#allocation10 + $0x158] sm:$0xff]  ;;  %8816 = vst [vmem:[#allocation24_spill] sm:$0xff] %v6953_v14  ;;  %v6957_v15 = vpack.c.bf16 %v688_v9, %v680_v7 }
  0x5d   :  { %457 = vmatprep.mubr.f32.mxu1 %v8515_v0  ;;  %4433 = vmatprep.subr.bf16.mxu0 %v6928_v58  ;;  %8815 = vst [vmem:[#allocation23_spill] sm:$0xff] %v6945_v8  ;;  %v6959_v16 = vpack.c.bf16 %v703_v11, %v695_v10  ;;  %v694_v17 = vld [vmem:[#allocation10 + $0x100] sm:$0xff]  ;;  %v696_v19 = vld [vmem:[#allocation10 + $0x110] sm:$0xff]  ;;  %v6962_v20 = vpack.c.bf16 %v705_v13, %v697_v12  ;;  %v711_v22 = vld [vmem:[#allocation10 + $0x188] sm:$0xff] }
  0x5e   :  { %4265 = vmatmul.mubr.msk.f32.vlgmr.msra.gmra.mrb[4].mxu0 %vm155_vm0, %v6918_v34  ;;  %4497 = vmatprep.subr.bf16.mxu1 %v6932_v62  ;;  %8817 = vst [vmem:[#allocation25_spill] sm:$0xff] %v6957_v15  ;;  %v702_v18 = vld [vmem:[#allocation10 + $0x140] sm:$0xff]  ;;  %v704_v21 = vld [vmem:[#allocation10 + $0x150] sm:$0xff]  ;;  %v719_v23 = vld [vmem:[#allocation10 + $0x1c8] sm:$0xff] }
  0x5f   :  { %4267 = vmatmul.mubr.msk.f32.vlgmr.msra.gmra.mrb[4].mxu1 %vm155_vm0, %v6918_v34  ;;  %4435 = vmatpush1.bf16.msra.mxu0 %v6936_v2  ;;  %8818 = vst [vmem:[#allocation26_spill] sm:$0xff] %v6959_v16  ;;  %8819 = vst [vmem:[#allocation27_spill] sm:$0xff] %v6962_v20  ;;  %v713_v24 = vld [vmem:[#allocation10 + $0x198] sm:$0xff]  ;;  %v6969_v26 = vpack.c.bf16 %v702_v18, %v694_v17  ;;  %v6975_v27 = vpack.c.bf16 %v704_v21, %v696_v19  ;;  %v710_v29 = vld [vmem:[#allocation10 + $0x180] sm:$0xff] }
  0x60   :  { %4499 = vmatpush1.bf16.msra.mxu1 %v6939_v3  ;;  %4437 = vmatprep.subr.bf16.mxu0 %v6941_v4  ;;  %v721_v25 = vld [vmem:[#allocation10 + $0x1d8] sm:$0xff]  ;;  %v6977_v28 = vpack.c.bf16 %v719_v23, %v711_v22  ;;  %v718_v30 = vld [vmem:[#allocation10 + $0x1c0] sm:$0xff]  ;;  %v712_v31 = vld [vmem:[#allocation10 + $0x190] sm:$0xff] }
  0x61   :  { %4501 = vmatprep.subr.bf16.mxu1 %v6945_v8  ;;  %386 = vmatprep.mubr.f32.mxu0 %v8515_v0  ;;  %8820 = vst [vmem:[#allocation28_spill] sm:$0xff] %v6969_v26  ;;  %8821 = vst [vmem:[#allocation29_spill] sm:$0xff] %v6975_v27  ;;  %v6980_v32 = vpack.c.bf16 %v721_v25, %v713_v24  ;;  %v720_v33 = vld [vmem:[#allocation10 + $0x1d0] sm:$0xff]  ;;  %v727_v34 = vld [vmem:[#allocation10 + $0x208] sm:$0xff]  ;;  %v6985_v38 = vpack.c.bf16 %v718_v30, %v710_v29 }
  0x62   :  { %463 = vmatprep.mubr.f32.mxu1 %v8515_v0  ;;  %4266 = vmatmul.mubr.msk.f32.gmra.mrb[6].mxu0 %vm155_vm0, %v6924_v50  ;;  %8822 = vst [vmem:[#allocation30_spill] sm:$0xff] %v6977_v28  ;;  %v735_v35 = vld [vmem:[#allocation10 + $0x248] sm:$0xff]  ;;  %v729_v36 = vld [vmem:[#allocation10 + $0x218] sm:$0xff]  ;;  %v6989_v39 = vpack.c.bf16 %v720_v33, %v712_v31  ;;  %v726_v41 = vld [vmem:[#allocation10 + $0x200] sm:$0xff] }
  0x63   :  { %4439 = vmatpush1.bf16.msra.mxu0 %v6953_v14  ;;  %4268 = vmatmul.mubr.msk.f32.gmra.mrb[6].mxu1 %vm155_vm0, %v6924_v50  ;;  %8823 = vst [vmem:[#allocation31_spill] sm:$0xff] %v6980_v32  ;;  %v737_v37 = vld [vmem:[#allocation10 + $0x258] sm:$0xff]  ;;  %8824 = vst [vmem:[#allocation32_spill] sm:$0xff] %v6985_v38  ;;  %v6991_v40 = vpack.c.bf16 %v735_v35, %v727_v34  ;;  %v734_v42 = vld [vmem:[#allocation10 + $0x240] sm:$0xff] }
  0x64   :  { %4503 = vmatpush1.bf16.msra.mxu1 %v6957_v15  ;;  %4441 = vmatprep.subr.bf16.mxu0 %v6959_v16  ;;  %8825 = vst [vmem:[#allocation33_spill] sm:$0xff] %v6989_v39  ;;  %v728_v43 = vld [vmem:[#allocation10 + $0x210] sm:$0xff]  ;;  %v6994_v44 = vpack.c.bf16 %v737_v37, %v729_v36  ;;  %v743_v46 = vld [vmem:[#allocation10 + $0x288] sm:$0xff]  ;;  %v745_v48 = vld [vmem:[#allocation10 + $0x298] sm:$0xff]  ;;  %v6997_v50 = vpack.c.bf16 %v734_v42, %v726_v41 }
  0x65   :  { %4505 = vmatprep.subr.bf16.mxu1 %v6962_v20  ;;  %984 = vmatprep.mubr.f32.mxu0 %v8515_v0  ;;  %8826 = vst [vmem:[#allocation34_spill] sm:$0xff] %v6991_v40  ;;  %v736_v45 = vld [vmem:[#allocation10 + $0x250] sm:$0xff]  ;;  %v751_v47 = vld [vmem:[#allocation10 + $0x2c8] sm:$0xff]  ;;  %v753_v49 = vld [vmem:[#allocation10 + $0x2d8] sm:$0xff] }
  0x66   :  { %1055 = vmatprep.mubr.f32.mxu1 %v8515_v0  ;;  %8827 = vst [vmem:[#allocation35_spill] sm:$0xff] %v6994_v44  ;;  %8828 = vst [vmem:[#allocation36_spill] sm:$0xff] %v6997_v50  ;;  %v7001_v51 = vpack.c.bf16 %v736_v45, %v728_v43  ;;  %v7003_v52 = vpack.c.bf16 %v751_v47, %v743_v46  ;;  %v742_v53 = vld [vmem:[#allocation10 + $0x280] sm:$0xff]  ;;  %v744_v55 = vld [vmem:[#allocation10 + $0x290] sm:$0xff]  ;;  %v7006_v56 = vpack.c.bf16 %v753_v49, %v745_v48 }
  0x67   :  { %4443 = vmatpush1.bf16.msra.mxu0 %v6969_v26  ;;  %v750_v54 = vld [vmem:[#allocation10 + $0x2c0] sm:$0xff]  ;;  %v752_v57 = vld [vmem:[#allocation10 + $0x2d0] sm:$0xff]  ;;  %v759_v59 = vld [vmem:[#allocation10 + $0x308] sm:$0xff] }
  0x68   :  { %4507 = vmatpush1.bf16.msra.mxu1 %v6975_v27  ;;  %4445 = vmatprep.subr.bf16.mxu0 %v6977_v28  ;;  %8829 = vst [vmem:[#allocation37_spill] sm:$0xff] %v7001_v51  ;;  %8830 = vst [vmem:[#allocation38_spill] sm:$0xff] %v7003_v52  ;;  %v767_v60 = vld [vmem:[#allocation10 + $0x348] sm:$0xff]  ;;  %v761_v61 = vld [vmem:[#allocation10 + $0x318] sm:$0xff]  ;;  %v7009_v1 = vpack.c.bf16 %v750_v54, %v742_v53  ;;  %v7013_v5 = vpack.c.bf16 %v752_v57, %v744_v55 }
  0x69   :  { %4509 = vmatprep.subr.bf16.mxu1 %v6980_v32  ;;  %8831 = vst [vmem:[#allocation39_spill] sm:$0xff] %v7006_v56  ;;  %v769_v63 = vld [vmem:[#allocation10 + $0x358] sm:$0xff]  ;;  %v7015_v6 = vpack.c.bf16 %v767_v60, %v759_v59  ;;  %v758_v7 = vld [vmem:[#allocation10 + $0x300] sm:$0xff]  ;;  %v760_v10 = vld [vmem:[#allocation10 + $0x310] sm:$0xff] }
  0x6a   :  { %8832 = vst [vmem:[#allocation40_spill] sm:$0xff] %v7009_v1  ;;  %8833 = vst [vmem:[#allocation41_spill] sm:$0xff] %v7013_v5  ;;  %v766_v9 = vld [vmem:[#allocation10 + $0x340] sm:$0xff]  ;;  %v7018_v11 = vpack.c.bf16 %v769_v63, %v761_v61  ;;  %v768_v12 = vld [vmem:[#allocation10 + $0x350] sm:$0xff] }
  0x6b   :  { %4447 = vmatpush1.bf16.msra.mxu0 %v6985_v38  ;;  %8834 = vst [vmem:[#allocation42_spill] sm:$0xff] %v7015_v6  ;;  %v775_v13 = vld [vmem:[#allocation10 + $0x388] sm:$0xff]  ;;  %v777_v18 = vld [vmem:[#allocation10 + $0x398] sm:$0xff]  ;;  %v7021_v21 = vpack.c.bf16 %v766_v9, %v758_v7  ;;  %v7025_v22 = vpack.c.bf16 %v768_v12, %v760_v10  ;;  %v774_v24 = vld [vmem:[#allocation10 + $0x380] sm:$0xff] }
  0x6c   :  { %4511 = vmatpush1.bf16.msra.mxu1 %v6989_v39  ;;  %4449 = vmatprep.subr.bf16.mxu0 %v6991_v40  ;;  %8835 = vst [vmem:[#allocation43_spill] sm:$0xff] %v7018_v11  ;;  %v783_v17 = vld [vmem:[#allocation10 + $0x3c8] sm:$0xff]  ;;  %v785_v19 = vld [vmem:[#allocation10 + $0x3d8] sm:$0xff]  ;;  %v782_v25 = vld [vmem:[#allocation10 + $0x3c0] sm:$0xff] }
  0x6d   :  { %4513 = vmatprep.subr.bf16.mxu1 %v6994_v44  ;;  %8836 = vst [vmem:[#allocation44_spill] sm:$0xff] %v7021_v21  ;;  %8837 = vst [vmem:[#allocation45_spill] sm:$0xff] %v7025_v22  ;;  %v7027_v23 = vpack.c.bf16 %v783_v17, %v775_v13  ;;  %v776_v29 = vld [vmem:[#allocation10 + $0x390] sm:$0xff]  ;;  %v7030_v30 = vpack.c.bf16 %v785_v19, %v777_v18  ;;  %v791_v33 = vld [vmem:[#allocation10 + $0x408] sm:$0xff]  ;;  %v7033_v37 = vpack.c.bf16 %v782_v25, %v774_v24 }
  0x6e   :  { %v784_v31 = vld [vmem:[#allocation10 + $0x3d0] sm:$0xff]  ;;  %v799_v34 = vld [vmem:[#allocation10 + $0x448] sm:$0xff]  ;;  %v793_v35 = vld [vmem:[#allocation10 + $0x418] sm:$0xff] }
  0x6f   :  { %4451 = vmatpush1.bf16.msra.mxu0 %v6997_v50  ;;  %8838 = vst [vmem:[#allocation46_spill] sm:$0xff] %v7027_v23  ;;  %8839 = vst [vmem:[#allocation47_spill] sm:$0xff] %v7030_v30  ;;  %v801_v36 = vld [vmem:[#allocation10 + $0x458] sm:$0xff]  ;;  %v7037_v41 = vpack.c.bf16 %v784_v31, %v776_v29  ;;  %v7039_v42 = vpack.c.bf16 %v799_v34, %v791_v33  ;;  %v790_v43 = vld [vmem:[#allocation10 + $0x400] sm:$0xff] }
  0x70   :  { %4515 = vmatpush1.bf16.msra.mxu1 %v7001_v51  ;;  %4453 = vmatprep.subr.bf16.mxu0 %v7003_v52  ;;  %8840 = vst [vmem:[#allocation48_spill] sm:$0xff] %v7033_v37  ;;  %v798_v45 = vld [vmem:[#allocation10 + $0x440] sm:$0xff]  ;;  %v792_v46 = vld [vmem:[#allocation10 + $0x410] sm:$0xff]  ;;  %v7042_v47 = vpack.c.bf16 %v801_v36, %v793_v35  ;;  %v807_v49 = vld [vmem:[#allocation10 + $0x488] sm:$0xff] }
  0x71   :  { %4517 = vmatprep.subr.bf16.mxu1 %v7006_v56  ;;  %8841 = vst [vmem:[#allocation49_spill] sm:$0xff] %v7037_v41  ;;  %8842 = vst [vmem:[#allocation50_spill] sm:$0xff] %v7039_v42  ;;  %v800_v48 = vld [vmem:[#allocation10 + $0x450] sm:$0xff]  ;;  %v815_v53 = vld [vmem:[#allocation10 + $0x4c8] sm:$0xff]  ;;  %v7045_v57 = vpack.c.bf16 %v798_v45, %v790_v43 }
  0x72   :  { %8843 = vst [vmem:[#allocation51_spill] sm:$0xff] %v7042_v47  ;;  %v809_v54 = vld [vmem:[#allocation10 + $0x498] sm:$0xff]  ;;  %v7049_v59 = vpack.c.bf16 %v800_v48, %v792_v46  ;;  %v7051_v60 = vpack.c.bf16 %v815_v53, %v807_v49  ;;  %v806_v61 = vld [vmem:[#allocation10 + $0x480] sm:$0xff]  ;;  %v808_v7 = vld [vmem:[#allocation10 + $0x490] sm:$0xff] }
  0x73   :  { %4455 = vmatpush1.bf16.msra.mxu0 %v7009_v1  ;;  %v817_v55 = vld [vmem:[#allocation10 + $0x4d8] sm:$0xff]  ;;  %8844 = vst [vmem:[#allocation52_spill] sm:$0xff] %v7045_v57  ;;  %v814_v63 = vld [vmem:[#allocation10 + $0x4c0] sm:$0xff]  ;;  %v816_v10 = vld [vmem:[#allocation10 + $0x4d0] sm:$0xff] }
  0x74   :  { %4519 = vmatpush1.bf16.msra.mxu1 %v7013_v5  ;;  %4457 = vmatprep.subr.bf16.mxu0 %v7015_v6  ;;  %8845 = vst [vmem:[#allocation53_spill] sm:$0xff] %v7049_v59  ;;  %8846 = vst [vmem:[#allocation54_spill] sm:$0xff] %v7051_v60  ;;  %v7054_v9 = vpack.c.bf16 %v817_v55, %v809_v54  ;;  %v823_v12 = vld [vmem:[#allocation10 + $0x508] sm:$0xff]  ;;  %v825_v17 = vld [vmem:[#allocation10 + $0x518] sm:$0xff]  ;;  %v7057_v19 = vpack.c.bf16 %v814_v63, %v806_v61 }
  0x75   :  { %4521 = vmatprep.subr.bf16.mxu1 %v7018_v11  ;;  %v831_v13 = vld [vmem:[#allocation10 + $0x548] sm:$0xff]  ;;  %v833_v18 = vld [vmem:[#allocation10 + $0x558] sm:$0xff]  ;;  %v7061_v24 = vpack.c.bf16 %v816_v10, %v808_v7  ;;  %v822_v29 = vld [vmem:[#allocation10 + $0x500] sm:$0xff] }
  0x76   :  { %8847 = vst [vmem:[#allocation55_spill] sm:$0xff] %v7054_v9  ;;  %8848 = vst [vmem:[#allocation56_spill] sm:$0xff] %v7057_v19  ;;  %v7063_v25 = vpack.c.bf16 %v831_v13, %v823_v12  ;;  %v830_v31 = vld [vmem:[#allocation10 + $0x540] sm:$0xff]  ;;  %v824_v33 = vld [vmem:[#allocation10 + $0x510] sm:$0xff]  ;;  %v7066_v34 = vpack.c.bf16 %v833_v18, %v825_v17 }
  0x77   :  { %4459 = vmatpush1.bf16.msra.mxu0 %v7021_v21  ;;  %8849 = vst [vmem:[#allocation57_spill] sm:$0xff] %v7061_v24  ;;  %v832_v35 = vld [vmem:[#allocation10 + $0x550] sm:$0xff]  ;;  %v839_v36 = vld [vmem:[#allocation10 + $0x588] sm:$0xff]  ;;  %v841_v45 = vld [vmem:[#allocation10 + $0x598] sm:$0xff]  ;;  %v7069_v48 = vpack.c.bf16 %v830_v31, %v822_v29 }
  0x78   :  { %4523 = vmatpush1.bf16.msra.mxu1 %v7025_v22  ;;  %4461 = vmatprep.subr.bf16.mxu0 %v7027_v23  ;;  %8850 = vst [vmem:[#allocation58_spill] sm:$0xff] %v7063_v25  ;;  %8851 = vst [vmem:[#allocation59_spill] sm:$0xff] %v7066_v34  ;;  %v847_v43 = vld [vmem:[#allocation10 + $0x5c8] sm:$0xff]  ;;  %v849_v46 = vld [vmem:[#allocation10 + $0x5d8] sm:$0xff]  ;;  %v7073_v49 = vpack.c.bf16 %v832_v35, %v824_v33 }
  0x79   :  { %4525 = vmatprep.subr.bf16.mxu1 %v7030_v30  ;;  %8852 = vst [vmem:[#allocation60_spill] sm:$0xff] %v7069_v48  ;;  %v7075_v53 = vpack.c.bf16 %v847_v43, %v839_v36  ;;  %v838_v54 = vld [vmem:[#allocation10 + $0x580] sm:$0xff]  ;;  %v840_v61 = vld [vmem:[#allocation10 + $0x590] sm:$0xff]  ;;  %v7078_v63 = vpack.c.bf16 %v849_v46, %v841_v45  ;;  %v855_v10 = vld [vmem:[#allocation10 + $0x608] sm:$0xff] }
  0x7a   :  { %8853 = vst [vmem:[#allocation61_spill] sm:$0xff] %v7073_v49  ;;  %v846_v55 = vld [vmem:[#allocation10 + $0x5c0] sm:$0xff]  ;;  %v848_v7 = vld [vmem:[#allocation10 + $0x5d0] sm:$0xff]  ;;  %v863_v12 = vld [vmem:[#allocation10 + $0x648] sm:$0xff] }
  0x7b   :  { %4463 = vmatpush1.bf16.msra.mxu0 %v7033_v37  ;;  %8854 = vst [vmem:[#allocation62_spill] sm:$0xff] %v7075_v53  ;;  %8855 = vst [vmem:[#allocation63_spill] sm:$0xff] %v7078_v63  ;;  %v857_v13 = vld [vmem:[#allocation10 + $0x618] sm:$0xff]  ;;  %v7081_v18 = vpack.c.bf16 %v846_v55, %v838_v54  ;;  %v7085_v29 = vpack.c.bf16 %v848_v7, %v840_v61  ;;  %v7087_v31 = vpack.c.bf16 %v863_v12, %v855_v10  ;;  %v854_v33 = vld [vmem:[#allocation10 + $0x600] sm:$0xff] }
  0x7c   :  { %4527 = vmatpush1.bf16.msra.mxu1 %v7037_v41  ;;  %4465 = vmatprep.subr.bf16.mxu0 %v7039_v42  ;;  %v865_v17 = vld [vmem:[#allocation10 + $0x658] sm:$0xff]  ;;  %v862_v35 = vld [vmem:[#allocation10 + $0x640] sm:$0xff]  ;;  %v856_v36 = vld [vmem:[#allocation10 + $0x610] sm:$0xff] }
  0x7d   :  { %4529 = vmatprep.subr.bf16.mxu1 %v7042_v47  ;;  %8856 = vst [vmem:[#allocation64_spill] sm:$0xff] %v7081_v18  ;;  %8857 = vst [vmem:[#allocation65_spill] sm:$0xff] %v7085_v29  ;;  %v7090_v43 = vpack.c.bf16 %v865_v17, %v857_v13  ;;  %v864_v45 = vld [vmem:[#allocation10 + $0x650] sm:$0xff]  ;;  %v871_v46 = vld [vmem:[#allocation10 + $0x688] sm:$0xff] }
  0x7e   :  { %8858 = vst [vmem:[#allocation66_spill] sm:$0xff] %v7087_v31  ;;  %v879_v0 = vld [vmem:[#allocation10 + $0x6c8] sm:$0xff]  ;;  %v873_v54 = vld [vmem:[#allocation10 + $0x698] sm:$0xff]  ;;  %v7097_v61 = vpack.c.bf16 %v864_v45, %v856_v36  ;;  %v870_v10 = vld [vmem:[#allocation10 + $0x680] sm:$0xff] }
  0x7f   :  { %4467 = vmatpush1.bf16.msra.mxu0 %v7045_v57  ;;  %8859 = vst [vmem:[#allocation67_spill] sm:$0xff] %v7090_v43  ;;  %v881_v55 = vld [vmem:[#allocation10 + $0x6d8] sm:$0xff]  ;;  %v7099_v7 = vpack.c.bf16 %v879_v0, %v871_v46  ;;  %v878_v12 = vld [vmem:[#allocation10 + $0x6c0] sm:$0xff]  ;;  %v872_v13 = vld [vmem:[#allocation10 + $0x690] sm:$0xff] }
  0x80   :  { %4531 = vmatpush1.bf16.msra.mxu1 %v7049_v59  ;;  %4469 = vmatprep.subr.bf16.mxu0 %v7051_v60  ;;  %8861 = vst [vmem:[#allocation69_spill] sm:$0xff] %v7097_v61  ;;  %v7102_v17 = vpack.c.bf16 %v881_v55, %v873_v54  ;;  %v886_v45 = vld [vmem:[#allocation10 + $0x700] sm:$0xff]  ;;  %v888_v54 = vld [vmem:[#allocation10 + $0x710] sm:$0xff] }
  0x81   :  { %4533 = vmatprep.subr.bf16.mxu1 %v7054_v9  ;;  %8862 = vst [vmem:[#allocation70_spill] sm:$0xff] %v7099_v7  ;;  %v894_v46 = vld [vmem:[#allocation10 + $0x740] sm:$0xff] }
  0x82   :  { %8863 = vst [vmem:[#allocation71_spill] sm:$0xff] %v7102_v17 }
  0x83   :  { %4471 = vmatpush1.bf16.msra.mxu0 %v7057_v19 }
  0x84   :  { %4535 = vmatpush1.bf16.msra.mxu1 %v7061_v24  ;;  %4473 = vmatprep.subr.bf16.mxu0 %v7063_v25 }
  0x85   :  { %4537 = vmatprep.subr.bf16.mxu1 %v7066_v34 }
  0x87   :  { %4475 = vmatpush1.bf16.msra.mxu0 %v7069_v48  ;;  %v715_v48 = vld [vmem:[#allocation10 + $0x1a8] sm:$0xff] }
  0x88   :  { %4539 = vmatpush1.bf16.msra.mxu1 %v7073_v49  ;;  %4477 = vmatprep.subr.bf16.mxu0 %v7075_v53  ;;  %v7093_v49 = vpack.c.bf16 %v862_v35, %v854_v33  ;;  %v887_v53 = vld [vmem:[#allocation10 + $0x708] sm:$0xff]  ;;  %v889_v33 = vld [vmem:[#allocation10 + $0x718] sm:$0xff] }
  0x89   :  { %4541 = vmatprep.subr.bf16.mxu1 %v7078_v63  ;;  %v880_v63 = vld [vmem:[#allocation10 + $0x6d0] sm:$0xff]  ;;  %v897_v35 = vld [vmem:[#allocation10 + $0x758] sm:$0xff] }
  0x8a   :  { %8860 = vst [vmem:[#allocation68_spill] sm:$0xff] %v7093_v49  ;;  %v7109_v0 = vpack.c.bf16 %v880_v63, %v872_v13  ;;  %v7114_v55 = vpack.c.bf16 %v897_v35, %v889_v33  ;;  %v910_v13 = vld [vmem:[#allocation10 + $0x7c0] sm:$0xff]  ;;  %v904_v33 = vld [vmem:[#allocation10 + $0x790] sm:$0xff] }
  0x8b   :  { %4479 = vmatpush1.bf16.msra.mxu0 %v7081_v18  ;;  %v895_v18 = vld [vmem:[#allocation10 + $0x748] sm:$0xff] }
  0x8c   :  { %4543 = vmatpush1.bf16.msra.mxu1 %v7085_v29  ;;  %4481 = vmatprep.subr.bf16.mxu0 %v7087_v31  ;;  %v7105_v29 = vpack.c.bf16 %v878_v12, %v870_v10  ;;  %8865 = vst [vmem:[#allocation73_spill] sm:$0xff] %v7109_v0  ;;  %v7111_v36 = vpack.c.bf16 %v895_v18, %v887_v53  ;;  %8867 = vst [vmem:[#allocation75_spill] sm:$0xff] %v7114_v55  ;;  %v903_v31 = vld [vmem:[#allocation10 + $0x788] sm:$0xff]  ;;  %v905_v10 = vld [vmem:[#allocation10 + $0x798] sm:$0xff] }
  0x8d   :  { %4545 = vmatprep.subr.bf16.mxu1 %v7090_v43  ;;  %v896_v43 = vld [vmem:[#allocation10 + $0x750] sm:$0xff]  ;;  %v913_v12 = vld [vmem:[#allocation10 + $0x7d8] sm:$0xff]  ;;  %v902_v18 = vld [vmem:[#allocation10 + $0x780] sm:$0xff] }
  0x8e   :  { %8864 = vst [vmem:[#allocation72_spill] sm:$0xff] %v7105_v29  ;;  %8866 = vst [vmem:[#allocation74_spill] sm:$0xff] %v7111_v36  ;;  %v7121_v53 = vpack.c.bf16 %v896_v43, %v888_v54  ;;  %v7126_v35 = vpack.c.bf16 %v913_v12, %v905_v10  ;;  %v666_v43 = vld [vmem:[#allocation10 + $0x20] sm:$0xff]  ;;  %v668_v10 = vld [vmem:[#allocation10 + $0x30] sm:$0xff] }
  0x8f   :  { %4483 = vmatpush1.bf16.msra.mxu0 %v7093_v49  ;;  %v911_v49 = vld [vmem:[#allocation10 + $0x7c8] sm:$0xff]  ;;  %v674_v54 = vld [vmem:[#allocation10 + $0x60] sm:$0xff] }
  0x90   :  { %4547 = vmatpush1.bf16.msra.mxu1 %v7097_v61  ;;  %4485 = vmatprep.subr.bf16.mxu0 %v7099_v7  ;;  %v7117_v61 = vpack.c.bf16 %v894_v46, %v886_v45  ;;  %8869 = vst [vmem:[#allocation77_spill] sm:$0xff] %v7121_v53  ;;  %v7123_v63 = vpack.c.bf16 %v911_v49, %v903_v31  ;;  %8871 = vst [vmem:[#allocation79_spill] sm:$0xff] %v7126_v35  ;;  %v667_v7 = vld [vmem:[#allocation10 + $0x28] sm:$0xff]  ;;  %v669_v45 = vld [vmem:[#allocation10 + $0x38] sm:$0xff] }
  0x91   :  { %4549 = vmatprep.subr.bf16.mxu1 %v7102_v17  ;;  %v912_v17 = vld [vmem:[#allocation10 + $0x7d0] sm:$0xff]  ;;  %v677_v46 = vld [vmem:[#allocation10 + $0x78] sm:$0xff] }
  0x92   :  { %8868 = vst [vmem:[#allocation76_spill] sm:$0xff] %v7117_v61  ;;  %8870 = vst [vmem:[#allocation78_spill] sm:$0xff] %v7123_v63  ;;  %v7133_v49 = vpack.c.bf16 %v912_v17, %v904_v33  ;;  %v7138_v12 = vpack.c.bf16 %v677_v46, %v669_v45  ;;  %v682_v17 = vld [vmem:[#allocation10 + $0xa0] sm:$0xff]  ;;  %v684_v45 = vld [vmem:[#allocation10 + $0xb0] sm:$0xff] }
  0x93   :  { %4487 = vmatpush1.bf16.msra.mxu0 %v7105_v29  ;;  %v675_v29 = vld [vmem:[#allocation10 + $0x68] sm:$0xff]  ;;  %v690_v33 = vld [vmem:[#allocation10 + $0xe0] sm:$0xff] }
  0x94   :  { %4551 = vmatpush1.bf16.msra.mxu1 %v7109_v0  ;;  %4489 = vmatprep.subr.bf16.mxu0 %v7111_v36  ;;  %v7129_v0 = vpack.c.bf16 %v910_v13, %v902_v18  ;;  %8873 = vst [vmem:[#allocation81_spill] sm:$0xff] %v7133_v49  ;;  %v7135_v31 = vpack.c.bf16 %v675_v29, %v667_v7  ;;  %8875 = vst [vmem:[#allocation83_spill] sm:$0xff] %v7138_v12  ;;  %v683_v36 = vld [vmem:[#allocation10 + $0xa8] sm:$0xff]  ;;  %v685_v18 = vld [vmem:[#allocation10 + $0xb8] sm:$0xff] }
  0x95   :  { %4553 = vmatprep.subr.bf16.mxu1 %v7114_v55  ;;  %v676_v55 = vld [vmem:[#allocation10 + $0x70] sm:$0xff]  ;;  %v693_v13 = vld [vmem:[#allocation10 + $0xf8] sm:$0xff] }
  0x96   :  { %8872 = vst [vmem:[#allocation80_spill] sm:$0xff] %v7129_v0  ;;  %8874 = vst [vmem:[#allocation82_spill] sm:$0xff] %v7135_v31  ;;  %v7145_v29 = vpack.c.bf16 %v676_v55, %v668_v10  ;;  %v7150_v46 = vpack.c.bf16 %v693_v13, %v685_v18  ;;  %v698_v10 = vld [vmem:[#allocation10 + $0x120] sm:$0xff]  ;;  %v700_v13 = vld [vmem:[#allocation10 + $0x130] sm:$0xff] }
  0x97   :  { %4491 = vmatpush1.bf16.msra.mxu0 %v7117_v61  ;;  %v691_v61 = vld [vmem:[#allocation10 + $0xe8] sm:$0xff]  ;;  %v706_v18 = vld [vmem:[#allocation10 + $0x160] sm:$0xff] }
  0x98   :  { %4555 = vmatpush1.bf16.msra.mxu1 %v7121_v53  ;;  %4493 = vmatprep.subr.bf16.mxu0 %v7123_v63  ;;  %v7141_v53 = vpack.c.bf16 %v674_v54, %v666_v43  ;;  %8877 = vst [vmem:[#allocation85_spill] sm:$0xff] %v7145_v29  ;;  %v7147_v7 = vpack.c.bf16 %v691_v61, %v683_v36  ;;  %8879 = vst [vmem:[#allocation87_spill] sm:$0xff] %v7150_v46  ;;  %v699_v63 = vld [vmem:[#allocation10 + $0x128] sm:$0xff]  ;;  %v8880_v43 = vmov 0.0   ;;  %v701_v54 = vld [vmem:[#allocation10 + $0x138] sm:$0xff] }
  0x99   :  { %4557 = vmatprep.subr.bf16.mxu1 %v7126_v35  ;;  %v692_v35 = vld [vmem:[#allocation10 + $0xf0] sm:$0xff]  ;;  %v7155_v61 = vpack.c.bf16 %v690_v33, %v682_v17  ;;  %v717_v17 = vld [vmem:[#allocation10 + $0x1b8] sm:$0xff] }
  0x9a   :  { %8876 = vst [vmem:[#allocation84_spill] sm:$0xff] %v7141_v53  ;;  %8878 = vst [vmem:[#allocation86_spill] sm:$0xff] %v7147_v7  ;;  %v7159_v36 = vpack.c.bf16 %v692_v35, %v684_v45  ;;  %v725_v33 = vld [vmem:[#allocation10 + $0x1f8] sm:$0xff]  ;;  %v722_v45 = vld [vmem:[#allocation10 + $0x1e0] sm:$0xff] }
  0x9b   :  { %4495 = vmatpush1.bf16.msra.mxu0 %v7129_v0  ;;  %v707_v0 = vld [vmem:[#allocation10 + $0x168] sm:$0xff]  ;;  %8881 = vst [vmem:[#allocation88_spill] sm:$0xff] %v7155_v61 }
  0x9c   :  { %4559 = vmatpush1.bf16.msra.mxu1 %v7133_v49  ;;  %4561 = vmatprep.subr.bf16.mxu0 %v7135_v31  ;;  %v709_v49 = vld [vmem:[#allocation10 + $0x178] sm:$0xff]  ;;  %8882 = vst [vmem:[#allocation89_spill] sm:$0xff] %v7159_v36  ;;  %v7161_v55 = vpack.c.bf16 %v707_v0, %v699_v63  ;;  %v708_v31 = vld [vmem:[#allocation10 + $0x170] sm:$0xff]  ;;  %v7169_v0 = vpack.c.bf16 %v706_v18, %v698_v10 }
  0x9d   :  { %4625 = vmatprep.subr.bf16.mxu1 %v7138_v12  ;;  %v7164_v12 = vpack.c.bf16 %v709_v49, %v701_v54  ;;  %v7173_v63 = vpack.c.bf16 %v708_v31, %v700_v13  ;;  %v714_v49 = vld [vmem:[#allocation10 + $0x1a0] sm:$0xff]  ;;  %v716_v54 = vld [vmem:[#allocation10 + $0x1b0] sm:$0xff]  ;;  %v733_v10 = vld [vmem:[#allocation10 + $0x238] sm:$0xff] }
  0x9e   :  { %985 = vmatmul.mubr.f32.vlgmr.msra.gmra.mrb[8].mxu0 %v8880_v43  ;;  %8883 = vst [vmem:[#allocation90_spill] sm:$0xff] %v7161_v55  ;;  %8885 = vst [vmem:[#allocation92_spill] sm:$0xff] %v7169_v0  ;;  %v741_v18 = vld [vmem:[#allocation10 + $0x278] sm:$0xff]  ;;  %v730_v31 = vld [vmem:[#allocation10 + $0x220] sm:$0xff] }
  0x9f   :  { %1056 = vmatmul.mubr.f32.vlgmr.msra.gmra.mrb[8].mxu1 %v8880_v43  ;;  %4563 = vmatpush1.bf16.msra.mxu0 %v7141_v53  ;;  %8884 = vst [vmem:[#allocation91_spill] sm:$0xff] %v7164_v12  ;;  %v723_v53 = vld [vmem:[#allocation10 + $0x1e8] sm:$0xff]  ;;  %8886 = vst [vmem:[#allocation93_spill] sm:$0xff] %v7173_v63  ;;  %v738_v13 = vld [vmem:[#allocation10 + $0x260] sm:$0xff] }
  0xa0   :  { %4627 = vmatpush1.bf16.msra.mxu1 %v7145_v29  ;;  %4565 = vmatprep.subr.bf16.mxu0 %v7147_v7  ;;  %v7175_v35 = vpack.c.bf16 %v723_v53, %v715_v48  ;;  %v724_v7 = vld [vmem:[#allocation10 + $0x1f0] sm:$0xff]  ;;  %v731_v29 = vld [vmem:[#allocation10 + $0x228] sm:$0xff] }
  0xa1   :  { %4629 = vmatprep.subr.bf16.mxu1 %v7150_v46  ;;  %1126 = vmatprep.mubr.f32.mxu0 %v8880_v43  ;;  %v7178_v46 = vpack.c.bf16 %v725_v33, %v717_v17  ;;  %v7185_v48 = vpack.c.bf16 %v724_v7, %v716_v54  ;;  %v732_v17 = vld [vmem:[#allocation10 + $0x230] sm:$0xff]  ;;  %v7190_v33 = vpack.c.bf16 %v741_v18, %v733_v10  ;;  %v754_v54 = vld [vmem:[#allocation10 + $0x2e0] sm:$0xff] }
  0xa2   :  { %1197 = vmatprep.mubr.f32.mxu1 %v8880_v43  ;;  %8887 = vst [vmem:[#allocation94_spill] sm:$0xff] %v7175_v35  ;;  %v748_v10 = vld [vmem:[#allocation10 + $0x2b0] sm:$0xff] }
  0xa3   :  { %4567 = vmatpush1.bf16.msra.mxu0 %v7155_v61  ;;  %8888 = vst [vmem:[#allocation95_spill] sm:$0xff] %v7178_v46  ;;  %v739_v61 = vld [vmem:[#allocation10 + $0x268] sm:$0xff]  ;;  %8890 = vst [vmem:[#allocation97_spill] sm:$0xff] %v7185_v48 }
  0xa4   :  { %4631 = vmatpush1.bf16.msra.mxu1 %v7159_v36  ;;  %4569 = vmatprep.subr.bf16.mxu0 %v7161_v55  ;;  %v7181_v36 = vpack.c.bf16 %v722_v45, %v714_v49  ;;  %v7187_v53 = vpack.c.bf16 %v739_v61, %v731_v29  ;;  %8892 = vst [vmem:[#allocation99_spill] sm:$0xff] %v7190_v33  ;;  %v747_v55 = vld [vmem:[#allocation10 + $0x2a8] sm:$0xff]  ;;  %v749_v49 = vld [vmem:[#allocation10 + $0x2b8] sm:$0xff]  ;;  %v746_v61 = vld [vmem:[#allocation10 + $0x2a0] sm:$0xff] }
  0xa5   :  { %4633 = vmatprep.subr.bf16.mxu1 %v7164_v12  ;;  %v740_v12 = vld [vmem:[#allocation10 + $0x270] sm:$0xff]  ;;  %v757_v45 = vld [vmem:[#allocation10 + $0x2f8] sm:$0xff] }
  0xa6   :  { %8889 = vst [vmem:[#allocation96_spill] sm:$0xff] %v7181_v36  ;;  %8891 = vst [vmem:[#allocation98_spill] sm:$0xff] %v7187_v53  ;;  %v7197_v29 = vpack.c.bf16 %v740_v12, %v732_v17  ;;  %v7202_v18 = vpack.c.bf16 %v757_v45, %v749_v49  ;;  %v770_v17 = vld [vmem:[#allocation10 + $0x360] sm:$0xff]  ;;  %v764_v49 = vld [vmem:[#allocation10 + $0x330] sm:$0xff] }
  0xa7   :  { %4571 = vmatpush1.bf16.msra.mxu0 %v7169_v0  ;;  %v755_v0 = vld [vmem:[#allocation10 + $0x2e8] sm:$0xff] }
  0xa8   :  { %4635 = vmatpush1.bf16.msra.mxu1 %v7173_v63  ;;  %4573 = vmatprep.subr.bf16.mxu0 %v7175_v35  ;;  %v7193_v63 = vpack.c.bf16 %v738_v13, %v730_v31  ;;  %8894 = vst [vmem:[#allocation101_spill] sm:$0xff] %v7197_v29  ;;  %v7199_v7 = vpack.c.bf16 %v755_v0, %v747_v55  ;;  %8896 = vst [vmem:[#allocation103_spill] sm:$0xff] %v7202_v18  ;;  %v763_v35 = vld [vmem:[#allocation10 + $0x328] sm:$0xff]  ;;  %v765_v31 = vld [vmem:[#allocation10 + $0x338] sm:$0xff] }
  0xa9   :  { %4637 = vmatprep.subr.bf16.mxu1 %v7178_v46  ;;  %v756_v46 = vld [vmem:[#allocation10 + $0x2f0] sm:$0xff]  ;;  %v773_v13 = vld [vmem:[#allocation10 + $0x378] sm:$0xff]  ;;  %v762_v0 = vld [vmem:[#allocation10 + $0x320] sm:$0xff] }
  0xaa   :  { %8893 = vst [vmem:[#allocation100_spill] sm:$0xff] %v7193_v63  ;;  %8895 = vst [vmem:[#allocation102_spill] sm:$0xff] %v7199_v7  ;;  %v7209_v12 = vpack.c.bf16 %v756_v46, %v748_v10  ;;  %v7214_v45 = vpack.c.bf16 %v773_v13, %v765_v31  ;;  %v786_v10 = vld [vmem:[#allocation10 + $0x3e0] sm:$0xff]  ;;  %v780_v31 = vld [vmem:[#allocation10 + $0x3b0] sm:$0xff] }
  0xab   :  { %4575 = vmatpush1.bf16.msra.mxu0 %v7181_v36  ;;  %v771_v36 = vld [vmem:[#allocation10 + $0x368] sm:$0xff] }
  0xac   :  { %4639 = vmatpush1.bf16.msra.mxu1 %v7185_v48  ;;  %4577 = vmatprep.subr.bf16.mxu0 %v7187_v53  ;;  %v7205_v48 = vpack.c.bf16 %v754_v54, %v746_v61  ;;  %8898 = vst [vmem:[#allocation105_spill] sm:$0xff] %v7209_v12  ;;  %v7211_v55 = vpack.c.bf16 %v771_v36, %v763_v35  ;;  %8900 = vst [vmem:[#allocation107_spill] sm:$0xff] %v7214_v45  ;;  %v779_v53 = vld [vmem:[#allocation10 + $0x3a8] sm:$0xff]  ;;  %v781_v61 = vld [vmem:[#allocation10 + $0x3b8] sm:$0xff] }
  0xad   :  { %4641 = vmatprep.subr.bf16.mxu1 %v7190_v33  ;;  %v772_v33 = vld [vmem:[#allocation10 + $0x370] sm:$0xff]  ;;  %v789_v54 = vld [vmem:[#allocation10 + $0x3f8] sm:$0xff]  ;;  %v778_v35 = vld [vmem:[#allocation10 + $0x3a0] sm:$0xff] }
  0xae   :  { %8897 = vst [vmem:[#allocation104_spill] sm:$0xff] %v7205_v48  ;;  %8899 = vst [vmem:[#allocation106_spill] sm:$0xff] %v7211_v55  ;;  %v7221_v46 = vpack.c.bf16 %v772_v33, %v764_v49  ;;  %v7226_v13 = vpack.c.bf16 %v789_v54, %v781_v61  ;;  %v794_v33 = vld [vmem:[#allocation10 + $0x420] sm:$0xff]  ;;  %v796_v61 = vld [vmem:[#allocation10 + $0x430] sm:$0xff] }
  0xaf   :  { %4579 = vmatpush1.bf16.msra.mxu0 %v7193_v63  ;;  %v787_v63 = vld [vmem:[#allocation10 + $0x3e8] sm:$0xff]  ;;  %v802_v49 = vld [vmem:[#allocation10 + $0x460] sm:$0xff] }
  0xb0   :  { %4643 = vmatpush1.bf16.msra.mxu1 %v7197_v29  ;;  %4581 = vmatprep.subr.bf16.mxu0 %v7199_v7  ;;  %v7217_v29 = vpack.c.bf16 %v770_v17, %v762_v0  ;;  %8902 = vst [vmem:[#allocation109_spill] sm:$0xff] %v7221_v46  ;;  %v7223_v36 = vpack.c.bf16 %v787_v63, %v779_v53  ;;  %8904 = vst [vmem:[#allocation111_spill] sm:$0xff] %v7226_v13  ;;  %v795_v7 = vld [vmem:[#allocation10 + $0x428] sm:$0xff]  ;;  %v797_v0 = vld [vmem:[#allocation10 + $0x438] sm:$0xff] }
  0xb1   :  { %4645 = vmatprep.subr.bf16.mxu1 %v7202_v18  ;;  %v788_v18 = vld [vmem:[#allocation10 + $0x3f0] sm:$0xff]  ;;  %v805_v17 = vld [vmem:[#allocation10 + $0x478] sm:$0xff] }
  0xb2   :  { %8901 = vst [vmem:[#allocation108_spill] sm:$0xff] %v7217_v29  ;;  %8903 = vst [vmem:[#allocation110_spill] sm:$0xff] %v7223_v36  ;;  %v7233_v63 = vpack.c.bf16 %v788_v18, %v780_v31  ;;  %v7238_v54 = vpack.c.bf16 %v805_v17, %v797_v0  ;;  %v810_v18 = vld [vmem:[#allocation10 + $0x4a0] sm:$0xff]  ;;  %v812_v0 = vld [vmem:[#allocation10 + $0x4b0] sm:$0xff] }
  0xb3   :  { %4583 = vmatpush1.bf16.msra.mxu0 %v7205_v48  ;;  %v803_v48 = vld [vmem:[#allocation10 + $0x468] sm:$0xff]  ;;  %v818_v31 = vld [vmem:[#allocation10 + $0x4e0] sm:$0xff] }
  0xb4   :  { %4647 = vmatpush1.bf16.msra.mxu1 %v7209_v12  ;;  %4585 = vmatprep.subr.bf16.mxu0 %v7211_v55  ;;  %v7229_v12 = vpack.c.bf16 %v786_v10, %v778_v35  ;;  %8906 = vst [vmem:[#allocation113_spill] sm:$0xff] %v7233_v63  ;;  %v7235_v53 = vpack.c.bf16 %v803_v48, %v795_v7  ;;  %8908 = vst [vmem:[#allocation115_spill] sm:$0xff] %v7238_v54  ;;  %v811_v55 = vld [vmem:[#allocation10 + $0x4a8] sm:$0xff]  ;;  %v813_v35 = vld [vmem:[#allocation10 + $0x4b8] sm:$0xff] }
  0xb5   :  { %4649 = vmatprep.subr.bf16.mxu1 %v7214_v45  ;;  %v804_v45 = vld [vmem:[#allocation10 + $0x470] sm:$0xff]  ;;  %v821_v10 = vld [vmem:[#allocation10 + $0x4f8] sm:$0xff] }
  0xb6   :  { %8905 = vst [vmem:[#allocation112_spill] sm:$0xff] %v7229_v12  ;;  %8907 = vst [vmem:[#allocation114_spill] sm:$0xff] %v7235_v53  ;;  %v7245_v48 = vpack.c.bf16 %v804_v45, %v796_v61  ;;  %v7250_v17 = vpack.c.bf16 %v821_v10, %v813_v35  ;;  %v826_v45 = vld [vmem:[#allocation10 + $0x520] sm:$0xff]  ;;  %v828_v35 = vld [vmem:[#allocation10 + $0x530] sm:$0xff] }
  0xb7   :  { %4587 = vmatpush1.bf16.msra.mxu0 %v7217_v29  ;;  %v819_v29 = vld [vmem:[#allocation10 + $0x4e8] sm:$0xff]  ;;  %v834_v61 = vld [vmem:[#allocation10 + $0x560] sm:$0xff] }
  0xb8   :  { %4651 = vmatpush1.bf16.msra.mxu1 %v7221_v46  ;;  %4589 = vmatprep.subr.bf16.mxu0 %v7223_v36  ;;  %v7241_v46 = vpack.c.bf16 %v802_v49, %v794_v33  ;;  %8910 = vst [vmem:[#allocation117_spill] sm:$0xff] %v7245_v48  ;;  %v7247_v7 = vpack.c.bf16 %v819_v29, %v811_v55  ;;  %8912 = vst [vmem:[#allocation119_spill] sm:$0xff] %v7250_v17  ;;  %v827_v36 = vld [vmem:[#allocation10 + $0x528] sm:$0xff]  ;;  %v829_v33 = vld [vmem:[#allocation10 + $0x538] sm:$0xff] }
  0xb9   :  { %4653 = vmatprep.subr.bf16.mxu1 %v7226_v13  ;;  %v820_v13 = vld [vmem:[#allocation10 + $0x4f0] sm:$0xff]  ;;  %v837_v49 = vld [vmem:[#allocation10 + $0x578] sm:$0xff] }
  0xba   :  { %8909 = vst [vmem:[#allocation116_spill] sm:$0xff] %v7241_v46  ;;  %8911 = vst [vmem:[#allocation118_spill] sm:$0xff] %v7247_v7  ;;  %v7257_v29 = vpack.c.bf16 %v820_v13, %v812_v0  ;;  %v7262_v10 = vpack.c.bf16 %v837_v49, %v829_v33  ;;  %v842_v13 = vld [vmem:[#allocation10 + $0x5a0] sm:$0xff]  ;;  %v844_v33 = vld [vmem:[#allocation10 + $0x5b0] sm:$0xff] }
  0xbb   :  { %4591 = vmatpush1.bf16.msra.mxu0 %v7229_v12  ;;  %v835_v12 = vld [vmem:[#allocation10 + $0x568] sm:$0xff]  ;;  %v850_v0 = vld [vmem:[#allocation10 + $0x5e0] sm:$0xff] }
  0xbc   :  { %4655 = vmatpush1.bf16.msra.mxu1 %v7233_v63  ;;  %4593 = vmatprep.subr.bf16.mxu0 %v7235_v53  ;;  %v7253_v63 = vpack.c.bf16 %v818_v31, %v810_v18  ;;  %8914 = vst [vmem:[#allocation121_spill] sm:$0xff] %v7257_v29  ;;  %v7259_v55 = vpack.c.bf16 %v835_v12, %v827_v36  ;;  %8916 = vst [vmem:[#allocation123_spill] sm:$0xff] %v7262_v10  ;;  %v843_v53 = vld [vmem:[#allocation10 + $0x5a8] sm:$0xff]  ;;  %v845_v18 = vld [vmem:[#allocation10 + $0x5b8] sm:$0xff] }
  0xbd   :  { %4657 = vmatprep.subr.bf16.mxu1 %v7238_v54  ;;  %v836_v54 = vld [vmem:[#allocation10 + $0x570] sm:$0xff]  ;;  %v853_v31 = vld [vmem:[#allocation10 + $0x5f8] sm:$0xff] }
  0xbe   :  { %8913 = vst [vmem:[#allocation120_spill] sm:$0xff] %v7253_v63  ;;  %8915 = vst [vmem:[#allocation122_spill] sm:$0xff] %v7259_v55  ;;  %v7269_v12 = vpack.c.bf16 %v836_v54, %v828_v35  ;;  %v7274_v49 = vpack.c.bf16 %v853_v31, %v845_v18  ;;  %v858_v54 = vld [vmem:[#allocation10 + $0x620] sm:$0xff]  ;;  %v860_v18 = vld [vmem:[#allocation10 + $0x630] sm:$0xff] }
  0xbf   :  { %4595 = vmatpush1.bf16.msra.mxu0 %v7241_v46  ;;  %v851_v46 = vld [vmem:[#allocation10 + $0x5e8] sm:$0xff]  ;;  %v866_v35 = vld [vmem:[#allocation10 + $0x660] sm:$0xff] }
  0xc0   :  { %4659 = vmatpush1.bf16.msra.mxu1 %v7245_v48  ;;  %4597 = vmatprep.subr.bf16.mxu0 %v7247_v7  ;;  %v7265_v48 = vpack.c.bf16 %v834_v61, %v826_v45  ;;  %8918 = vst [vmem:[#allocation125_spill] sm:$0xff] %v7269_v12  ;;  %v7271_v36 = vpack.c.bf16 %v851_v46, %v843_v53  ;;  %8920 = vst [vmem:[#allocation127_spill] sm:$0xff] %v7274_v49  ;;  %v859_v7 = vld [vmem:[#allocation10 + $0x628] sm:$0xff]  ;;  %v861_v45 = vld [vmem:[#allocation10 + $0x638] sm:$0xff] }
  0xc1   :  { %4661 = vmatprep.subr.bf16.mxu1 %v7250_v17  ;;  %v852_v17 = vld [vmem:[#allocation10 + $0x5f0] sm:$0xff]  ;;  %v869_v61 = vld [vmem:[#allocation10 + $0x678] sm:$0xff] }
  0xc2   :  { %8917 = vst [vmem:[#allocation124_spill] sm:$0xff] %v7265_v48  ;;  %8919 = vst [vmem:[#allocation126_spill] sm:$0xff] %v7271_v36  ;;  %v7281_v46 = vpack.c.bf16 %v852_v17, %v844_v33  ;;  %v7286_v31 = vpack.c.bf16 %v869_v61, %v861_v45  ;;  %v874_v17 = vld [vmem:[#allocation10 + $0x6a0] sm:$0xff]  ;;  %v876_v45 = vld [vmem:[#allocation10 + $0x6b0] sm:$0xff] }
  0xc3   :  { %4599 = vmatpush1.bf16.msra.mxu0 %v7253_v63  ;;  %v867_v63 = vld [vmem:[#allocation10 + $0x668] sm:$0xff]  ;;  %v882_v33 = vld [vmem:[#allocation10 + $0x6e0] sm:$0xff] }
  0xc4   :  { %4663 = vmatpush1.bf16.msra.mxu1 %v7257_v29  ;;  %4601 = vmatprep.subr.bf16.mxu0 %v7259_v55  ;;  %v7277_v29 = vpack.c.bf16 %v850_v0, %v842_v13  ;;  %8922 = vst [vmem:[#allocation129_spill] sm:$0xff] %v7281_v46  ;;  %v7283_v53 = vpack.c.bf16 %v867_v63, %v859_v7  ;;  %8924 = vst [vmem:[#allocation131_spill] sm:$0xff] %v7286_v31  ;;  %v875_v55 = vld [vmem:[#allocation10 + $0x6a8] sm:$0xff]  ;;  %v877_v13 = vld [vmem:[#allocation10 + $0x6b8] sm:$0xff] }
  0xc5   :  { %4665 = vmatprep.subr.bf16.mxu1 %v7262_v10  ;;  %v868_v10 = vld [vmem:[#allocation10 + $0x670] sm:$0xff]  ;;  %v885_v0 = vld [vmem:[#allocation10 + $0x6f8] sm:$0xff] }
  0xc6   :  { %8921 = vst [vmem:[#allocation128_spill] sm:$0xff] %v7277_v29  ;;  %8923 = vst [vmem:[#allocation130_spill] sm:$0xff] %v7283_v53  ;;  %v7293_v63 = vpack.c.bf16 %v868_v10, %v860_v18  ;;  %v7298_v61 = vpack.c.bf16 %v885_v0, %v877_v13  ;;  %v890_v10 = vld [vmem:[#allocation10 + $0x720] sm:$0xff]  ;;  %v892_v13 = vld [vmem:[#allocation10 + $0x730] sm:$0xff] }
  0xc7   :  { %4603 = vmatpush1.bf16.msra.mxu0 %v7265_v48  ;;  %v883_v48 = vld [vmem:[#allocation10 + $0x6e8] sm:$0xff]  ;;  %v898_v18 = vld [vmem:[#allocation10 + $0x760] sm:$0xff] }
  0xc8   :  { %4667 = vmatpush1.bf16.msra.mxu1 %v7269_v12  ;;  %4605 = vmatprep.subr.bf16.mxu0 %v7271_v36  ;;  %v7289_v12 = vpack.c.bf16 %v866_v35, %v858_v54  ;;  %8926 = vst [vmem:[#allocation133_spill] sm:$0xff] %v7293_v63  ;;  %v7295_v7 = vpack.c.bf16 %v883_v48, %v875_v55  ;;  %8928 = vst [vmem:[#allocation135_spill] sm:$0xff] %v7298_v61  ;;  %v891_v36 = vld [vmem:[#allocation10 + $0x728] sm:$0xff]  ;;  %v893_v54 = vld [vmem:[#allocation10 + $0x738] sm:$0xff] }
  0xc9   :  { %4669 = vmatprep.subr.bf16.mxu1 %v7274_v49  ;;  %v884_v49 = vld [vmem:[#allocation10 + $0x6f0] sm:$0xff]  ;;  %v901_v35 = vld [vmem:[#allocation10 + $0x778] sm:$0xff] }
  0xca   :  { %8925 = vst [vmem:[#allocation132_spill] sm:$0xff] %v7289_v12  ;;  %8927 = vst [vmem:[#allocation134_spill] sm:$0xff] %v7295_v7  ;;  %v7305_v48 = vpack.c.bf16 %v884_v49, %v876_v45  ;;  %v7310_v0 = vpack.c.bf16 %v901_v35, %v893_v54  ;;  %v906_v49 = vld [vmem:[#allocation10 + $0x7a0] sm:$0xff]  ;;  %v908_v35 = vld [vmem:[#allocation10 + $0x7b0] sm:$0xff] }
  0xcb   :  { %4607 = vmatpush1.bf16.msra.mxu0 %v7277_v29  ;;  %v899_v29 = vld [vmem:[#allocation10 + $0x768] sm:$0xff]  ;;  %v914_v45 = vld [vmem:[#allocation10 + $0x7e0] sm:$0xff] }
  0xcc   :  { %4671 = vmatpush1.bf16.msra.mxu1 %v7281_v46  ;;  %4609 = vmatprep.subr.bf16.mxu0 %v7283_v53  ;;  %v7301_v46 = vpack.c.bf16 %v882_v33, %v874_v17  ;;  %8930 = vst [vmem:[#allocation137_spill] sm:$0xff] %v7305_v48  ;;  %v7307_v55 = vpack.c.bf16 %v899_v29, %v891_v36  ;;  %8932 = vst [vmem:[#allocation139_spill] sm:$0xff] %v7310_v0  ;;  %v907_v53 = vld [vmem:[#allocation10 + $0x7a8] sm:$0xff]  ;;  %v909_v17 = vld [vmem:[#allocation10 + $0x7b8] sm:$0xff] }
  0xcd   :  { %4673 = vmatprep.subr.bf16.mxu1 %v7286_v31  ;;  %v900_v31 = vld [vmem:[#allocation10 + $0x770] sm:$0xff]  ;;  %v917_v33 = vld [vmem:[#allocation10 + $0x7f8] sm:$0xff] }
  0xce   :  { %8929 = vst [vmem:[#allocation136_spill] sm:$0xff] %v7301_v46  ;;  %8931 = vst [vmem:[#allocation138_spill] sm:$0xff] %v7307_v55  ;;  %v7317_v29 = vpack.c.bf16 %v900_v31, %v892_v13  ;;  %v7322_v54 = vpack.c.bf16 %v917_v33, %v909_v17  ;;  %v8944_v13 = vld [vmem:[#allocation65_spill] sm:$0xff]  ;;  %v8945_v17 = vld [vmem:[#allocation66_spill] sm:$0xff] }
  0xcf   :  { %4611 = vmatpush1.bf16.msra.mxu0 %v7289_v12  ;;  %v915_v12 = vld [vmem:[#allocation10 + $0x7e8] sm:$0xff]  ;;  %v8946_v33 = vld [vmem:[#allocation67_spill] sm:$0xff] }
  0xd0   :  { %4675 = vmatpush1.bf16.msra.mxu1 %v7293_v63  ;;  %4613 = vmatprep.subr.bf16.mxu0 %v7295_v7  ;;  %v7313_v63 = vpack.c.bf16 %v898_v18, %v890_v10  ;;  %8934 = vst [vmem:[#allocation141_spill] sm:$0xff] %v7317_v29  ;;  %v7319_v36 = vpack.c.bf16 %v915_v12, %v907_v53  ;;  %8936 = vst [vmem:[#allocation143_spill] sm:$0xff] %v7322_v54  ;;  %v8940_v12 = vld [vmem:[#allocation61_spill] sm:$0xff]  ;;  %v8941_v53 = vld [vmem:[#allocation62_spill] sm:$0xff] }
  0xd1   :  { %4677 = vmatprep.subr.bf16.mxu1 %v7298_v61  ;;  %v916_v61 = vld [vmem:[#allocation10 + $0x7f0] sm:$0xff]  ;;  %v7325_v10 = vpack.c.bf16 %v914_v45, %v906_v49  ;;  %v8943_v18 = vld [vmem:[#allocation64_spill] sm:$0xff]  ;;  %v8948_v45 = vld [vmem:[#allocation69_spill] sm:$0xff] }
  0xd2   :  { %8933 = vst [vmem:[#allocation140_spill] sm:$0xff] %v7313_v63  ;;  %8935 = vst [vmem:[#allocation142_spill] sm:$0xff] %v7319_v36  ;;  %v7329_v31 = vpack.c.bf16 %v916_v61, %v908_v35  ;;  %v8942_v61 = vld [vmem:[#allocation63_spill] sm:$0xff]  ;;  %v8947_v49 = vld [vmem:[#allocation68_spill] sm:$0xff] }
  0xd3   :  { %4615 = vmatpush1.bf16.msra.mxu0 %v7301_v46  ;;  %8937 = vst [vmem:[#allocation144_spill] sm:$0xff] %v7325_v10  ;;  %v8949_v35 = vld [vmem:[#allocation70_spill] sm:$0xff] }
  0xd4   :  { %4679 = vmatpush1.bf16.msra.mxu1 %v7305_v48  ;;  %4617 = vmatprep.subr.bf16.mxu0 %v7307_v55  ;;  %8938 = vst [vmem:[#allocation145_spill] sm:$0xff] %v7329_v31 }
  0xd5   :  { %4681 = vmatprep.subr.bf16.mxu1 %v7310_v0 }
  0xd7   :  { %4619 = vmatpush1.bf16.msra.mxu0 %v7313_v63 }
  0xd8   :  { %4683 = vmatpush1.bf16.msra.mxu1 %v7317_v29  ;;  %4621 = vmatprep.subr.bf16.mxu0 %v7319_v36 }
  0xd9   :  { %4685 = vmatprep.subr.bf16.mxu1 %v7322_v54 }
  0xdb   :  { %4623 = vmatpush1.bf16.msra.mxu0 %v7325_v10 }
  0xdc   :  { %4687 = vmatpush1.bf16.msra.mxu1 %v7329_v31  ;;  %4689 = vmatprep.subr.bf16.mxu0 %v6928_v58 }
  0xdd   :  { %4753 = vmatprep.subr.bf16.mxu1 %v6932_v62 }
  0xde   :  { %1127 = vmatmul.mubr.f32.vlgmr.msra.gmra.mrb[10].mxu0 %v8880_v43 }
  0xdf   :  { %1198 = vmatmul.mubr.f32.vlgmr.msra.gmra.mrb[10].mxu1 %v8880_v43  ;;  %4691 = vmatpush1.bf16.msra.mxu0 %v6936_v2  ;;  %v8939_v43 = vld [vmem:[#allocation60_spill] sm:$0xff] }
  0xe0   :  { %4755 = vmatpush1.bf16.msra.mxu1 %v6939_v3  ;;  %4693 = vmatprep.subr.bf16.mxu0 %v6941_v4 }
  0xe1   :  { %4757 = vmatprep.subr.bf16.mxu1 %v6945_v8 }
  0xe3   :  { %4695 = vmatpush1.bf16.msra.mxu0 %v6953_v14 }
  0xe4   :  { %4759 = vmatpush1.bf16.msra.mxu1 %v6957_v15  ;;  %4697 = vmatprep.subr.bf16.mxu0 %v6959_v16 }
  0xe5   :  { %4761 = vmatprep.subr.bf16.mxu1 %v6962_v20 }
  0xe7   :  { %4699 = vmatpush1.bf16.msra.mxu0 %v6969_v26 }
  0xe8   :  { %4763 = vmatpush1.bf16.msra.mxu1 %v6975_v27  ;;  %4701 = vmatprep.subr.bf16.mxu0 %v6977_v28 }
  0xe9   :  { %4765 = vmatprep.subr.bf16.mxu1 %v6980_v32 }
  0xeb   :  { %4703 = vmatpush1.bf16.msra.mxu0 %v6985_v38 }
  0xec   :  { %4767 = vmatpush1.bf16.msra.mxu1 %v6989_v39  ;;  %4705 = vmatprep.subr.bf16.mxu0 %v6991_v40 }
  0xed   :  { %4769 = vmatprep.subr.bf16.mxu1 %v6994_v44 }
  0xef   :  { %4707 = vmatpush1.bf16.msra.mxu0 %v6997_v50 }
  0xf0   :  { %4771 = vmatpush1.bf16.msra.mxu1 %v7001_v51  ;;  %4709 = vmatprep.subr.bf16.mxu0 %v7003_v52 }
  0xf1   :  { %4773 = vmatprep.subr.bf16.mxu1 %v7006_v56 }
  0xf3   :  { %4711 = vmatpush1.bf16.msra.mxu0 %v7009_v1 }
  0xf4   :  { %4775 = vmatpush1.bf16.msra.mxu1 %v7013_v5  ;;  %4713 = vmatprep.subr.bf16.mxu0 %v7015_v6 }
  0xf5   :  { %4777 = vmatprep.subr.bf16.mxu1 %v7018_v11 }
  0xf7   :  { %4715 = vmatpush1.bf16.msra.mxu0 %v7021_v21 }
  0xf8   :  { %4779 = vmatpush1.bf16.msra.mxu1 %v7025_v22  ;;  %4717 = vmatprep.subr.bf16.mxu0 %v7027_v23 }
  0xf9   :  { %4781 = vmatprep.subr.bf16.mxu1 %v7030_v30 }
  0xfb   :  { %4719 = vmatpush1.bf16.msra.mxu0 %v7033_v37 }
  0xfc   :  { %4783 = vmatpush1.bf16.msra.mxu1 %v7037_v41  ;;  %4721 = vmatprep.subr.bf16.mxu0 %v7039_v42 }
  0xfd   :  { %4785 = vmatprep.subr.bf16.mxu1 %v7042_v47 }
  0xff   :  { %4723 = vmatpush1.bf16.msra.mxu0 %v7045_v57 }
 0x100   :  { %4787 = vmatpush1.bf16.msra.mxu1 %v7049_v59  ;;  %4725 = vmatprep.subr.bf16.mxu0 %v7051_v60 }
 0x101   :  { %4789 = vmatprep.subr.bf16.mxu1 %v7054_v9 }
 0x103   :  { %4727 = vmatpush1.bf16.msra.mxu0 %v7057_v19 }
 0x104   :  { %4791 = vmatpush1.bf16.msra.mxu1 %v7061_v24  ;;  %4729 = vmatprep.subr.bf16.mxu0 %v7063_v25 }
 0x105   :  { %4793 = vmatprep.subr.bf16.mxu1 %v7066_v34 }
 0x107   :  { %4731 = vmatpush1.bf16.msra.mxu0 %v8939_v43  ;;  %v8950_v43 = vld [vmem:[#allocation71_spill] sm:$0xff] }
 0x108   :  { %4795 = vmatpush1.bf16.msra.mxu1 %v8940_v12  ;;  %4733 = vmatprep.subr.bf16.mxu0 %v8941_v53  ;;  %v8951_v12 = vld [vmem:[#allocation72_spill] sm:$0xff]  ;;  %v8952_v53 = vld [vmem:[#allocation73_spill] sm:$0xff] }
 0x109   :  { %4797 = vmatprep.subr.bf16.mxu1 %v8942_v61  ;;  %v8953_v61 = vld [vmem:[#allocation74_spill] sm:$0xff] }
 0x10b   :  { %4735 = vmatpush1.bf16.msra.mxu0 %v8943_v18  ;;  %v8954_v18 = vld [vmem:[#allocation75_spill] sm:$0xff] }
 0x10c   :  { %4799 = vmatpush1.bf16.msra.mxu1 %v8944_v13  ;;  %4737 = vmatprep.subr.bf16.mxu0 %v8945_v17  ;;  %v8955_v13 = vld [vmem:[#allocation76_spill] sm:$0xff]  ;;  %v8956_v17 = vld [vmem:[#allocation77_spill] sm:$0xff] }
 0x10d   :  { %4801 = vmatprep.subr.bf16.mxu1 %v8946_v33  ;;  %v8957_v33 = vld [vmem:[#allocation78_spill] sm:$0xff] }
 0x10f   :  { %4739 = vmatpush1.bf16.msra.mxu0 %v8947_v49  ;;  %v8958_v49 = vld [vmem:[#allocation79_spill] sm:$0xff] }
 0x110   :  { %4803 = vmatpush1.bf16.msra.mxu1 %v8948_v45  ;;  %4741 = vmatprep.subr.bf16.mxu0 %v8949_v35  ;;  %v115_v45 = vlaneseq  ;;  %v8959_v35 = vld [vmem:[#allocation80_spill] sm:$0xff] }
 0x111   :  { %4805 = vmatprep.subr.bf16.mxu1 %v8950_v43  ;;  %v8960_v43 = vld [vmem:[#allocation81_spill] sm:$0xff] }
 0x113   :  { %4743 = vmatpush1.bf16.msra.mxu0 %v8951_v12  ;;  %v8961_v12 = vld [vmem:[#allocation82_spill] sm:$0xff] }
 0x114   :  { %4807 = vmatpush1.bf16.msra.mxu1 %v8952_v53  ;;  %4745 = vmatprep.subr.bf16.mxu0 %v8953_v61  ;;  %v8962_v53 = vld [vmem:[#allocation83_spill] sm:$0xff]  ;;  %v116_v61 = vshrl.u32 %v115_v45, 7 }
 0x115   :  { %4809 = vmatprep.subr.bf16.mxu1 %v8954_v18 }
 0x116   :  { %v117_v34 = vsub.s32 0, %v116_v61  ;;  %v121_v25 = vsub.s32 1, %v116_v61  ;;  %v141_v59 = vsub.s32 6, %v116_v61  ;;  %v137_v47 = vsub.s32 5, %v116_v61 }
 0x117   :  { %4747 = vmatpush1.bf16.msra.mxu0 %v8955_v13  ;;  %v113_v13 = vld [vmem:[%s8511_s3] sm:$0xff]  ;;  %v145_v23 = vsub.s32 7, %v116_v61 }
 0x118   :  { %4811 = vmatpush1.bf16.msra.mxu1 %v8956_v17  ;;  %4749 = vmatprep.subr.bf16.mxu0 %v8957_v33  ;;  %v6812_v17 = vmov 1983009808   ;;  %v125_v33 = vsub.s32 2, %v116_v61  ;;  %v118_v24 = vrot.slane %v113_v13, %v117_v34  ;;  %v122_v9 = vrot.slane %v113_v13, %v121_v25 }
 0x119   :  { %4813 = vmatprep.subr.bf16.mxu1 %v8958_v49  ;;  %v491_v18 = vunpack.c.l.s4 %v6812_v17  ;;  %v129_v49 = vsub.s32 3, %v116_v61  ;;  %v142_v25 = vrot.slane %v113_v13, %v141_v59  ;;  %v138_v5 = vrot.slane %v113_v13, %v137_v47 }
 0x11b   :  { %4751 = vmatpush1.bf16.msra.mxu0 %v8959_v35  ;;  %v492_v19 = vunpack.c.0.s8 %v491_v18  ;;  %v126_v35 = vrot.slane %v113_v13, %v125_v33 }
 0x11c   :  { %4815 = vmatpush1.bf16.msra.mxu1 %v8960_v43  ;;  %4817 = vmatprep.subr.bf16.mxu0 %v8961_v12  ;;  %v130_v43 = vrot.slane %v113_v13, %v129_v49  ;;  %v133_v12 = vsub.s32 4, %v116_v61 }
 0x11d   :  { %4881 = vmatprep.subr.bf16.mxu1 %v8962_v53  ;;  %v7405_v42 = vsub.s32 %v492_v19, %v116_v61 }
 0x11e   :  { %v134_v33 = vrot.slane %v113_v13, %v133_v12 }
 0x129   :  { %v228_v60 = vpop.f32.mrb[0].mxu0 }
 0x12a   :  { %v229_v53 = vadd.f32 %v228_v60, %v118_v24  ;;  %v305_v45 = vpop.f32.mrb[0].mxu1  ;;  %v230_v57 = vpop.f32.mrb[1].mxu0 }
 0x12b   :  { %v306_v41 = vadd.f32 %v305_v45, %v126_v35  ;;  %v231_v37 = vadd.f32 %v230_v57, %v122_v9  ;;  %v307_v17 = vpop.f32.mrb[1].mxu1 }
 0x12c   :  { %v308_v30 = vadd.f32 %v307_v17, %v130_v43 }
 0x12d   :  { %v486_v22 = vcombine.low %v229_v53, %v231_v37  ;;  %v487_v34 = vcombine.high %v229_v53, %v231_v37  ;;  %v234_v18 = vpop.f32.mrb[2].mxu0 }
 0x12e   :  { %v488_v49 = vcombine.low %v306_v41, %v308_v30  ;;  %v489_v21 = vcombine.high %v306_v41, %v308_v30  ;;  %v235_v11 = vadd.f32 %v234_v18, %v118_v24  ;;  %v311_v6 = vpop.f32.mrb[2].mxu1  ;;  %v236_v60 = vpop.f32.mrb[3].mxu0  ;;  %v146_v41 = vrot.slane %v113_v13, %v145_v23 }
 0x12f   :  { %v7408_v1 = vrot.slane %v486_v22, %v7405_v42  ;;  %v7411_v19 = vrot.slane %v487_v34, %v7405_v42  ;;  %v312_v57 = vadd.f32 %v311_v6, %v126_v35  ;;  %v237_v45 = vadd.f32 %v236_v60, %v122_v9  ;;  %v313_v61 = vpop.f32.mrb[3].mxu1 }
 0x130   :  { %v7414_v37 = vrot.slane %v488_v49, %v7405_v42  ;;  %v7417_v59 = vrot.slane %v489_v21, %v7405_v42  ;;  %v314_v30 = vadd.f32 %v313_v61, %v130_v43 }
 0x131   :  { %8963 = vst [vmem:[#allocation146_spill] sm:$0xff] %v7411_v19  ;;  %v558_v24 = vcombine.low %v235_v11, %v237_v45  ;;  %v559_v12 = vcombine.high %v235_v11, %v237_v45  ;;  %v382_v47 = vpop.f32.mrb[4].mxu0 }
 0x132   :  { %8964 = vst [vmem:[#allocation147_spill] sm:$0xff] %v7417_v59  ;;  %v518_v22 = vcombine.low %v7408_v1, %v7414_v37  ;;  %v459_v35 = vpop.f32.mrb[4].mxu1  ;;  %v384_v21 = vpop.f32.mrb[5].mxu0  ;;  %v560_v23 = vcombine.low %v312_v57, %v314_v30  ;;  %v561_v13 = vcombine.high %v312_v57, %v314_v30  ;;  %v383_v34 = vadd.f32 %v382_v47, %v134_v33 }
 0x133   :  { %v7428_v43 = vrot.slane %v558_v24, %v7405_v42  ;;  %v7431_v11 = vrot.slane %v559_v12, %v7405_v42  ;;  %v461_v17 = vpop.f32.mrb[5].mxu1  ;;  %v460_v18 = vadd.f32 %v459_v35, %v142_v25  ;;  %v385_v49 = vadd.f32 %v384_v21, %v138_v5 }
 0x134   :  { %v462_v60 = vadd.f32 %v461_v17, %v146_v41  ;;  %v7434_v45 = vrot.slane %v560_v23, %v7405_v42  ;;  %v7437_v61 = vrot.slane %v561_v13, %v7405_v42 }
 0x135   :  { %8965 = vst [vmem:[#allocation148_spill] sm:$0xff] %v7428_v43  ;;  %8966 = vst [vmem:[#allocation149_spill] sm:$0xff] %v7431_v11  ;;  %v388_v9 = vpop.f32.mrb[6].mxu0  ;;  %v522_v6 = vcombine.low %v383_v34, %v385_v49  ;;  %v523_v24 = vcombine.high %v383_v34, %v385_v49  ;;  %v8996_v43 = vld [vmem:[#allocation105_spill] sm:$0xff] }
 0x136   :  { %8967 = vst [vmem:[#allocation150_spill] sm:$0xff] %v7434_v45  ;;  %8968 = vst [vmem:[#allocation151_spill] sm:$0xff] %v7437_v61  ;;  %v524_v53 = vcombine.low %v460_v18, %v462_v60  ;;  %v525_v59 = vcombine.high %v460_v18, %v462_v60  ;;  %v465_v12 = vpop.f32.mrb[6].mxu1  ;;  %v390_v19 = vpop.f32.mrb[7].mxu0  ;;  %v389_v18 = vadd.f32 %v388_v9, %v134_v33  ;;  %v8995_v45 = vld [vmem:[#allocation104_spill] sm:$0xff] }
 0x137   :  { %v467_v21 = vpop.f32.mrb[7].mxu1  ;;  %v7448_v23 = vrot.slane %v522_v6, %v7405_v42  ;;  %v7451_v13 = vrot.slane %v523_v24, %v7405_v42  ;;  %v466_v49 = vadd.f32 %v465_v12, %v142_v25  ;;  %v391_v60 = vadd.f32 %v390_v19, %v138_v5 }
 0x138   :  { %v7454_v17 = vrot.slane %v524_v53, %v7405_v42  ;;  %v7457_v34 = vrot.slane %v525_v59, %v7405_v42  ;;  %v468_v47 = vadd.f32 %v467_v21, %v146_v41 }
 0x139   :  { %8969 = vst [vmem:[#allocation152_spill] sm:$0xff] %v7451_v13  ;;  %v594_v30 = vcombine.low %v389_v18, %v391_v60  ;;  %v595_v57 = vcombine.high %v389_v18, %v391_v60  ;;  %v8998_v13 = vld [vmem:[#allocation107_spill] sm:$0xff] }
 0x13a   :  { %8970 = vst [vmem:[#allocation153_spill] sm:$0xff] %v7457_v34  ;;  %v554_v35 = vcombine.low %v7448_v23, %v7454_v17  ;;  %v596_v59 = vcombine.low %v466_v49, %v468_v47  ;;  %v597_v61 = vcombine.high %v466_v49, %v468_v47  ;;  %v8997_v34 = vld [vmem:[#allocation106_spill] sm:$0xff] }
 0x13b   :  { %v7468_v33 = vrot.slane %v594_v30, %v7405_v42  ;;  %v7471_v5 = vrot.slane %v595_v57, %v7405_v42 }
 0x13c   :  { %v7474_v25 = vrot.slane %v596_v59, %v7405_v42  ;;  %v7477_v19 = vrot.slane %v597_v61, %v7405_v42 }
 0x13d   :  { %8971 = vst [vmem:[#allocation154_spill] sm:$0xff] %v7468_v33  ;;  %8972 = vst [vmem:[#allocation155_spill] sm:$0xff] %v7471_v5  ;;  %v8994_v33 = vld [vmem:[#allocation103_spill] sm:$0xff] }
 0x13e   :  { %8973 = vst [vmem:[#allocation156_spill] sm:$0xff] %v7474_v25  ;;  %8974 = vst [vmem:[#allocation157_spill] sm:$0xff] %v7477_v19 }
 0x171   :  { %v986_v57 = vpop.f32.mrb[8].mxu0 }
 0x172   :  { %v1057_v47 = vpop.f32.mrb[8].mxu1  ;;  %v988_v21 = vpop.f32.mrb[9].mxu0 }
 0x173   :  { %v1212_v18 = vcombine.low %v986_v57, %v988_v21  ;;  %v1059_v49 = vpop.f32.mrb[9].mxu1 }
 0x174   :  { %v1213_v60 = vcombine.low %v1057_v47, %v1059_v49 }
 0x175   :  { %v1220_v61 = vrot.slane %v1212_v18, %v7405_v42 }
 0x176   :  { %v1227_v59 = vrot.slane %v1213_v60, %v7405_v42 }
 0x178   :  { %v1228_v41 = vcombine.low %v1220_v61, %v1227_v59 }
 0x17a   :  { %v1248_v53 = vadd.f32 %v1228_v41, %v518_v22 }
 0x17c   :  { %v1257_v24 = vrot.slane %v1248_v53, 4  ;;  %v4269_v6 = vmul.f32 -1.442695, %v1248_v53 }
 0x17e   :  { %v4270_v9 = vmul.f32 -1.442695, %v1257_v24 }
 0x180   :  { %6557 = vpow2.f32 %v4270_v9 }
 0x181   :  { %6559 = vpow2.f32 %v4269_v6 }
 0x18a   :  { %v6558_v19 = vpop.eup %6557 }
 0x18b   :  { %v6560_v57 = vpop.eup %6559  ;;  %v1262_v18 = vadd.f32 1.0, %v6558_v19 }
 0x18c   :  { %v1253_v60 = vadd.f32 1.0, %v6560_v57 }
 0x18d   :  { %6561 = vrcp.f32 %v1262_v18  ;;  %v8975_v18 = vld [vmem:[#allocation84_spill] sm:$0xff] }
 0x18e   :  { %6563 = vrcp.f32 %v1253_v60  ;;  %v8977_v60 = vld [vmem:[#allocation86_spill] sm:$0xff] }
 0x197   :  { %v6562_v41 = vpop.eup %6561 }
 0x198   :  { %v6564_v9 = vpop.eup %6563 }
 0x1b1   :  { %v1128_v12 = vpop.f32.mrb[10].mxu0 }
 0x1b2   :  { %v1199_v11 = vpop.f32.mrb[10].mxu1  ;;  %v1130_v30 = vpop.f32.mrb[11].mxu0 }
 0x1b3   :  { %v1229_v5 = vcombine.low %v1128_v12, %v1130_v30  ;;  %v1201_v25 = vpop.f32.mrb[11].mxu1  ;;  %v1275_v30 = vmul.f32 0.0, %v6562_v41  ;;  %v8982_v41 = vld [vmem:[#allocation91_spill] sm:$0xff] }
 0x1b4   :  { %v1230_v21 = vcombine.low %v1199_v11, %v1201_v25 }
 0x1b5   :  { %v1237_v47 = vrot.slane %v1229_v5, %v7405_v42 }
 0x1b6   :  { %v1244_v49 = vrot.slane %v1230_v21, %v7405_v42 }
 0x1b8   :  { %v1245_v22 = vcombine.low %v1237_v47, %v1244_v49  ;;  %v8976_v49 = vld [vmem:[#allocation85_spill] sm:$0xff] }
 0x1ba   :  { %v1249_v24 = vadd.f32 %v1245_v22, %v554_v35  ;;  %v8978_v22 = vld [vmem:[#allocation87_spill] sm:$0xff] }
 0x1bc   :  { %6565 = vtanh.f32 %v1249_v24  ;;  %v1267_v6 = vrot.slane %v1249_v24, 4  ;;  %v8979_v24 = vld [vmem:[#allocation88_spill] sm:$0xff] }
 0x1be   :  { %v4271_v53 = vmul.f32 -1.442695, %v1267_v6  ;;  %v8980_v6 = vld [vmem:[#allocation89_spill] sm:$0xff] }
 0x1c0   :  { %6567 = vpow2.f32 %v4271_v53  ;;  %v8981_v53 = vld [vmem:[#allocation90_spill] sm:$0xff] }
 0x1c6   :  { %v6566_v12 = vpop.eup %6565 }
 0x1c7   :  { %v1276_v61 = vmul.f32 %v6566_v12, %v6564_v9  ;;  %v8983_v9 = vld [vmem:[#allocation92_spill] sm:$0xff]  ;;  %v8984_v12 = vld [vmem:[#allocation93_spill] sm:$0xff] }
 0x1c9   :  { %v7491_v11 = vadd.f32 %v1276_v61, %v1275_v30  ;;  %v8985_v30 = vld [vmem:[#allocation94_spill] sm:$0xff]  ;;  %v8986_v61 = vld [vmem:[#allocation95_spill] sm:$0xff] }
 0x1ca   :  { %v6568_v5 = vpop.eup %6567 }
 0x1cb   :  { %v1272_v25 = vadd.f32 1.0, %v6568_v5  ;;  %6569 = vtanh.f32 %v7491_v11  ;;  %v8987_v5 = vld [vmem:[#allocation96_spill] sm:$0xff] }
 0x1cd   :  { %6571 = vrcp.f32 %v1272_v25  ;;  %v8988_v25 = vld [vmem:[#allocation97_spill] sm:$0xff] }
 0x1d5   :  { %v6570_v19 = vpop.eup %6569 }
 0x1d7   :  { %v6572_v59 = vpop.eup %6571 }
 0x1d8   :  { %v1279_v35 = vmul.f32 %v6572_v59, %v6570_v19  ;;  %v8989_v19 = vld [vmem:[#allocation98_spill] sm:$0xff]  ;;  %v8990_v59 = vld [vmem:[#allocation99_spill] sm:$0xff] }
 0x1da   :  { %1280 = vst [vmem:[#allocation3] sm:$0x3] %v1279_v35  ;;  %v1282_v57 = vrot.slane %v1279_v35, 2  ;;  %v7495_v21 = vrot.slane %v1279_v35, %v7405_v42  ;;  %v8991_v35 = vld [vmem:[#allocation100_spill] sm:$0xff] }
 0x1dc   :  { %1285 = vst [vmem:[#allocation4 + $0xe] sm:$0x3] %v1282_v57  ;;  %v1296_v47 = vcombine.high %v7495_v21, %v7495_v21  ;;  %v8992_v57 = vld [vmem:[#allocation101_spill] sm:$0xff] }
 0x1de   :  { %1363 = vmatprep.mubr.f32.mxu0 %v1296_v47  ;;  %1434 = vmatprep.mubr.f32.mxu1 %v1296_v47 }
 0x1df   :  { %1364 = vmatmul.mubr.f32.vlgmr.msra.gmra.mrb[12].mxu0 %v7495_v21  ;;  %1435 = vmatmul.mubr.f32.vlgmr.msra.gmra.mrb[12].mxu1 %v7495_v21 }
 0x1e0   :  { %4819 = vmatpush1.bf16.msra.mxu0 %v8975_v18  ;;  %4883 = vmatpush1.bf16.msra.mxu1 %v8976_v49 }
 0x1e1   :  { %1505 = vmatprep.mubr.f32.mxu0 %v1296_v47  ;;  %1576 = vmatprep.mubr.f32.mxu1 %v1296_v47  ;;  %v8993_v47 = vld [vmem:[#allocation102_spill] sm:$0xff] }
 0x1e2   :  { %4821 = vmatprep.subr.bf16.mxu0 %v8977_v60  ;;  %4885 = vmatprep.subr.bf16.mxu1 %v8978_v22 }
 0x1e4   :  { %4823 = vmatpush1.bf16.msra.mxu0 %v8979_v24  ;;  %4887 = vmatpush1.bf16.msra.mxu1 %v8980_v6 }
 0x1e5   :  { %4825 = vmatprep.subr.bf16.mxu0 %v8981_v53  ;;  %4889 = vmatprep.subr.bf16.mxu1 %v8982_v41 }
 0x1e8   :  { %4827 = vmatpush1.bf16.msra.mxu0 %v8983_v9  ;;  %4891 = vmatpush1.bf16.msra.mxu1 %v8984_v12 }
 0x1e9   :  { %4829 = vmatprep.subr.bf16.mxu0 %v8985_v30  ;;  %4893 = vmatprep.subr.bf16.mxu1 %v8986_v61 }
 0x1ec   :  { %4831 = vmatpush1.bf16.msra.mxu0 %v8987_v5  ;;  %4895 = vmatpush1.bf16.msra.mxu1 %v8988_v25  ;;  %v8999_v25 = vld [vmem:[#allocation108_spill] sm:$0xff] }
 0x1ed   :  { %4833 = vmatprep.subr.bf16.mxu0 %v8989_v19  ;;  %4897 = vmatprep.subr.bf16.mxu1 %v8990_v59  ;;  %v9000_v19 = vld [vmem:[#allocation109_spill] sm:$0xff]  ;;  %v9001_v59 = vld [vmem:[#allocation110_spill] sm:$0xff] }
 0x1f0   :  { %4835 = vmatpush1.bf16.msra.mxu0 %v8991_v35  ;;  %4899 = vmatpush1.bf16.msra.mxu1 %v8992_v57  ;;  %v9002_v35 = vld [vmem:[#allocation111_spill] sm:$0xff]  ;;  %v9003_v57 = vld [vmem:[#allocation112_spill] sm:$0xff] }
 0x1f1   :  { %4837 = vmatprep.subr.bf16.mxu0 %v8993_v47  ;;  %4901 = vmatprep.subr.bf16.mxu1 %v8994_v33  ;;  %v9004_v47 = vld [vmem:[#allocation113_spill] sm:$0xff]  ;;  %v9005_v33 = vld [vmem:[#allocation114_spill] sm:$0xff] }
 0x1f4   :  { %4839 = vmatpush1.bf16.msra.mxu0 %v8995_v45  ;;  %4903 = vmatpush1.bf16.msra.mxu1 %v8996_v43  ;;  %v9006_v45 = vld [vmem:[#allocation115_spill] sm:$0xff]  ;;  %v9007_v43 = vld [vmem:[#allocation116_spill] sm:$0xff] }
 0x1f5   :  { %4841 = vmatprep.subr.bf16.mxu0 %v8997_v34  ;;  %4905 = vmatprep.subr.bf16.mxu1 %v8998_v13  ;;  %v9008_v34 = vld [vmem:[#allocation117_spill] sm:$0xff]  ;;  %v9009_v13 = vld [vmem:[#allocation118_spill] sm:$0xff] }
 0x1f8   :  { %4843 = vmatpush1.bf16.msra.mxu0 %v8999_v25  ;;  %4907 = vmatpush1.bf16.msra.mxu1 %v9000_v19  ;;  %v9010_v25 = vld [vmem:[#allocation119_spill] sm:$0xff]  ;;  %v9011_v19 = vld [vmem:[#allocation120_spill] sm:$0xff] }
 0x1f9   :  { %4845 = vmatprep.subr.bf16.mxu0 %v9001_v59  ;;  %4909 = vmatprep.subr.bf16.mxu1 %v9002_v35  ;;  %v9012_v59 = vld [vmem:[#allocation121_spill] sm:$0xff]  ;;  %v9013_v35 = vld [vmem:[#allocation122_spill] sm:$0xff] }
 0x1fc   :  { %4847 = vmatpush1.bf16.msra.mxu0 %v9003_v57  ;;  %4911 = vmatpush1.bf16.msra.mxu1 %v9004_v47  ;;  %v9014_v57 = vld [vmem:[#allocation123_spill] sm:$0xff]  ;;  %v9015_v47 = vld [vmem:[#allocation124_spill] sm:$0xff] }
 0x1fd   :  { %4849 = vmatprep.subr.bf16.mxu0 %v9005_v33  ;;  %4913 = vmatprep.subr.bf16.mxu1 %v9006_v45  ;;  %v9016_v33 = vld [vmem:[#allocation125_spill] sm:$0xff]  ;;  %v9017_v45 = vld [vmem:[#allocation126_spill] sm:$0xff] }
 0x200   :  { %4851 = vmatpush1.bf16.msra.mxu0 %v9007_v43  ;;  %4915 = vmatpush1.bf16.msra.mxu1 %v9008_v34  ;;  %v9018_v43 = vld [vmem:[#allocation127_spill] sm:$0xff]  ;;  %v9019_v34 = vld [vmem:[#allocation128_spill] sm:$0xff] }
 0x201   :  { %4853 = vmatprep.subr.bf16.mxu0 %v9009_v13  ;;  %4917 = vmatprep.subr.bf16.mxu1 %v9010_v25  ;;  %v9020_v13 = vld [vmem:[#allocation129_spill] sm:$0xff]  ;;  %v9021_v25 = vld [vmem:[#allocation130_spill] sm:$0xff] }
 0x204   :  { %4855 = vmatpush1.bf16.msra.mxu0 %v9011_v19  ;;  %4919 = vmatpush1.bf16.msra.mxu1 %v9012_v59  ;;  %v9022_v19 = vld [vmem:[#allocation131_spill] sm:$0xff]  ;;  %v9023_v59 = vld [vmem:[#allocation132_spill] sm:$0xff] }
 0x205   :  { %4857 = vmatprep.subr.bf16.mxu0 %v9013_v35  ;;  %4921 = vmatprep.subr.bf16.mxu1 %v9014_v57  ;;  %v9024_v35 = vld [vmem:[#allocation133_spill] sm:$0xff] }
 0x208   :  { %4859 = vmatpush1.bf16.msra.mxu0 %v9015_v47  ;;  %4923 = vmatpush1.bf16.msra.mxu1 %v9016_v33  ;;  %v9025_v47 = vld [vmem:[#allocation135_spill] sm:$0xff] }
 0x209   :  { %4861 = vmatprep.subr.bf16.mxu0 %v9017_v45  ;;  %4925 = vmatprep.subr.bf16.mxu1 %v9018_v43 }
 0x20c   :  { %4863 = vmatpush1.bf16.msra.mxu0 %v9019_v34  ;;  %4927 = vmatpush1.bf16.msra.mxu1 %v9020_v13 }
 0x20d   :  { %4865 = vmatprep.subr.bf16.mxu0 %v9021_v25  ;;  %4929 = vmatprep.subr.bf16.mxu1 %v9022_v19 }
 0x210   :  { %4867 = vmatpush1.bf16.msra.mxu0 %v9023_v59  ;;  %4931 = vmatpush1.bf16.msra.mxu1 %v9024_v35 }
 0x211   :  { %4869 = vmatprep.subr.bf16.mxu0 %v7295_v7  ;;  %4933 = vmatprep.subr.bf16.mxu1 %v9025_v47 }
 0x214   :  { %4871 = vmatpush1.bf16.msra.mxu0 %v7301_v46  ;;  %4935 = vmatpush1.bf16.msra.mxu1 %v7305_v48 }
 0x215   :  { %4873 = vmatprep.subr.bf16.mxu0 %v7307_v55  ;;  %4937 = vmatprep.subr.bf16.mxu1 %v7310_v0 }
 0x218   :  { %4875 = vmatpush1.bf16.msra.mxu0 %v7313_v63  ;;  %4939 = vmatpush1.bf16.msra.mxu1 %v7317_v29 }
 0x219   :  { %4877 = vmatprep.subr.bf16.mxu0 %v7319_v36  ;;  %4941 = vmatprep.subr.bf16.mxu1 %v7322_v54 }
 0x21c   :  { %4879 = vmatpush1.bf16.msra.mxu0 %v7325_v10  ;;  %4943 = vmatpush1.bf16.msra.mxu1 %v7329_v31 }
 0x21d   :  { %4945 = vmatprep.subr.bf16.mxu0 %v6928_v58  ;;  %5009 = vmatprep.subr.bf16.mxu1 %v6932_v62 }
 0x21f   :  { %1506 = vmatmul.mubr.f32.vlgmr.msra.gmra.mrb[14].mxu0 %v7495_v21  ;;  %1577 = vmatmul.mubr.f32.vlgmr.msra.gmra.mrb[14].mxu1 %v7495_v21  ;;  %v9026_v21 = vld [vmem:[#allocation40_spill] sm:$0xff] }
 0x220   :  { %4947 = vmatpush1.bf16.msra.mxu0 %v6936_v2  ;;  %5011 = vmatpush1.bf16.msra.mxu1 %v6939_v3 }
 0x221   :  { %4949 = vmatprep.subr.bf16.mxu0 %v6941_v4  ;;  %5013 = vmatprep.subr.bf16.mxu1 %v6945_v8 }
 0x224   :  { %4951 = vmatpush1.bf16.msra.mxu0 %v6953_v14  ;;  %5015 = vmatpush1.bf16.msra.mxu1 %v6957_v15 }
 0x225   :  { %4953 = vmatprep.subr.bf16.mxu0 %v6959_v16  ;;  %5017 = vmatprep.subr.bf16.mxu1 %v6962_v20 }
 0x228   :  { %4955 = vmatpush1.bf16.msra.mxu0 %v6969_v26  ;;  %5019 = vmatpush1.bf16.msra.mxu1 %v6975_v27 }
 0x229   :  { %4957 = vmatprep.subr.bf16.mxu0 %v6977_v28  ;;  %5021 = vmatprep.subr.bf16.mxu1 %v6980_v32  ;;  %v9027_v28 = vld [vmem:[#allocation41_spill] sm:$0xff]  ;;  %v9028_v32 = vld [vmem:[#allocation42_spill] sm:$0xff] }
 0x22c   :  { %4959 = vmatpush1.bf16.msra.mxu0 %v6985_v38  ;;  %5023 = vmatpush1.bf16.msra.mxu1 %v6989_v39  ;;  %v9029_v38 = vld [vmem:[#allocation43_spill] sm:$0xff]  ;;  %v9030_v39 = vld [vmem:[#allocation44_spill] sm:$0xff] }
 0x22d   :  { %4961 = vmatprep.subr.bf16.mxu0 %v6991_v40  ;;  %5025 = vmatprep.subr.bf16.mxu1 %v6994_v44  ;;  %v9031_v40 = vld [vmem:[#allocation45_spill] sm:$0xff]  ;;  %v9032_v44 = vld [vmem:[#allocation46_spill] sm:$0xff] }
 0x230   :  { %4963 = vmatpush1.bf16.msra.mxu0 %v6997_v50  ;;  %5027 = vmatpush1.bf16.msra.mxu1 %v7001_v51  ;;  %v9033_v50 = vld [vmem:[#allocation47_spill] sm:$0xff]  ;;  %v9034_v51 = vld [vmem:[#allocation48_spill] sm:$0xff] }
 0x231   :  { %4965 = vmatprep.subr.bf16.mxu0 %v7003_v52  ;;  %5029 = vmatprep.subr.bf16.mxu1 %v7006_v56  ;;  %v9035_v52 = vld [vmem:[#allocation49_spill] sm:$0xff]  ;;  %v9036_v56 = vld [vmem:[#allocation50_spill] sm:$0xff] }
 0x234   :  { %4967 = vmatpush1.bf16.msra.mxu0 %v9026_v21  ;;  %5031 = vmatpush1.bf16.msra.mxu1 %v9027_v28  ;;  %v9037_v21 = vld [vmem:[#allocation51_spill] sm:$0xff]  ;;  %v9038_v28 = vld [vmem:[#allocation52_spill] sm:$0xff] }
 0x235   :  { %4969 = vmatprep.subr.bf16.mxu0 %v9028_v32  ;;  %5033 = vmatprep.subr.bf16.mxu1 %v9029_v38  ;;  %v9039_v32 = vld [vmem:[#allocation53_spill] sm:$0xff]  ;;  %v9040_v38 = vld [vmem:[#allocation54_spill] sm:$0xff] }
 0x238   :  { %4971 = vmatpush1.bf16.msra.mxu0 %v9030_v39  ;;  %5035 = vmatpush1.bf16.msra.mxu1 %v9031_v40  ;;  %v9041_v39 = vld [vmem:[#allocation55_spill] sm:$0xff]  ;;  %v9042_v40 = vld [vmem:[#allocation56_spill] sm:$0xff] }
 0x239   :  { %4973 = vmatprep.subr.bf16.mxu0 %v9032_v44  ;;  %5037 = vmatprep.subr.bf16.mxu1 %v9033_v50  ;;  %v9043_v44 = vld [vmem:[#allocation57_spill] sm:$0xff]  ;;  %v9044_v50 = vld [vmem:[#allocation58_spill] sm:$0xff] }
 0x23c   :  { %4975 = vmatpush1.bf16.msra.mxu0 %v9034_v51  ;;  %5039 = vmatpush1.bf16.msra.mxu1 %v9035_v52  ;;  %v9045_v51 = vld [vmem:[#allocation59_spill] sm:$0xff]  ;;  %v9046_v52 = vld [vmem:[#allocation60_spill] sm:$0xff] }
 0x23d   :  { %4977 = vmatprep.subr.bf16.mxu0 %v9036_v56  ;;  %5041 = vmatprep.subr.bf16.mxu1 %v9037_v21  ;;  %v9047_v56 = vld [vmem:[#allocation61_spill] sm:$0xff]  ;;  %v9048_v21 = vld [vmem:[#allocation62_spill] sm:$0xff] }
 0x240   :  { %4979 = vmatpush1.bf16.msra.mxu0 %v9038_v28  ;;  %5043 = vmatpush1.bf16.msra.mxu1 %v9039_v32  ;;  %v9049_v28 = vld [vmem:[#allocation63_spill] sm:$0xff]  ;;  %v9050_v32 = vld [vmem:[#allocation64_spill] sm:$0xff] }
 0x241   :  { %4981 = vmatprep.subr.bf16.mxu0 %v9040_v38  ;;  %5045 = vmatprep.subr.bf16.mxu1 %v9041_v39  ;;  %v9051_v38 = vld [vmem:[#allocation65_spill] sm:$0xff]  ;;  %v9052_v39 = vld [vmem:[#allocation66_spill] sm:$0xff] }
 0x244   :  { %4983 = vmatpush1.bf16.msra.mxu0 %v9042_v40  ;;  %5047 = vmatpush1.bf16.msra.mxu1 %v9043_v44  ;;  %v9053_v40 = vld [vmem:[#allocation67_spill] sm:$0xff]  ;;  %v9054_v44 = vld [vmem:[#allocation68_spill] sm:$0xff] }
 0x245   :  { %4985 = vmatprep.subr.bf16.mxu0 %v9044_v50  ;;  %5049 = vmatprep.subr.bf16.mxu1 %v9045_v51  ;;  %v9055_v50 = vld [vmem:[#allocation69_spill] sm:$0xff]  ;;  %v9056_v51 = vld [vmem:[#allocation70_spill] sm:$0xff] }
 0x248   :  { %4987 = vmatpush1.bf16.msra.mxu0 %v9046_v52  ;;  %5051 = vmatpush1.bf16.msra.mxu1 %v9047_v56  ;;  %v9057_v52 = vld [vmem:[#allocation71_spill] sm:$0xff]  ;;  %v9058_v56 = vld [vmem:[#allocation72_spill] sm:$0xff] }
 0x249   :  { %4989 = vmatprep.subr.bf16.mxu0 %v9048_v21  ;;  %5053 = vmatprep.subr.bf16.mxu1 %v9049_v28  ;;  %v9059_v21 = vld [vmem:[#allocation73_spill] sm:$0xff]  ;;  %v9060_v28 = vld [vmem:[#allocation74_spill] sm:$0xff] }
 0x24c   :  { %4991 = vmatpush1.bf16.msra.mxu0 %v9050_v32  ;;  %5055 = vmatpush1.bf16.msra.mxu1 %v9051_v38  ;;  %v9061_v32 = vld [vmem:[#allocation75_spill] sm:$0xff]  ;;  %v9062_v38 = vld [vmem:[#allocation76_spill] sm:$0xff] }
 0x24d   :  { %4993 = vmatprep.subr.bf16.mxu0 %v9052_v39  ;;  %5057 = vmatprep.subr.bf16.mxu1 %v9053_v40  ;;  %v9063_v39 = vld [vmem:[#allocation77_spill] sm:$0xff]  ;;  %v9064_v40 = vld [vmem:[#allocation78_spill] sm:$0xff] }
 0x250   :  { %4995 = vmatpush1.bf16.msra.mxu0 %v9054_v44  ;;  %5059 = vmatpush1.bf16.msra.mxu1 %v9055_v50  ;;  %v9065_v44 = vld [vmem:[#allocation79_spill] sm:$0xff]  ;;  %v9066_v50 = vld [vmem:[#allocation80_spill] sm:$0xff] }
 0x251   :  { %4997 = vmatprep.subr.bf16.mxu0 %v9056_v51  ;;  %5061 = vmatprep.subr.bf16.mxu1 %v9057_v52  ;;  %v9067_v51 = vld [vmem:[#allocation81_spill] sm:$0xff]  ;;  %v9068_v52 = vld [vmem:[#allocation82_spill] sm:$0xff] }
 0x254   :  { %4999 = vmatpush1.bf16.msra.mxu0 %v9058_v56  ;;  %5063 = vmatpush1.bf16.msra.mxu1 %v9059_v21  ;;  %v9069_v56 = vld [vmem:[#allocation83_spill] sm:$0xff] }
 0x255   :  { %5001 = vmatprep.subr.bf16.mxu0 %v9060_v28  ;;  %5065 = vmatprep.subr.bf16.mxu1 %v9061_v32 }
 0x258   :  { %5003 = vmatpush1.bf16.msra.mxu0 %v9062_v38  ;;  %5067 = vmatpush1.bf16.msra.mxu1 %v9063_v39 }
 0x259   :  { %5005 = vmatprep.subr.bf16.mxu0 %v9064_v40  ;;  %5069 = vmatprep.subr.bf16.mxu1 %v9065_v44 }
 0x25c   :  { %5007 = vmatpush1.bf16.msra.mxu0 %v9066_v50  ;;  %5071 = vmatpush1.bf16.msra.mxu1 %v9067_v51  ;;  %v9070_v50 = vcombine.high %v7408_v1, %v7414_v37 }
 0x25d   :  { %5073 = vmatprep.subr.bf16.mxu0 %v9068_v52  ;;  %5137 = vmatprep.subr.bf16.mxu1 %v9069_v56 }
 0x2b2   :  { %v1365_v21 = vpop.f32.mrb[12].mxu0  ;;  %v1436_v28 = vpop.f32.mrb[12].mxu1 }
 0x2b3   :  { %v1367_v27 = vpop.f32.mrb[13].mxu0  ;;  %v1438_v32 = vpop.f32.mrb[13].mxu1 }
 0x2b4   :  { %v1591_v26 = vcombine.low %v1365_v21, %v1367_v27  ;;  %v1592_v38 = vcombine.low %v1436_v28, %v1438_v32 }
 0x2b6   :  { %v1599_v39 = vrot.slane %v1591_v26, %v7405_v42  ;;  %v1606_v40 = vrot.slane %v1592_v38, %v7405_v42 }
 0x2b8   :  { %v1607_v20 = vcombine.low %v1599_v39, %v1606_v40 }
 0x2ba   :  { %v1627_v44 = vadd.f32 %v1607_v20, %v9070_v50 }
 0x2bc   :  { %v1636_v51 = vrot.slane %v1627_v44, 4  ;;  %v4272_v52 = vmul.f32 -1.442695, %v1627_v44 }
 0x2be   :  { %v4273_v16 = vmul.f32 -1.442695, %v1636_v51 }
 0x2c0   :  { %6573 = vpow2.f32 %v4273_v16  ;;  %v9071_v16 = vcombine.high %v7448_v23, %v7454_v17 }
 0x2c1   :  { %6575 = vpow2.f32 %v4272_v52 }
 0x2ca   :  { %v6574_v14 = vpop.eup %6573 }
 0x2cb   :  { %v6576_v28 = vpop.eup %6575  ;;  %v1641_v21 = vadd.f32 1.0, %v6574_v14 }
 0x2cc   :  { %v1632_v40 = vadd.f32 1.0, %v6576_v28 }
 0x2cd   :  { %6577 = vrcp.f32 %v1641_v21  ;;  %v9072_v21 = vld [vmem:[#allocation97_spill] sm:$0xff] }
 0x2ce   :  { %6579 = vrcp.f32 %v1632_v40  ;;  %v9075_v40 = vld [vmem:[#allocation100_spill] sm:$0xff] }
 0x2d7   :  { %v6578_v52 = vpop.eup %6577 }
 0x2d8   :  { %v1654_v14 = vmul.f32 %v6578_v52, %v7491_v11  ;;  %v9081_v52 = vld [vmem:[#allocation106_spill] sm:$0xff] }
 0x2f2   :  { %v1507_v56 = vpop.f32.mrb[14].mxu0  ;;  %v1578_v15 = vpop.f32.mrb[14].mxu1 }
 0x2f3   :  { %v1509_v8 = vpop.f32.mrb[15].mxu0  ;;  %v1580_v27 = vpop.f32.mrb[15].mxu1 }
 0x2f4   :  { %v1608_v32 = vcombine.low %v1507_v56, %v1509_v8  ;;  %v1609_v26 = vcombine.low %v1578_v15, %v1580_v27  ;;  %v6580_v8 = vpop.eup %6579 }
 0x2f6   :  { %v1616_v38 = vrot.slane %v1608_v32, %v7405_v42  ;;  %v1623_v39 = vrot.slane %v1609_v26, %v7405_v42 }
 0x2f8   :  { %v1624_v20 = vcombine.low %v1616_v38, %v1623_v39  ;;  %v9073_v38 = vld [vmem:[#allocation98_spill] sm:$0xff]  ;;  %v9074_v39 = vld [vmem:[#allocation99_spill] sm:$0xff] }
 0x2fa   :  { %v1628_v44 = vadd.f32 %v1624_v20, %v9071_v16  ;;  %v9076_v20 = vld [vmem:[#allocation101_spill] sm:$0xff]  ;;  %v9077_v16 = vld [vmem:[#allocation102_spill] sm:$0xff] }
 0x2fc   :  { %6581 = vtanh.f32 %v1628_v44  ;;  %v1646_v50 = vrot.slane %v1628_v44, 4  ;;  %v9078_v44 = vld [vmem:[#allocation103_spill] sm:$0xff] }
 0x2fe   :  { %v4274_v51 = vmul.f32 -1.442695, %v1646_v50  ;;  %v9079_v50 = vld [vmem:[#allocation104_spill] sm:$0xff] }
 0x300   :  { %6583 = vpow2.f32 %v4274_v51  ;;  %v9080_v51 = vld [vmem:[#allocation105_spill] sm:$0xff] }
 0x306   :  { %v6582_v15 = vpop.eup %6581 }
 0x307   :  { %v1655_v56 = vmul.f32 %v6582_v15, %v6580_v8  ;;  %v9082_v8 = vld [vmem:[#allocation107_spill] sm:$0xff]  ;;  %v9083_v15 = vld [vmem:[#allocation108_spill] sm:$0xff] }
 0x309   :  { %v7642_v1 = vadd.f32 %v1655_v56, %v1654_v14  ;;  %v9084_v14 = vld [vmem:[#allocation109_spill] sm:$0xff]  ;;  %v9085_v56 = vld [vmem:[#allocation110_spill] sm:$0xff] }
 0x30a   :  { %v6584_v37 = vpop.eup %6583 }
 0x30b   :  { %v1651_v27 = vadd.f32 1.0, %v6584_v37  ;;  %6585 = vtanh.f32 %v7642_v1  ;;  %v9086_v37 = vld [vmem:[#allocation111_spill] sm:$0xff] }
 0x30d   :  { %6587 = vrcp.f32 %v1651_v27  ;;  %v9087_v27 = vld [vmem:[#allocation112_spill] sm:$0xff] }
 0x315   :  { %v6586_v23 = vpop.eup %6585 }
 0x317   :  { %v6588_v17 = vpop.eup %6587 }
 0x318   :  { %v1658_v28 = vmul.f32 %v6588_v17, %v6586_v23  ;;  %v9088_v23 = vld [vmem:[#allocation113_spill] sm:$0xff]  ;;  %v9089_v17 = vld [vmem:[#allocation114_spill] sm:$0xff] }
 0x31a   :  { %1660 = vst [vmem:[#allocation3 + $0x2] sm:$0x3] %v1658_v28  ;;  %v1662_v32 = vrot.slane %v1658_v28, 2  ;;  %v7646_v26 = vrot.slane %v1658_v28, %v7405_v42  ;;  %v9090_v28 = vld [vmem:[#allocation115_spill] sm:$0xff] }
 0x31c   :  { %1665 = vst [vmem:[#allocation4 + $0xc] sm:$0x3] %v1662_v32  ;;  %v1676_v11 = vcombine.high %v7646_v26, %v7646_v26  ;;  %v9091_v32 = vld [vmem:[#allocation116_spill] sm:$0xff] }
 0x31e   :  { %1743 = vmatprep.mubr.f32.mxu0 %v1676_v11  ;;  %1814 = vmatprep.mubr.f32.mxu1 %v1676_v11 }
 0x31f   :  { %1744 = vmatmul.mubr.f32.vlgmr.msra.gmra.mrb[16].mxu0 %v7646_v26  ;;  %1815 = vmatmul.mubr.f32.vlgmr.msra.gmra.mrb[16].mxu1 %v7646_v26 }
 0x320   :  { %5075 = vmatpush1.bf16.msra.mxu0 %v8975_v18  ;;  %5139 = vmatpush1.bf16.msra.mxu1 %v8976_v49 }
 0x321   :  { %1885 = vmatprep.mubr.f32.mxu0 %v1676_v11  ;;  %1956 = vmatprep.mubr.f32.mxu1 %v1676_v11  ;;  %v9092_v11 = vld [vmem:[#allocation117_spill] sm:$0xff] }
 0x322   :  { %5077 = vmatprep.subr.bf16.mxu0 %v8977_v60  ;;  %5141 = vmatprep.subr.bf16.mxu1 %v8978_v22 }
 0x324   :  { %5079 = vmatpush1.bf16.msra.mxu0 %v8979_v24  ;;  %5143 = vmatpush1.bf16.msra.mxu1 %v8980_v6 }
 0x325   :  { %5081 = vmatprep.subr.bf16.mxu0 %v8981_v53  ;;  %5145 = vmatprep.subr.bf16.mxu1 %v8982_v41 }
 0x328   :  { %5083 = vmatpush1.bf16.msra.mxu0 %v8983_v9  ;;  %5147 = vmatpush1.bf16.msra.mxu1 %v8984_v12 }
 0x329   :  { %5085 = vmatprep.subr.bf16.mxu0 %v8985_v30  ;;  %5149 = vmatprep.subr.bf16.mxu1 %v8986_v61 }
 0x32c   :  { %5087 = vmatpush1.bf16.msra.mxu0 %v8987_v5  ;;  %5151 = vmatpush1.bf16.msra.mxu1 %v9072_v21 }
 0x32d   :  { %5089 = vmatprep.subr.bf16.mxu0 %v9073_v38  ;;  %5153 = vmatprep.subr.bf16.mxu1 %v9074_v39 }
 0x330   :  { %5091 = vmatpush1.bf16.msra.mxu0 %v9075_v40  ;;  %5155 = vmatpush1.bf16.msra.mxu1 %v9076_v20 }
 0x331   :  { %5093 = vmatprep.subr.bf16.mxu0 %v9077_v16  ;;  %5157 = vmatprep.subr.bf16.mxu1 %v9078_v44 }
 0x334   :  { %5095 = vmatpush1.bf16.msra.mxu0 %v9079_v50  ;;  %5159 = vmatpush1.bf16.msra.mxu1 %v9080_v51 }
 0x335   :  { %5097 = vmatprep.subr.bf16.mxu0 %v9081_v52  ;;  %5161 = vmatprep.subr.bf16.mxu1 %v9082_v8  ;;  %v9093_v8 = vld [vmem:[#allocation118_spill] sm:$0xff] }
 0x338   :  { %5099 = vmatpush1.bf16.msra.mxu0 %v9083_v15  ;;  %5163 = vmatpush1.bf16.msra.mxu1 %v9084_v14  ;;  %v9094_v15 = vld [vmem:[#allocation119_spill] sm:$0xff]  ;;  %v9095_v14 = vld [vmem:[#allocation120_spill] sm:$0xff] }
 0x339   :  { %5101 = vmatprep.subr.bf16.mxu0 %v9085_v56  ;;  %5165 = vmatprep.subr.bf16.mxu1 %v9086_v37  ;;  %v9096_v56 = vld [vmem:[#allocation121_spill] sm:$0xff]  ;;  %v9097_v37 = vld [vmem:[#allocation122_spill] sm:$0xff] }
 0x33c   :  { %5103 = vmatpush1.bf16.msra.mxu0 %v9087_v27  ;;  %5167 = vmatpush1.bf16.msra.mxu1 %v9088_v23  ;;  %v9098_v23 = vld [vmem:[#allocation124_spill] sm:$0xff] }
 0x33d   :  { %5105 = vmatprep.subr.bf16.mxu0 %v9089_v17  ;;  %5169 = vmatprep.subr.bf16.mxu1 %v9090_v28 }
 0x340   :  { %5107 = vmatpush1.bf16.msra.mxu0 %v9091_v32  ;;  %5171 = vmatpush1.bf16.msra.mxu1 %v9092_v11 }
 0x341   :  { %5109 = vmatprep.subr.bf16.mxu0 %v9093_v8  ;;  %5173 = vmatprep.subr.bf16.mxu1 %v9094_v15 }
 0x344   :  { %5111 = vmatpush1.bf16.msra.mxu0 %v9095_v14  ;;  %5175 = vmatpush1.bf16.msra.mxu1 %v9096_v56 }
 0x345   :  { %5113 = vmatprep.subr.bf16.mxu0 %v9097_v37  ;;  %5177 = vmatprep.subr.bf16.mxu1 %v9014_v57 }
 0x348   :  { %5115 = vmatpush1.bf16.msra.mxu0 %v9098_v23  ;;  %5179 = vmatpush1.bf16.msra.mxu1 %v9016_v33 }
 0x349   :  { %5117 = vmatprep.subr.bf16.mxu0 %v9017_v45  ;;  %5181 = vmatprep.subr.bf16.mxu1 %v9018_v43 }
 0x34c   :  { %5119 = vmatpush1.bf16.msra.mxu0 %v9019_v34  ;;  %5183 = vmatpush1.bf16.msra.mxu1 %v9020_v13 }
 0x34d   :  { %5121 = vmatprep.subr.bf16.mxu0 %v9021_v25  ;;  %5185 = vmatprep.subr.bf16.mxu1 %v9022_v19 }
 0x350   :  { %5123 = vmatpush1.bf16.msra.mxu0 %v9023_v59  ;;  %5187 = vmatpush1.bf16.msra.mxu1 %v9024_v35 }
 0x351   :  { %5125 = vmatprep.subr.bf16.mxu0 %v7295_v7  ;;  %5189 = vmatprep.subr.bf16.mxu1 %v9025_v47 }
 0x354   :  { %5127 = vmatpush1.bf16.msra.mxu0 %v7301_v46  ;;  %5191 = vmatpush1.bf16.msra.mxu1 %v7305_v48  ;;  %v9161_v48 = vld [vmem:[#allocation147_spill] sm:$0xff] }
 0x355   :  { %5129 = vmatprep.subr.bf16.mxu0 %v7307_v55  ;;  %5193 = vmatprep.subr.bf16.mxu1 %v7310_v0 }
 0x358   :  { %5131 = vmatpush1.bf16.msra.mxu0 %v7313_v63  ;;  %5195 = vmatpush1.bf16.msra.mxu1 %v7317_v29  ;;  %v9105_v29 = vld [vmem:[#allocation29_spill] sm:$0xff] }
 0x359   :  { %5133 = vmatprep.subr.bf16.mxu0 %v7319_v36  ;;  %5197 = vmatprep.subr.bf16.mxu1 %v7322_v54  ;;  %v9099_v36 = vld [vmem:[#allocation23_spill] sm:$0xff]  ;;  %v9100_v54 = vld [vmem:[#allocation24_spill] sm:$0xff] }
 0x35c   :  { %5135 = vmatpush1.bf16.msra.mxu0 %v7325_v10  ;;  %5199 = vmatpush1.bf16.msra.mxu1 %v7329_v31  ;;  %v9101_v10 = vld [vmem:[#allocation25_spill] sm:$0xff]  ;;  %v9102_v31 = vld [vmem:[#allocation26_spill] sm:$0xff] }
 0x35d   :  { %5201 = vmatprep.subr.bf16.mxu0 %v6928_v58  ;;  %5265 = vmatprep.subr.bf16.mxu1 %v6932_v62  ;;  %v9103_v58 = vld [vmem:[#allocation27_spill] sm:$0xff]  ;;  %v9104_v62 = vld [vmem:[#allocation28_spill] sm:$0xff] }
 0x35f   :  { %1886 = vmatmul.mubr.f32.vlgmr.msra.gmra.mrb[18].mxu0 %v7646_v26  ;;  %1957 = vmatmul.mubr.f32.vlgmr.msra.gmra.mrb[18].mxu1 %v7646_v26  ;;  %v9106_v26 = vld [vmem:[#allocation30_spill] sm:$0xff] }
 0x360   :  { %5203 = vmatpush1.bf16.msra.mxu0 %v6936_v2  ;;  %5267 = vmatpush1.bf16.msra.mxu1 %v6939_v3  ;;  %v9107_v2 = vld [vmem:[#allocation31_spill] sm:$0xff]  ;;  %v9108_v3 = vld [vmem:[#allocation32_spill] sm:$0xff] }
 0x361   :  { %5205 = vmatprep.subr.bf16.mxu0 %v6941_v4  ;;  %5269 = vmatprep.subr.bf16.mxu1 %v9099_v36  ;;  %v9109_v4 = vld [vmem:[#allocation33_spill] sm:$0xff]  ;;  %v9110_v36 = vld [vmem:[#allocation34_spill] sm:$0xff] }
 0x364   :  { %5207 = vmatpush1.bf16.msra.mxu0 %v9100_v54  ;;  %5271 = vmatpush1.bf16.msra.mxu1 %v9101_v10  ;;  %v9111_v54 = vld [vmem:[#allocation35_spill] sm:$0xff]  ;;  %v9112_v10 = vld [vmem:[#allocation36_spill] sm:$0xff] }
 0x365   :  { %5209 = vmatprep.subr.bf16.mxu0 %v9102_v31  ;;  %5273 = vmatprep.subr.bf16.mxu1 %v9103_v58  ;;  %v9113_v31 = vld [vmem:[#allocation37_spill] sm:$0xff]  ;;  %v9114_v58 = vld [vmem:[#allocation38_spill] sm:$0xff] }
 0x368   :  { %5211 = vmatpush1.bf16.msra.mxu0 %v9104_v62  ;;  %5275 = vmatpush1.bf16.msra.mxu1 %v9105_v29  ;;  %v9115_v62 = vld [vmem:[#allocation39_spill] sm:$0xff]  ;;  %v9116_v29 = vld [vmem:[#allocation40_spill] sm:$0xff] }
 0x369   :  { %5213 = vmatprep.subr.bf16.mxu0 %v9106_v26  ;;  %5277 = vmatprep.subr.bf16.mxu1 %v9107_v2  ;;  %v9117_v26 = vld [vmem:[#allocation41_spill] sm:$0xff]  ;;  %v9118_v2 = vld [vmem:[#allocation42_spill] sm:$0xff] }
 0x36c   :  { %5215 = vmatpush1.bf16.msra.mxu0 %v9108_v3  ;;  %5279 = vmatpush1.bf16.msra.mxu1 %v9109_v4  ;;  %v9119_v3 = vld [vmem:[#allocation43_spill] sm:$0xff]  ;;  %v9120_v4 = vld [vmem:[#allocation44_spill] sm:$0xff] }
 0x36d   :  { %5217 = vmatprep.subr.bf16.mxu0 %v9110_v36  ;;  %5281 = vmatprep.subr.bf16.mxu1 %v9111_v54  ;;  %v9121_v36 = vld [vmem:[#allocation45_spill] sm:$0xff]  ;;  %v9122_v54 = vld [vmem:[#allocation46_spill] sm:$0xff] }
 0x370   :  { %5219 = vmatpush1.bf16.msra.mxu0 %v9112_v10  ;;  %5283 = vmatpush1.bf16.msra.mxu1 %v9113_v31  ;;  %v9123_v10 = vld [vmem:[#allocation47_spill] sm:$0xff]  ;;  %v9124_v31 = vld [vmem:[#allocation48_spill] sm:$0xff] }
 0x371   :  { %5221 = vmatprep.subr.bf16.mxu0 %v9114_v58  ;;  %5285 = vmatprep.subr.bf16.mxu1 %v9115_v62  ;;  %v9125_v58 = vld [vmem:[#allocation49_spill] sm:$0xff]  ;;  %v9126_v62 = vld [vmem:[#allocation50_spill] sm:$0xff] }
 0x374   :  { %5223 = vmatpush1.bf16.msra.mxu0 %v9116_v29  ;;  %5287 = vmatpush1.bf16.msra.mxu1 %v9117_v26  ;;  %v9127_v29 = vld [vmem:[#allocation51_spill] sm:$0xff]  ;;  %v9128_v26 = vld [vmem:[#allocation52_spill] sm:$0xff] }
 0x375   :  { %5225 = vmatprep.subr.bf16.mxu0 %v9118_v2  ;;  %5289 = vmatprep.subr.bf16.mxu1 %v9119_v3  ;;  %v9129_v2 = vld [vmem:[#allocation53_spill] sm:$0xff]  ;;  %v9130_v3 = vld [vmem:[#allocation54_spill] sm:$0xff] }
 0x378   :  { %5227 = vmatpush1.bf16.msra.mxu0 %v9120_v4  ;;  %5291 = vmatpush1.bf16.msra.mxu1 %v9121_v36  ;;  %v9131_v4 = vld [vmem:[#allocation55_spill] sm:$0xff]  ;;  %v9132_v36 = vld [vmem:[#allocation56_spill] sm:$0xff] }
 0x379   :  { %5229 = vmatprep.subr.bf16.mxu0 %v9122_v54  ;;  %5293 = vmatprep.subr.bf16.mxu1 %v9123_v10  ;;  %v9133_v54 = vld [vmem:[#allocation57_spill] sm:$0xff]  ;;  %v9134_v10 = vld [vmem:[#allocation58_spill] sm:$0xff] }
 0x37c   :  { %5231 = vmatpush1.bf16.msra.mxu0 %v9124_v31  ;;  %5295 = vmatpush1.bf16.msra.mxu1 %v9125_v58  ;;  %v9135_v31 = vld [vmem:[#allocation59_spill] sm:$0xff]  ;;  %v9136_v58 = vld [vmem:[#allocation60_spill] sm:$0xff] }
 0x37d   :  { %5233 = vmatprep.subr.bf16.mxu0 %v9126_v62  ;;  %5297 = vmatprep.subr.bf16.mxu1 %v9127_v29  ;;  %v9137_v62 = vld [vmem:[#allocation61_spill] sm:$0xff]  ;;  %v9138_v29 = vld [vmem:[#allocation62_spill] sm:$0xff] }
 0x380   :  { %5235 = vmatpush1.bf16.msra.mxu0 %v9128_v26  ;;  %5299 = vmatpush1.bf16.msra.mxu1 %v9129_v2  ;;  %v9139_v26 = vld [vmem:[#allocation63_spill] sm:$0xff]  ;;  %v9140_v2 = vld [vmem:[#allocation64_spill] sm:$0xff] }
 0x381   :  { %5237 = vmatprep.subr.bf16.mxu0 %v9130_v3  ;;  %5301 = vmatprep.subr.bf16.mxu1 %v9131_v4  ;;  %v9141_v3 = vld [vmem:[#allocation65_spill] sm:$0xff]  ;;  %v9142_v4 = vld [vmem:[#allocation66_spill] sm:$0xff] }
 0x384   :  { %5239 = vmatpush1.bf16.msra.mxu0 %v9132_v36  ;;  %5303 = vmatpush1.bf16.msra.mxu1 %v9133_v54  ;;  %v9143_v36 = vld [vmem:[#allocation67_spill] sm:$0xff]  ;;  %v9144_v54 = vld [vmem:[#allocation68_spill] sm:$0xff] }
 0x385   :  { %5241 = vmatprep.subr.bf16.mxu0 %v9134_v10  ;;  %5305 = vmatprep.subr.bf16.mxu1 %v9135_v31  ;;  %v9145_v10 = vld [vmem:[#allocation69_spill] sm:$0xff]  ;;  %v9146_v31 = vld [vmem:[#allocation70_spill] sm:$0xff] }
 0x388   :  { %5243 = vmatpush1.bf16.msra.mxu0 %v9136_v58  ;;  %5307 = vmatpush1.bf16.msra.mxu1 %v9137_v62  ;;  %v9147_v58 = vld [vmem:[#allocation71_spill] sm:$0xff]  ;;  %v9148_v62 = vld [vmem:[#allocation72_spill] sm:$0xff] }
 0x389   :  { %5245 = vmatprep.subr.bf16.mxu0 %v9138_v29  ;;  %5309 = vmatprep.subr.bf16.mxu1 %v9139_v26  ;;  %v9149_v29 = vld [vmem:[#allocation73_spill] sm:$0xff]  ;;  %v9150_v26 = vld [vmem:[#allocation74_spill] sm:$0xff] }
 0x38c   :  { %5247 = vmatpush1.bf16.msra.mxu0 %v9140_v2  ;;  %5311 = vmatpush1.bf16.msra.mxu1 %v9141_v3  ;;  %v9151_v2 = vld [vmem:[#allocation75_spill] sm:$0xff]  ;;  %v9152_v3 = vld [vmem:[#allocation76_spill] sm:$0xff] }
 0x38d   :  { %5249 = vmatprep.subr.bf16.mxu0 %v9142_v4  ;;  %5313 = vmatprep.subr.bf16.mxu1 %v9143_v36  ;;  %v9153_v4 = vld [vmem:[#allocation77_spill] sm:$0xff]  ;;  %v9154_v36 = vld [vmem:[#allocation78_spill] sm:$0xff] }
 0x390   :  { %5251 = vmatpush1.bf16.msra.mxu0 %v9144_v54  ;;  %5315 = vmatpush1.bf16.msra.mxu1 %v9145_v10  ;;  %v9155_v54 = vld [vmem:[#allocation79_spill] sm:$0xff]  ;;  %v9156_v10 = vld [vmem:[#allocation80_spill] sm:$0xff] }
 0x391   :  { %5253 = vmatprep.subr.bf16.mxu0 %v9146_v31  ;;  %5317 = vmatprep.subr.bf16.mxu1 %v9147_v58  ;;  %v9157_v31 = vld [vmem:[#allocation81_spill] sm:$0xff]  ;;  %v9158_v58 = vld [vmem:[#allocation82_spill] sm:$0xff] }
 0x394   :  { %5255 = vmatpush1.bf16.msra.mxu0 %v9148_v62  ;;  %5319 = vmatpush1.bf16.msra.mxu1 %v9149_v29  ;;  %v9159_v62 = vld [vmem:[#allocation83_spill] sm:$0xff] }
 0x395   :  { %5257 = vmatprep.subr.bf16.mxu0 %v9150_v26  ;;  %5321 = vmatprep.subr.bf16.mxu1 %v9151_v2 }
 0x398   :  { %5259 = vmatpush1.bf16.msra.mxu0 %v9152_v3  ;;  %5323 = vmatpush1.bf16.msra.mxu1 %v9153_v4 }
 0x399   :  { %5261 = vmatprep.subr.bf16.mxu0 %v9154_v36  ;;  %5325 = vmatprep.subr.bf16.mxu1 %v9155_v54  ;;  %v9160_v54 = vld [vmem:[#allocation146_spill] sm:$0xff] }
 0x39c   :  { %5263 = vmatpush1.bf16.msra.mxu0 %v9156_v10  ;;  %5327 = vmatpush1.bf16.msra.mxu1 %v9157_v31  ;;  %v9162_v10 = vcombine.low %v9160_v54, %v9161_v48 }
 0x39d   :  { %5329 = vmatprep.subr.bf16.mxu0 %v9158_v58  ;;  %5393 = vmatprep.subr.bf16.mxu1 %v9159_v62 }
 0x3f2   :  { %v1745_v29 = vpop.f32.mrb[16].mxu0  ;;  %v1816_v26 = vpop.f32.mrb[16].mxu1 }
 0x3f3   :  { %v1747_v63 = vpop.f32.mrb[17].mxu0  ;;  %v1818_v2 = vpop.f32.mrb[17].mxu1 }
 0x3f4   :  { %v1971_v0 = vcombine.low %v1745_v29, %v1747_v63  ;;  %v1972_v3 = vcombine.low %v1816_v26, %v1818_v2 }
 0x3f6   :  { %v1979_v4 = vrot.slane %v1971_v0, %v7405_v42  ;;  %v1986_v36 = vrot.slane %v1972_v3, %v7405_v42 }
 0x3f8   :  { %v1987_v55 = vcombine.low %v1979_v4, %v1986_v36 }
 0x3fa   :  { %v2007_v46 = vadd.f32 %v1987_v55, %v9162_v10  ;;  %v9163_v10 = vld [vmem:[#allocation152_spill] sm:$0xff] }
 0x3fc   :  { %v2016_v31 = vrot.slane %v2007_v46, 4  ;;  %v4275_v58 = vmul.f32 -1.442695, %v2007_v46  ;;  %v9164_v46 = vld [vmem:[#allocation153_spill] sm:$0xff] }
 0x3fe   :  { %v4276_v47 = vmul.f32 -1.442695, %v2016_v31  ;;  %v9165_v31 = vcombine.low %v9163_v10, %v9164_v46 }
 0x400   :  { %6589 = vpow2.f32 %v4276_v47 }
 0x401   :  { %6591 = vpow2.f32 %v4275_v58 }
 0x40a   :  { %v6590_v35 = vpop.eup %6589 }
 0x40b   :  { %v6592_v2 = vpop.eup %6591  ;;  %v2021_v26 = vadd.f32 1.0, %v6590_v35 }
 0x40c   :  { %v2012_v36 = vadd.f32 1.0, %v6592_v2 }
 0x40d   :  { %6593 = vrcp.f32 %v2021_v26 }
 0x40e   :  { %6595 = vrcp.f32 %v2012_v36  ;;  %v9167_v36 = vld [vmem:[#allocation108_spill] sm:$0xff] }
 0x417   :  { %v6594_v54 = vpop.eup %6593 }
 0x432   :  { %v1887_v62 = vpop.f32.mrb[18].mxu0  ;;  %v1958_v7 = vpop.f32.mrb[18].mxu1 }
 0x433   :  { %v1889_v59 = vpop.f32.mrb[19].mxu0  ;;  %v1960_v63 = vpop.f32.mrb[19].mxu1 }
 0x434   :  { %v1988_v29 = vcombine.low %v1887_v62, %v1889_v59  ;;  %v1989_v0 = vcombine.low %v1958_v7, %v1960_v63  ;;  %v6596_v62 = vpop.eup %6595  ;;  %v2034_v59 = vmul.f32 %v6594_v54, %v7642_v1  ;;  %v9166_v1 = vld [vmem:[#allocation107_spill] sm:$0xff] }
 0x436   :  { %v1996_v3 = vrot.slane %v1988_v29, %v7405_v42  ;;  %v2003_v4 = vrot.slane %v1989_v0, %v7405_v42 }
 0x438   :  { %v2004_v55 = vcombine.low %v1996_v3, %v2003_v4 }
 0x43a   :  { %v2008_v58 = vadd.f32 %v2004_v55, %v9165_v31  ;;  %v9168_v55 = vld [vmem:[#allocation109_spill] sm:$0xff]  ;;  %v9169_v31 = vld [vmem:[#allocation110_spill] sm:$0xff] }
 0x43c   :  { %6597 = vtanh.f32 %v2008_v58  ;;  %v2026_v47 = vrot.slane %v2008_v58, 4  ;;  %v9170_v58 = vld [vmem:[#allocation111_spill] sm:$0xff] }
 0x43e   :  { %v4277_v48 = vmul.f32 -1.442695, %v2026_v47  ;;  %v9171_v47 = vld [vmem:[#allocation113_spill] sm:$0xff] }
 0x440   :  { %6599 = vpow2.f32 %v4277_v48 }
 0x446   :  { %v6598_v7 = vpop.eup %6597 }
 0x447   :  { %v2035_v35 = vmul.f32 %v6598_v7, %v6596_v62  ;;  %v9172_v62 = vld [vmem:[#allocation132_spill] sm:$0xff]  ;;  %v9173_v7 = vld [vmem:[#allocation133_spill] sm:$0xff] }
 0x449   :  { %v7793_v63 = vadd.f32 %v2035_v35, %v2034_v59  ;;  %v9174_v59 = vld [vmem:[#allocation134_spill] sm:$0xff]  ;;  %v9175_v35 = vld [vmem:[#allocation135_spill] sm:$0xff] }
 0x44a   :  { %v6600_v2 = vpop.eup %6599 }
 0x44b   :  { %v2031_v29 = vadd.f32 1.0, %v6600_v2  ;;  %6601 = vtanh.f32 %v7793_v63  ;;  %v9176_v2 = vld [vmem:[#allocation136_spill] sm:$0xff] }
 0x44d   :  { %6603 = vrcp.f32 %v2031_v29  ;;  %v9177_v29 = vld [vmem:[#allocation137_spill] sm:$0xff] }
 0x455   :  { %v6602_v0 = vpop.eup %6601 }
 0x457   :  { %v6604_v26 = vpop.eup %6603 }
 0x458   :  { %v2038_v3 = vmul.f32 %v6604_v26, %v6602_v0  ;;  %v9178_v0 = vld [vmem:[#allocation138_spill] sm:$0xff]  ;;  %v9179_v26 = vld [vmem:[#allocation139_spill] sm:$0xff] }
 0x45a   :  { %2040 = vst [vmem:[#allocation3 + $0x4] sm:$0x3] %v2038_v3  ;;  %v2042_v4 = vrot.slane %v2038_v3, 2  ;;  %v7797_v48 = vrot.slane %v2038_v3, %v7405_v42  ;;  %v9180_v3 = vld [vmem:[#allocation140_spill] sm:$0xff] }
 0x45c   :  { %2045 = vst [vmem:[#allocation4 + $0xa] sm:$0x3] %v2042_v4  ;;  %v2056_v54 = vcombine.high %v7797_v48, %v7797_v48  ;;  %v9181_v4 = vld [vmem:[#allocation141_spill] sm:$0xff] }
 0x45e   :  { %2123 = vmatprep.mubr.f32.mxu0 %v2056_v54  ;;  %2194 = vmatprep.mubr.f32.mxu1 %v2056_v54 }
 0x45f   :  { %2124 = vmatmul.mubr.f32.vlgmr.msra.gmra.mrb[20].mxu0 %v7797_v48  ;;  %2195 = vmatmul.mubr.f32.vlgmr.msra.gmra.mrb[20].mxu1 %v7797_v48 }
 0x460   :  { %5331 = vmatpush1.bf16.msra.mxu0 %v8975_v18  ;;  %5395 = vmatpush1.bf16.msra.mxu1 %v8976_v49 }
 0x461   :  { %2265 = vmatprep.mubr.f32.mxu0 %v2056_v54  ;;  %2336 = vmatprep.mubr.f32.mxu1 %v2056_v54  ;;  %v9182_v54 = vld [vmem:[#allocation142_spill] sm:$0xff] }
 0x462   :  { %5333 = vmatprep.subr.bf16.mxu0 %v8977_v60  ;;  %5397 = vmatprep.subr.bf16.mxu1 %v8978_v22 }
 0x464   :  { %5335 = vmatpush1.bf16.msra.mxu0 %v8979_v24  ;;  %5399 = vmatpush1.bf16.msra.mxu1 %v8980_v6 }
 0x465   :  { %5337 = vmatprep.subr.bf16.mxu0 %v8981_v53  ;;  %5401 = vmatprep.subr.bf16.mxu1 %v8982_v41 }
 0x468   :  { %5339 = vmatpush1.bf16.msra.mxu0 %v8983_v9  ;;  %5403 = vmatpush1.bf16.msra.mxu1 %v8984_v12 }
 0x469   :  { %5341 = vmatprep.subr.bf16.mxu0 %v8985_v30  ;;  %5405 = vmatprep.subr.bf16.mxu1 %v8986_v61 }
 0x46c   :  { %5343 = vmatpush1.bf16.msra.mxu0 %v8987_v5  ;;  %5407 = vmatpush1.bf16.msra.mxu1 %v9072_v21 }
 0x46d   :  { %5345 = vmatprep.subr.bf16.mxu0 %v9073_v38  ;;  %5409 = vmatprep.subr.bf16.mxu1 %v9074_v39 }
 0x470   :  { %5347 = vmatpush1.bf16.msra.mxu0 %v9075_v40  ;;  %5411 = vmatpush1.bf16.msra.mxu1 %v9076_v20 }
 0x471   :  { %5349 = vmatprep.subr.bf16.mxu0 %v9077_v16  ;;  %5413 = vmatprep.subr.bf16.mxu1 %v9078_v44 }
 0x474   :  { %5351 = vmatpush1.bf16.msra.mxu0 %v9079_v50  ;;  %5415 = vmatpush1.bf16.msra.mxu1 %v9080_v51 }
 0x475   :  { %5353 = vmatprep.subr.bf16.mxu0 %v9081_v52  ;;  %5417 = vmatprep.subr.bf16.mxu1 %v9166_v1 }
 0x478   :  { %5355 = vmatpush1.bf16.msra.mxu0 %v9167_v36  ;;  %5419 = vmatpush1.bf16.msra.mxu1 %v9168_v55 }
 0x479   :  { %5357 = vmatprep.subr.bf16.mxu0 %v9169_v31  ;;  %5421 = vmatprep.subr.bf16.mxu1 %v9170_v58 }
 0x47c   :  { %5359 = vmatpush1.bf16.msra.mxu0 %v9087_v27  ;;  %5423 = vmatpush1.bf16.msra.mxu1 %v9171_v47 }
 0x47d   :  { %5361 = vmatprep.subr.bf16.mxu0 %v9089_v17  ;;  %5425 = vmatprep.subr.bf16.mxu1 %v9090_v28 }
 0x480   :  { %5363 = vmatpush1.bf16.msra.mxu0 %v9091_v32  ;;  %5427 = vmatpush1.bf16.msra.mxu1 %v9092_v11 }
 0x481   :  { %5365 = vmatprep.subr.bf16.mxu0 %v9093_v8  ;;  %5429 = vmatprep.subr.bf16.mxu1 %v9094_v15 }
 0x484   :  { %5367 = vmatpush1.bf16.msra.mxu0 %v9095_v14  ;;  %5431 = vmatpush1.bf16.msra.mxu1 %v9096_v56 }
 0x485   :  { %5369 = vmatprep.subr.bf16.mxu0 %v9097_v37  ;;  %5433 = vmatprep.subr.bf16.mxu1 %v9014_v57 }
 0x488   :  { %5371 = vmatpush1.bf16.msra.mxu0 %v9098_v23  ;;  %5435 = vmatpush1.bf16.msra.mxu1 %v9016_v33 }
 0x489   :  { %5373 = vmatprep.subr.bf16.mxu0 %v9017_v45  ;;  %5437 = vmatprep.subr.bf16.mxu1 %v9018_v43 }
 0x48c   :  { %5375 = vmatpush1.bf16.msra.mxu0 %v9019_v34  ;;  %5439 = vmatpush1.bf16.msra.mxu1 %v9020_v13  ;;  %v9253_v13 = vld [vmem:[#allocation147_spill] sm:$0xff] }
 0x48d   :  { %5377 = vmatprep.subr.bf16.mxu0 %v9021_v25  ;;  %5441 = vmatprep.subr.bf16.mxu1 %v9022_v19 }
 0x490   :  { %5379 = vmatpush1.bf16.msra.mxu0 %v9172_v62  ;;  %5443 = vmatpush1.bf16.msra.mxu1 %v9173_v7  ;;  %v9183_v62 = vld [vmem:[#allocation143_spill] sm:$0xff]  ;;  %v9184_v7 = vld [vmem:[#allocation144_spill] sm:$0xff] }
 0x491   :  { %5381 = vmatprep.subr.bf16.mxu0 %v9174_v59  ;;  %5445 = vmatprep.subr.bf16.mxu1 %v9175_v35  ;;  %v9185_v59 = vld [vmem:[#allocation145_spill] sm:$0xff]  ;;  %v9186_v35 = vld [vmem:[#allocation18_spill] sm:$0xff] }
 0x494   :  { %5383 = vmatpush1.bf16.msra.mxu0 %v9176_v2  ;;  %5447 = vmatpush1.bf16.msra.mxu1 %v9177_v29  ;;  %v9187_v2 = vld [vmem:[#allocation19_spill] sm:$0xff] }
 0x495   :  { %5385 = vmatprep.subr.bf16.mxu0 %v9178_v0  ;;  %5449 = vmatprep.subr.bf16.mxu1 %v9179_v26  ;;  %v9188_v26 = vld [vmem:[#allocation20_spill] sm:$0xff]  ;;  %v9197_v0 = vld [vmem:[#allocation29_spill] sm:$0xff] }
 0x498   :  { %5387 = vmatpush1.bf16.msra.mxu0 %v9180_v3  ;;  %5451 = vmatpush1.bf16.msra.mxu1 %v9181_v4  ;;  %v9189_v3 = vld [vmem:[#allocation21_spill] sm:$0xff]  ;;  %v9190_v4 = vld [vmem:[#allocation22_spill] sm:$0xff] }
 0x499   :  { %5389 = vmatprep.subr.bf16.mxu0 %v9182_v54  ;;  %5453 = vmatprep.subr.bf16.mxu1 %v9183_v62  ;;  %v9191_v54 = vld [vmem:[#allocation23_spill] sm:$0xff]  ;;  %v9192_v62 = vld [vmem:[#allocation24_spill] sm:$0xff] }
 0x49c   :  { %5391 = vmatpush1.bf16.msra.mxu0 %v9184_v7  ;;  %5455 = vmatpush1.bf16.msra.mxu1 %v9185_v59  ;;  %v9193_v7 = vld [vmem:[#allocation25_spill] sm:$0xff]  ;;  %v9194_v59 = vld [vmem:[#allocation26_spill] sm:$0xff] }
 0x49d   :  { %5457 = vmatprep.subr.bf16.mxu0 %v9186_v35  ;;  %5521 = vmatprep.subr.bf16.mxu1 %v9187_v2  ;;  %v9195_v35 = vld [vmem:[#allocation27_spill] sm:$0xff]  ;;  %v9196_v2 = vld [vmem:[#allocation28_spill] sm:$0xff] }
 0x49f   :  { %2266 = vmatmul.mubr.f32.vlgmr.msra.gmra.mrb[22].mxu0 %v7797_v48  ;;  %2337 = vmatmul.mubr.f32.vlgmr.msra.gmra.mrb[22].mxu1 %v7797_v48  ;;  %v9198_v48 = vld [vmem:[#allocation30_spill] sm:$0xff] }
 0x4a0   :  { %5459 = vmatpush1.bf16.msra.mxu0 %v9188_v26  ;;  %5523 = vmatpush1.bf16.msra.mxu1 %v9189_v3  ;;  %v9199_v26 = vld [vmem:[#allocation31_spill] sm:$0xff]  ;;  %v9200_v3 = vld [vmem:[#allocation32_spill] sm:$0xff] }
 0x4a1   :  { %5461 = vmatprep.subr.bf16.mxu0 %v9190_v4  ;;  %5525 = vmatprep.subr.bf16.mxu1 %v9191_v54  ;;  %v9201_v4 = vld [vmem:[#allocation33_spill] sm:$0xff]  ;;  %v9202_v54 = vld [vmem:[#allocation34_spill] sm:$0xff] }
 0x4a4   :  { %5463 = vmatpush1.bf16.msra.mxu0 %v9192_v62  ;;  %5527 = vmatpush1.bf16.msra.mxu1 %v9193_v7  ;;  %v9203_v62 = vld [vmem:[#allocation35_spill] sm:$0xff]  ;;  %v9204_v7 = vld [vmem:[#allocation36_spill] sm:$0xff] }
 0x4a5   :  { %5465 = vmatprep.subr.bf16.mxu0 %v9194_v59  ;;  %5529 = vmatprep.subr.bf16.mxu1 %v9195_v35  ;;  %v9205_v59 = vld [vmem:[#allocation37_spill] sm:$0xff]  ;;  %v9206_v35 = vld [vmem:[#allocation38_spill] sm:$0xff] }
 0x4a8   :  { %5467 = vmatpush1.bf16.msra.mxu0 %v9196_v2  ;;  %5531 = vmatpush1.bf16.msra.mxu1 %v9197_v0  ;;  %v9207_v2 = vld [vmem:[#allocation39_spill] sm:$0xff]  ;;  %v9208_v0 = vld [vmem:[#allocation40_spill] sm:$0xff] }
 0x4a9   :  { %5469 = vmatprep.subr.bf16.mxu0 %v9198_v48  ;;  %5533 = vmatprep.subr.bf16.mxu1 %v9199_v26  ;;  %v9209_v48 = vld [vmem:[#allocation41_spill] sm:$0xff]  ;;  %v9210_v26 = vld [vmem:[#allocation42_spill] sm:$0xff] }
 0x4ac   :  { %5471 = vmatpush1.bf16.msra.mxu0 %v9200_v3  ;;  %5535 = vmatpush1.bf16.msra.mxu1 %v9201_v4  ;;  %v9211_v3 = vld [vmem:[#allocation43_spill] sm:$0xff]  ;;  %v9212_v4 = vld [vmem:[#allocation44_spill] sm:$0xff] }
 0x4ad   :  { %5473 = vmatprep.subr.bf16.mxu0 %v9202_v54  ;;  %5537 = vmatprep.subr.bf16.mxu1 %v9203_v62  ;;  %v9213_v54 = vld [vmem:[#allocation45_spill] sm:$0xff]  ;;  %v9214_v62 = vld [vmem:[#allocation46_spill] sm:$0xff] }
 0x4b0   :  { %5475 = vmatpush1.bf16.msra.mxu0 %v9204_v7  ;;  %5539 = vmatpush1.bf16.msra.mxu1 %v9205_v59  ;;  %v9215_v7 = vld [vmem:[#allocation47_spill] sm:$0xff]  ;;  %v9216_v59 = vld [vmem:[#allocation48_spill] sm:$0xff] }
 0x4b1   :  { %5477 = vmatprep.subr.bf16.mxu0 %v9206_v35  ;;  %5541 = vmatprep.subr.bf16.mxu1 %v9207_v2  ;;  %v9217_v35 = vld [vmem:[#allocation49_spill] sm:$0xff]  ;;  %v9218_v2 = vld [vmem:[#allocation50_spill] sm:$0xff] }
 0x4b4   :  { %5479 = vmatpush1.bf16.msra.mxu0 %v9208_v0  ;;  %5543 = vmatpush1.bf16.msra.mxu1 %v9209_v48  ;;  %v9219_v0 = vld [vmem:[#allocation51_spill] sm:$0xff]  ;;  %v9220_v48 = vld [vmem:[#allocation52_spill] sm:$0xff] }
 0x4b5   :  { %5481 = vmatprep.subr.bf16.mxu0 %v9210_v26  ;;  %5545 = vmatprep.subr.bf16.mxu1 %v9211_v3  ;;  %v9221_v26 = vld [vmem:[#allocation53_spill] sm:$0xff]  ;;  %v9222_v3 = vld [vmem:[#allocation54_spill] sm:$0xff] }
 0x4b8   :  { %5483 = vmatpush1.bf16.msra.mxu0 %v9212_v4  ;;  %5547 = vmatpush1.bf16.msra.mxu1 %v9213_v54  ;;  %v9223_v4 = vld [vmem:[#allocation55_spill] sm:$0xff]  ;;  %v9224_v54 = vld [vmem:[#allocation56_spill] sm:$0xff] }
 0x4b9   :  { %5485 = vmatprep.subr.bf16.mxu0 %v9214_v62  ;;  %5549 = vmatprep.subr.bf16.mxu1 %v9215_v7  ;;  %v9225_v62 = vld [vmem:[#allocation57_spill] sm:$0xff]  ;;  %v9226_v7 = vld [vmem:[#allocation58_spill] sm:$0xff] }
 0x4bc   :  { %5487 = vmatpush1.bf16.msra.mxu0 %v9216_v59  ;;  %5551 = vmatpush1.bf16.msra.mxu1 %v9217_v35  ;;  %v9227_v59 = vld [vmem:[#allocation59_spill] sm:$0xff]  ;;  %v9228_v35 = vld [vmem:[#allocation60_spill] sm:$0xff] }
 0x4bd   :  { %5489 = vmatprep.subr.bf16.mxu0 %v9218_v2  ;;  %5553 = vmatprep.subr.bf16.mxu1 %v9219_v0  ;;  %v9229_v2 = vld [vmem:[#allocation61_spill] sm:$0xff]  ;;  %v9230_v0 = vld [vmem:[#allocation62_spill] sm:$0xff] }
 0x4c0   :  { %5491 = vmatpush1.bf16.msra.mxu0 %v9220_v48  ;;  %5555 = vmatpush1.bf16.msra.mxu1 %v9221_v26  ;;  %v9231_v48 = vld [vmem:[#allocation63_spill] sm:$0xff]  ;;  %v9232_v26 = vld [vmem:[#allocation64_spill] sm:$0xff] }
 0x4c1   :  { %5493 = vmatprep.subr.bf16.mxu0 %v9222_v3  ;;  %5557 = vmatprep.subr.bf16.mxu1 %v9223_v4  ;;  %v9233_v3 = vld [vmem:[#allocation65_spill] sm:$0xff]  ;;  %v9234_v4 = vld [vmem:[#allocation66_spill] sm:$0xff] }
 0x4c4   :  { %5495 = vmatpush1.bf16.msra.mxu0 %v9224_v54  ;;  %5559 = vmatpush1.bf16.msra.mxu1 %v9225_v62  ;;  %v9235_v54 = vld [vmem:[#allocation67_spill] sm:$0xff]  ;;  %v9236_v62 = vld [vmem:[#allocation68_spill] sm:$0xff] }
 0x4c5   :  { %5497 = vmatprep.subr.bf16.mxu0 %v9226_v7  ;;  %5561 = vmatprep.subr.bf16.mxu1 %v9227_v59  ;;  %v9237_v7 = vld [vmem:[#allocation69_spill] sm:$0xff]  ;;  %v9238_v59 = vld [vmem:[#allocation70_spill] sm:$0xff] }
 0x4c8   :  { %5499 = vmatpush1.bf16.msra.mxu0 %v9228_v35  ;;  %5563 = vmatpush1.bf16.msra.mxu1 %v9229_v2  ;;  %v9239_v35 = vld [vmem:[#allocation71_spill] sm:$0xff]  ;;  %v9240_v2 = vld [vmem:[#allocation72_spill] sm:$0xff] }
 0x4c9   :  { %5501 = vmatprep.subr.bf16.mxu0 %v9230_v0  ;;  %5565 = vmatprep.subr.bf16.mxu1 %v9231_v48  ;;  %v9241_v0 = vld [vmem:[#allocation73_spill] sm:$0xff]  ;;  %v9242_v48 = vld [vmem:[#allocation74_spill] sm:$0xff] }
 0x4cc   :  { %5503 = vmatpush1.bf16.msra.mxu0 %v9232_v26  ;;  %5567 = vmatpush1.bf16.msra.mxu1 %v9233_v3  ;;  %v9243_v26 = vld [vmem:[#allocation75_spill] sm:$0xff]  ;;  %v9244_v3 = vld [vmem:[#allocation76_spill] sm:$0xff] }
 0x4cd   :  { %5505 = vmatprep.subr.bf16.mxu0 %v9234_v4  ;;  %5569 = vmatprep.subr.bf16.mxu1 %v9235_v54  ;;  %v9245_v4 = vld [vmem:[#allocation77_spill] sm:$0xff]  ;;  %v9246_v54 = vld [vmem:[#allocation78_spill] sm:$0xff] }
 0x4d0   :  { %5507 = vmatpush1.bf16.msra.mxu0 %v9236_v62  ;;  %5571 = vmatpush1.bf16.msra.mxu1 %v9237_v7  ;;  %v9247_v62 = vld [vmem:[#allocation79_spill] sm:$0xff]  ;;  %v9248_v7 = vld [vmem:[#allocation80_spill] sm:$0xff] }
 0x4d1   :  { %5509 = vmatprep.subr.bf16.mxu0 %v9238_v59  ;;  %5573 = vmatprep.subr.bf16.mxu1 %v9239_v35  ;;  %v9249_v59 = vld [vmem:[#allocation81_spill] sm:$0xff]  ;;  %v9250_v35 = vld [vmem:[#allocation82_spill] sm:$0xff] }
 0x4d4   :  { %5511 = vmatpush1.bf16.msra.mxu0 %v9240_v2  ;;  %5575 = vmatpush1.bf16.msra.mxu1 %v9241_v0  ;;  %v9251_v2 = vld [vmem:[#allocation83_spill] sm:$0xff] }
 0x4d5   :  { %5513 = vmatprep.subr.bf16.mxu0 %v9242_v48  ;;  %5577 = vmatprep.subr.bf16.mxu1 %v9243_v26 }
 0x4d8   :  { %5515 = vmatpush1.bf16.msra.mxu0 %v9244_v3  ;;  %5579 = vmatpush1.bf16.msra.mxu1 %v9245_v4 }
 0x4d9   :  { %5517 = vmatprep.subr.bf16.mxu0 %v9246_v54  ;;  %5581 = vmatprep.subr.bf16.mxu1 %v9247_v62  ;;  %v9252_v62 = vld [vmem:[#allocation146_spill] sm:$0xff] }
 0x4dc   :  { %5519 = vmatpush1.bf16.msra.mxu0 %v9248_v7  ;;  %5583 = vmatpush1.bf16.msra.mxu1 %v9249_v59  ;;  %v9254_v7 = vcombine.high %v9252_v62, %v9253_v13 }
 0x4dd   :  { %5585 = vmatprep.subr.bf16.mxu0 %v9250_v35  ;;  %5649 = vmatprep.subr.bf16.mxu1 %v9251_v2 }
 0x532   :  { %v2125_v0 = vpop.f32.mrb[20].mxu0  ;;  %v2196_v48 = vpop.f32.mrb[20].mxu1 }
 0x533   :  { %v2127_v29 = vpop.f32.mrb[21].mxu0  ;;  %v2198_v26 = vpop.f32.mrb[21].mxu1 }
 0x534   :  { %v2351_v19 = vcombine.low %v2125_v0, %v2127_v29  ;;  %v2352_v3 = vcombine.low %v2196_v48, %v2198_v26 }
 0x536   :  { %v2359_v4 = vrot.slane %v2351_v19, %v7405_v42  ;;  %v2366_v54 = vrot.slane %v2352_v3, %v7405_v42 }
 0x538   :  { %v2367_v25 = vcombine.low %v2359_v4, %v2366_v54 }
 0x53a   :  { %v2387_v34 = vadd.f32 %v2367_v25, %v9254_v7 }
 0x53c   :  { %v2396_v59 = vrot.slane %v2387_v34, 4  ;;  %v4278_v35 = vmul.f32 -1.442695, %v2387_v34 }
 0x53e   :  { %v4279_v43 = vmul.f32 -1.442695, %v2396_v59 }
 0x540   :  { %6605 = vpow2.f32 %v4279_v43  ;;  %v9255_v43 = vcombine.high %v9163_v10, %v9164_v46 }
 0x541   :  { %6607 = vpow2.f32 %v4278_v35 }
 0x54a   :  { %v6606_v33 = vpop.eup %6605 }
 0x54b   :  { %v6608_v0 = vpop.eup %6607  ;;  %v2401_v48 = vadd.f32 1.0, %v6606_v33 }
 0x54c   :  { %v2392_v13 = vadd.f32 1.0, %v6608_v0 }
 0x54d   :  { %6609 = vrcp.f32 %v2401_v48  ;;  %v9256_v48 = vld [vmem:[#allocation124_spill] sm:$0xff] }
 0x54e   :  { %6611 = vrcp.f32 %v2392_v13  ;;  %v9259_v13 = vld [vmem:[#allocation127_spill] sm:$0xff] }
 0x557   :  { %v6610_v59 = vpop.eup %6609 }
 0x558   :  { %v2414_v33 = vmul.f32 %v6610_v59, %v7793_v63  ;;  %v9265_v59 = vld [vmem:[#allocation133_spill] sm:$0xff] }
 0x572   :  { %v2267_v2 = vpop.f32.mrb[22].mxu0  ;;  %v2338_v45 = vpop.f32.mrb[22].mxu1 }
 0x573   :  { %v2269_v23 = vpop.f32.mrb[23].mxu0  ;;  %v2340_v29 = vpop.f32.mrb[23].mxu1 }
 0x574   :  { %v2368_v26 = vcombine.low %v2267_v2, %v2269_v23  ;;  %v2369_v19 = vcombine.low %v2338_v45, %v2340_v29  ;;  %v6612_v23 = vpop.eup %6611 }
 0x576   :  { %v2376_v3 = vrot.slane %v2368_v26, %v7405_v42  ;;  %v2383_v4 = vrot.slane %v2369_v19, %v7405_v42 }
 0x578   :  { %v2384_v25 = vcombine.low %v2376_v3, %v2383_v4  ;;  %v9257_v3 = vld [vmem:[#allocation125_spill] sm:$0xff]  ;;  %v9258_v4 = vld [vmem:[#allocation126_spill] sm:$0xff] }
 0x57a   :  { %v2388_v34 = vadd.f32 %v2384_v25, %v9255_v43  ;;  %v9260_v25 = vld [vmem:[#allocation128_spill] sm:$0xff]  ;;  %v9261_v43 = vld [vmem:[#allocation129_spill] sm:$0xff] }
 0x57c   :  { %6613 = vtanh.f32 %v2388_v34  ;;  %v2406_v62 = vrot.slane %v2388_v34, 4  ;;  %v9262_v34 = vld [vmem:[#allocation130_spill] sm:$0xff] }
 0x57e   :  { %v4280_v7 = vmul.f32 -1.442695, %v2406_v62  ;;  %v9263_v62 = vld [vmem:[#allocation131_spill] sm:$0xff] }
 0x580   :  { %6615 = vpow2.f32 %v4280_v7  ;;  %v9264_v7 = vld [vmem:[#allocation132_spill] sm:$0xff] }
 0x586   :  { %v6614_v45 = vpop.eup %6613 }
 0x587   :  { %v2415_v35 = vmul.f32 %v6614_v45, %v6612_v23  ;;  %v9266_v23 = vld [vmem:[#allocation134_spill] sm:$0xff]  ;;  %v9267_v45 = vld [vmem:[#allocation135_spill] sm:$0xff] }
 0x589   :  { %v7944_v2 = vadd.f32 %v2415_v35, %v2414_v33  ;;  %v9268_v33 = vld [vmem:[#allocation136_spill] sm:$0xff]  ;;  %v9269_v35 = vld [vmem:[#allocation137_spill] sm:$0xff] }
 0x58a   :  { %v6616_v54 = vpop.eup %6615 }
 0x58b   :  { %v2411_v29 = vadd.f32 1.0, %v6616_v54  ;;  %6617 = vtanh.f32 %v7944_v2  ;;  %v9270_v54 = vld [vmem:[#allocation138_spill] sm:$0xff] }
 0x58d   :  { %6619 = vrcp.f32 %v2411_v29  ;;  %v9271_v29 = vld [vmem:[#allocation139_spill] sm:$0xff] }
 0x595   :  { %v6618_v10 = vpop.eup %6617 }
 0x597   :  { %v6620_v46 = vpop.eup %6619 }
 0x598   :  { %v2418_v0 = vmul.f32 %v6620_v46, %v6618_v10  ;;  %v9272_v10 = vld [vmem:[#allocation140_spill] sm:$0xff]  ;;  %v9273_v46 = vld [vmem:[#allocation141_spill] sm:$0xff] }
 0x59a   :  { %2420 = vst [vmem:[#allocation3 + $0x6] sm:$0x3] %v2418_v0  ;;  %v2422_v26 = vrot.slane %v2418_v0, 2  ;;  %v7948_v19 = vrot.slane %v2418_v0, %v7405_v42  ;;  %v9274_v0 = vld [vmem:[#allocation142_spill] sm:$0xff] }
 0x59c   :  { %2425 = vst [vmem:[#allocation4 + $0x8] sm:$0x3] %v2422_v26  ;;  %v2436_v63 = vcombine.high %v7948_v19, %v7948_v19  ;;  %v9275_v26 = vld [vmem:[#allocation143_spill] sm:$0xff] }
 0x59e   :  { %2503 = vmatprep.mubr.f32.mxu0 %v2436_v63  ;;  %2574 = vmatprep.mubr.f32.mxu1 %v2436_v63 }
 0x59f   :  { %2504 = vmatmul.mubr.f32.vlgmr.msra.gmra.mrb[24].mxu0 %v7948_v19  ;;  %2575 = vmatmul.mubr.f32.vlgmr.msra.gmra.mrb[24].mxu1 %v7948_v19 }
 0x5a0   :  { %5587 = vmatpush1.bf16.msra.mxu0 %v8975_v18  ;;  %5651 = vmatpush1.bf16.msra.mxu1 %v8976_v49 }
 0x5a1   :  { %2645 = vmatprep.mubr.f32.mxu0 %v2436_v63  ;;  %2716 = vmatprep.mubr.f32.mxu1 %v2436_v63  ;;  %v9276_v63 = vld [vmem:[#allocation144_spill] sm:$0xff] }
 0x5a2   :  { %5589 = vmatprep.subr.bf16.mxu0 %v8977_v60  ;;  %5653 = vmatprep.subr.bf16.mxu1 %v8978_v22 }
 0x5a4   :  { %5591 = vmatpush1.bf16.msra.mxu0 %v8979_v24  ;;  %5655 = vmatpush1.bf16.msra.mxu1 %v8980_v6 }
 0x5a5   :  { %5593 = vmatprep.subr.bf16.mxu0 %v8981_v53  ;;  %5657 = vmatprep.subr.bf16.mxu1 %v8982_v41 }
 0x5a8   :  { %5595 = vmatpush1.bf16.msra.mxu0 %v8983_v9  ;;  %5659 = vmatpush1.bf16.msra.mxu1 %v8984_v12 }
 0x5a9   :  { %5597 = vmatprep.subr.bf16.mxu0 %v8985_v30  ;;  %5661 = vmatprep.subr.bf16.mxu1 %v8986_v61 }
 0x5ac   :  { %5599 = vmatpush1.bf16.msra.mxu0 %v8987_v5  ;;  %5663 = vmatpush1.bf16.msra.mxu1 %v9072_v21 }
 0x5ad   :  { %5601 = vmatprep.subr.bf16.mxu0 %v9073_v38  ;;  %5665 = vmatprep.subr.bf16.mxu1 %v9074_v39 }
 0x5b0   :  { %5603 = vmatpush1.bf16.msra.mxu0 %v9075_v40  ;;  %5667 = vmatpush1.bf16.msra.mxu1 %v9076_v20 }
 0x5b1   :  { %5605 = vmatprep.subr.bf16.mxu0 %v9077_v16  ;;  %5669 = vmatprep.subr.bf16.mxu1 %v9078_v44 }
 0x5b4   :  { %5607 = vmatpush1.bf16.msra.mxu0 %v9079_v50  ;;  %5671 = vmatpush1.bf16.msra.mxu1 %v9080_v51 }
 0x5b5   :  { %5609 = vmatprep.subr.bf16.mxu0 %v9081_v52  ;;  %5673 = vmatprep.subr.bf16.mxu1 %v9166_v1 }
 0x5b8   :  { %5611 = vmatpush1.bf16.msra.mxu0 %v9167_v36  ;;  %5675 = vmatpush1.bf16.msra.mxu1 %v9168_v55 }
 0x5b9   :  { %5613 = vmatprep.subr.bf16.mxu0 %v9169_v31  ;;  %5677 = vmatprep.subr.bf16.mxu1 %v9170_v58 }
 0x5bc   :  { %5615 = vmatpush1.bf16.msra.mxu0 %v9087_v27  ;;  %5679 = vmatpush1.bf16.msra.mxu1 %v9171_v47 }
 0x5bd   :  { %5617 = vmatprep.subr.bf16.mxu0 %v9089_v17  ;;  %5681 = vmatprep.subr.bf16.mxu1 %v9090_v28 }
 0x5c0   :  { %5619 = vmatpush1.bf16.msra.mxu0 %v9091_v32  ;;  %5683 = vmatpush1.bf16.msra.mxu1 %v9092_v11 }
 0x5c1   :  { %5621 = vmatprep.subr.bf16.mxu0 %v9093_v8  ;;  %5685 = vmatprep.subr.bf16.mxu1 %v9094_v15 }
 0x5c4   :  { %5623 = vmatpush1.bf16.msra.mxu0 %v9095_v14  ;;  %5687 = vmatpush1.bf16.msra.mxu1 %v9096_v56 }
 0x5c5   :  { %5625 = vmatprep.subr.bf16.mxu0 %v9097_v37  ;;  %5689 = vmatprep.subr.bf16.mxu1 %v9014_v57 }
 0x5c8   :  { %5627 = vmatpush1.bf16.msra.mxu0 %v9256_v48  ;;  %5691 = vmatpush1.bf16.msra.mxu1 %v9257_v3 }
 0x5c9   :  { %5629 = vmatprep.subr.bf16.mxu0 %v9258_v4  ;;  %5693 = vmatprep.subr.bf16.mxu1 %v9259_v13 }
 0x5cc   :  { %5631 = vmatpush1.bf16.msra.mxu0 %v9260_v25  ;;  %5695 = vmatpush1.bf16.msra.mxu1 %v9261_v43 }
 0x5cd   :  { %5633 = vmatprep.subr.bf16.mxu0 %v9262_v34  ;;  %5697 = vmatprep.subr.bf16.mxu1 %v9263_v62  ;;  %v9345_v62 = vld [vmem:[#allocation150_spill] sm:$0xff] }
 0x5d0   :  { %5635 = vmatpush1.bf16.msra.mxu0 %v9264_v7  ;;  %5699 = vmatpush1.bf16.msra.mxu1 %v9265_v59 }
 0x5d1   :  { %5637 = vmatprep.subr.bf16.mxu0 %v9266_v23  ;;  %5701 = vmatprep.subr.bf16.mxu1 %v9267_v45  ;;  %v9277_v23 = vld [vmem:[#allocation145_spill] sm:$0xff]  ;;  %v9278_v45 = vld [vmem:[#allocation18_spill] sm:$0xff] }
 0x5d4   :  { %5639 = vmatpush1.bf16.msra.mxu0 %v9268_v33  ;;  %5703 = vmatpush1.bf16.msra.mxu1 %v9269_v35  ;;  %v9279_v33 = vld [vmem:[#allocation19_spill] sm:$0xff] }
 0x5d5   :  { %5641 = vmatprep.subr.bf16.mxu0 %v9270_v54  ;;  %5705 = vmatprep.subr.bf16.mxu1 %v9271_v29  ;;  %v9280_v29 = vld [vmem:[#allocation20_spill] sm:$0xff]  ;;  %v9289_v54 = vld [vmem:[#allocation29_spill] sm:$0xff] }
 0x5d8   :  { %5643 = vmatpush1.bf16.msra.mxu0 %v9272_v10  ;;  %5707 = vmatpush1.bf16.msra.mxu1 %v9273_v46  ;;  %v9281_v10 = vld [vmem:[#allocation21_spill] sm:$0xff]  ;;  %v9282_v46 = vld [vmem:[#allocation22_spill] sm:$0xff] }
 0x5d9   :  { %5645 = vmatprep.subr.bf16.mxu0 %v9274_v0  ;;  %5709 = vmatprep.subr.bf16.mxu1 %v9275_v26  ;;  %v9283_v0 = vld [vmem:[#allocation23_spill] sm:$0xff]  ;;  %v9284_v26 = vld [vmem:[#allocation24_spill] sm:$0xff] }
 0x5dc   :  { %5647 = vmatpush1.bf16.msra.mxu0 %v9276_v63  ;;  %5711 = vmatpush1.bf16.msra.mxu1 %v9277_v23  ;;  %v9285_v63 = vld [vmem:[#allocation25_spill] sm:$0xff]  ;;  %v9286_v23 = vld [vmem:[#allocation26_spill] sm:$0xff] }
 0x5dd   :  { %5713 = vmatprep.subr.bf16.mxu0 %v9278_v45  ;;  %5777 = vmatprep.subr.bf16.mxu1 %v9279_v33  ;;  %v9287_v45 = vld [vmem:[#allocation27_spill] sm:$0xff]  ;;  %v9288_v33 = vld [vmem:[#allocation28_spill] sm:$0xff] }
 0x5df   :  { %2646 = vmatmul.mubr.f32.vlgmr.msra.gmra.mrb[26].mxu0 %v7948_v19  ;;  %2717 = vmatmul.mubr.f32.vlgmr.msra.gmra.mrb[26].mxu1 %v7948_v19  ;;  %v9290_v19 = vld [vmem:[#allocation30_spill] sm:$0xff] }
 0x5e0   :  { %5715 = vmatpush1.bf16.msra.mxu0 %v9280_v29  ;;  %5779 = vmatpush1.bf16.msra.mxu1 %v9281_v10  ;;  %v9291_v29 = vld [vmem:[#allocation31_spill] sm:$0xff]  ;;  %v9292_v10 = vld [vmem:[#allocation32_spill] sm:$0xff] }
 0x5e1   :  { %5717 = vmatprep.subr.bf16.mxu0 %v9282_v46  ;;  %5781 = vmatprep.subr.bf16.mxu1 %v9283_v0  ;;  %v9293_v46 = vld [vmem:[#allocation33_spill] sm:$0xff]  ;;  %v9294_v0 = vld [vmem:[#allocation34_spill] sm:$0xff] }
 0x5e4   :  { %5719 = vmatpush1.bf16.msra.mxu0 %v9284_v26  ;;  %5783 = vmatpush1.bf16.msra.mxu1 %v9285_v63  ;;  %v9295_v26 = vld [vmem:[#allocation35_spill] sm:$0xff]  ;;  %v9296_v63 = vld [vmem:[#allocation36_spill] sm:$0xff] }
 0x5e5   :  { %5721 = vmatprep.subr.bf16.mxu0 %v9286_v23  ;;  %5785 = vmatprep.subr.bf16.mxu1 %v9287_v45  ;;  %v9297_v23 = vld [vmem:[#allocation37_spill] sm:$0xff]  ;;  %v9298_v45 = vld [vmem:[#allocation38_spill] sm:$0xff] }
 0x5e8   :  { %5723 = vmatpush1.bf16.msra.mxu0 %v9288_v33  ;;  %5787 = vmatpush1.bf16.msra.mxu1 %v9289_v54  ;;  %v9299_v33 = vld [vmem:[#allocation39_spill] sm:$0xff]  ;;  %v9300_v54 = vld [vmem:[#allocation40_spill] sm:$0xff] }
 0x5e9   :  { %5725 = vmatprep.subr.bf16.mxu0 %v9290_v19  ;;  %5789 = vmatprep.subr.bf16.mxu1 %v9291_v29  ;;  %v9301_v19 = vld [vmem:[#allocation41_spill] sm:$0xff]  ;;  %v9302_v29 = vld [vmem:[#allocation42_spill] sm:$0xff] }
 0x5ec   :  { %5727 = vmatpush1.bf16.msra.mxu0 %v9292_v10  ;;  %5791 = vmatpush1.bf16.msra.mxu1 %v9293_v46  ;;  %v9303_v10 = vld [vmem:[#allocation43_spill] sm:$0xff]  ;;  %v9304_v46 = vld [vmem:[#allocation44_spill] sm:$0xff] }
 0x5ed   :  { %5729 = vmatprep.subr.bf16.mxu0 %v9294_v0  ;;  %5793 = vmatprep.subr.bf16.mxu1 %v9295_v26  ;;  %v9305_v0 = vld [vmem:[#allocation45_spill] sm:$0xff]  ;;  %v9306_v26 = vld [vmem:[#allocation46_spill] sm:$0xff] }
 0x5f0   :  { %5731 = vmatpush1.bf16.msra.mxu0 %v9296_v63  ;;  %5795 = vmatpush1.bf16.msra.mxu1 %v9297_v23  ;;  %v9307_v63 = vld [vmem:[#allocation47_spill] sm:$0xff]  ;;  %v9308_v23 = vld [vmem:[#allocation48_spill] sm:$0xff] }
 0x5f1   :  { %5733 = vmatprep.subr.bf16.mxu0 %v9298_v45  ;;  %5797 = vmatprep.subr.bf16.mxu1 %v9299_v33  ;;  %v9309_v45 = vld [vmem:[#allocation49_spill] sm:$0xff]  ;;  %v9310_v33 = vld [vmem:[#allocation50_spill] sm:$0xff] }
 0x5f4   :  { %5735 = vmatpush1.bf16.msra.mxu0 %v9300_v54  ;;  %5799 = vmatpush1.bf16.msra.mxu1 %v9301_v19  ;;  %v9311_v54 = vld [vmem:[#allocation51_spill] sm:$0xff]  ;;  %v9312_v19 = vld [vmem:[#allocation52_spill] sm:$0xff] }
 0x5f5   :  { %5737 = vmatprep.subr.bf16.mxu0 %v9302_v29  ;;  %5801 = vmatprep.subr.bf16.mxu1 %v9303_v10  ;;  %v9313_v29 = vld [vmem:[#allocation53_spill] sm:$0xff]  ;;  %v9314_v10 = vld [vmem:[#allocation54_spill] sm:$0xff] }
 0x5f8   :  { %5739 = vmatpush1.bf16.msra.mxu0 %v9304_v46  ;;  %5803 = vmatpush1.bf16.msra.mxu1 %v9305_v0  ;;  %v9315_v46 = vld [vmem:[#allocation55_spill] sm:$0xff]  ;;  %v9316_v0 = vld [vmem:[#allocation56_spill] sm:$0xff] }
 0x5f9   :  { %5741 = vmatprep.subr.bf16.mxu0 %v9306_v26  ;;  %5805 = vmatprep.subr.bf16.mxu1 %v9307_v63  ;;  %v9317_v26 = vld [vmem:[#allocation57_spill] sm:$0xff]  ;;  %v9318_v63 = vld [vmem:[#allocation58_spill] sm:$0xff] }
 0x5fc   :  { %5743 = vmatpush1.bf16.msra.mxu0 %v9308_v23  ;;  %5807 = vmatpush1.bf16.msra.mxu1 %v9309_v45  ;;  %v9319_v23 = vld [vmem:[#allocation59_spill] sm:$0xff]  ;;  %v9320_v45 = vld [vmem:[#allocation60_spill] sm:$0xff] }
 0x5fd   :  { %5745 = vmatprep.subr.bf16.mxu0 %v9310_v33  ;;  %5809 = vmatprep.subr.bf16.mxu1 %v9311_v54  ;;  %v9321_v33 = vld [vmem:[#allocation61_spill] sm:$0xff]  ;;  %v9322_v54 = vld [vmem:[#allocation62_spill] sm:$0xff] }
 0x600   :  { %5747 = vmatpush1.bf16.msra.mxu0 %v9312_v19  ;;  %5811 = vmatpush1.bf16.msra.mxu1 %v9313_v29  ;;  %v9323_v19 = vld [vmem:[#allocation63_spill] sm:$0xff]  ;;  %v9324_v29 = vld [vmem:[#allocation64_spill] sm:$0xff] }
 0x601   :  { %5749 = vmatprep.subr.bf16.mxu0 %v9314_v10  ;;  %5813 = vmatprep.subr.bf16.mxu1 %v9315_v46  ;;  %v9325_v10 = vld [vmem:[#allocation65_spill] sm:$0xff]  ;;  %v9326_v46 = vld [vmem:[#allocation66_spill] sm:$0xff] }
 0x604   :  { %5751 = vmatpush1.bf16.msra.mxu0 %v9316_v0  ;;  %5815 = vmatpush1.bf16.msra.mxu1 %v9317_v26  ;;  %v9327_v0 = vld [vmem:[#allocation67_spill] sm:$0xff]  ;;  %v9328_v26 = vld [vmem:[#allocation68_spill] sm:$0xff] }
 0x605   :  { %5753 = vmatprep.subr.bf16.mxu0 %v9318_v63  ;;  %5817 = vmatprep.subr.bf16.mxu1 %v9319_v23  ;;  %v9329_v63 = vld [vmem:[#allocation69_spill] sm:$0xff]  ;;  %v9330_v23 = vld [vmem:[#allocation70_spill] sm:$0xff] }
 0x608   :  { %5755 = vmatpush1.bf16.msra.mxu0 %v9320_v45  ;;  %5819 = vmatpush1.bf16.msra.mxu1 %v9321_v33  ;;  %v9331_v45 = vld [vmem:[#allocation71_spill] sm:$0xff]  ;;  %v9332_v33 = vld [vmem:[#allocation72_spill] sm:$0xff] }
 0x609   :  { %5757 = vmatprep.subr.bf16.mxu0 %v9322_v54  ;;  %5821 = vmatprep.subr.bf16.mxu1 %v9323_v19  ;;  %v9333_v54 = vld [vmem:[#allocation73_spill] sm:$0xff]  ;;  %v9334_v19 = vld [vmem:[#allocation74_spill] sm:$0xff] }
 0x60c   :  { %5759 = vmatpush1.bf16.msra.mxu0 %v9324_v29  ;;  %5823 = vmatpush1.bf16.msra.mxu1 %v9325_v10  ;;  %v9335_v29 = vld [vmem:[#allocation75_spill] sm:$0xff]  ;;  %v9336_v10 = vld [vmem:[#allocation76_spill] sm:$0xff] }
 0x60d   :  { %5761 = vmatprep.subr.bf16.mxu0 %v9326_v46  ;;  %5825 = vmatprep.subr.bf16.mxu1 %v9327_v0  ;;  %v9337_v46 = vld [vmem:[#allocation77_spill] sm:$0xff]  ;;  %v9338_v0 = vld [vmem:[#allocation78_spill] sm:$0xff] }
 0x610   :  { %5763 = vmatpush1.bf16.msra.mxu0 %v9328_v26  ;;  %5827 = vmatpush1.bf16.msra.mxu1 %v9329_v63  ;;  %v9339_v26 = vld [vmem:[#allocation79_spill] sm:$0xff]  ;;  %v9340_v63 = vld [vmem:[#allocation80_spill] sm:$0xff] }
 0x611   :  { %5765 = vmatprep.subr.bf16.mxu0 %v9330_v23  ;;  %5829 = vmatprep.subr.bf16.mxu1 %v9331_v45  ;;  %v9341_v23 = vld [vmem:[#allocation81_spill] sm:$0xff]  ;;  %v9342_v45 = vld [vmem:[#allocation82_spill] sm:$0xff] }
 0x614   :  { %5767 = vmatpush1.bf16.msra.mxu0 %v9332_v33  ;;  %5831 = vmatpush1.bf16.msra.mxu1 %v9333_v54  ;;  %v9343_v33 = vld [vmem:[#allocation83_spill] sm:$0xff] }
 0x615   :  { %5769 = vmatprep.subr.bf16.mxu0 %v9334_v19  ;;  %5833 = vmatprep.subr.bf16.mxu1 %v9335_v29 }
 0x618   :  { %5771 = vmatpush1.bf16.msra.mxu0 %v9336_v10  ;;  %5835 = vmatpush1.bf16.msra.mxu1 %v9337_v46 }
 0x619   :  { %5773 = vmatprep.subr.bf16.mxu0 %v9338_v0  ;;  %5837 = vmatprep.subr.bf16.mxu1 %v9339_v26  ;;  %v9344_v26 = vld [vmem:[#allocation148_spill] sm:$0xff] }
 0x61c   :  { %5775 = vmatpush1.bf16.msra.mxu0 %v9340_v63  ;;  %5839 = vmatpush1.bf16.msra.mxu1 %v9341_v23  ;;  %v9346_v63 = vcombine.low %v9344_v26, %v9345_v62 }
 0x61d   :  { %5841 = vmatprep.subr.bf16.mxu0 %v9342_v45  ;;  %5905 = vmatprep.subr.bf16.mxu1 %v9343_v33 }
 0x672   :  { %v2505_v54 = vpop.f32.mrb[24].mxu0  ;;  %v2576_v19 = vpop.f32.mrb[24].mxu1 }
 0x673   :  { %v2507_v35 = vpop.f32.mrb[25].mxu0  ;;  %v2578_v29 = vpop.f32.mrb[25].mxu1 }
 0x674   :  { %v2731_v59 = vcombine.low %v2505_v54, %v2507_v35  ;;  %v2732_v10 = vcombine.low %v2576_v19, %v2578_v29 }
 0x676   :  { %v2739_v46 = vrot.slane %v2731_v59, %v7405_v42  ;;  %v2746_v0 = vrot.slane %v2732_v10, %v7405_v42 }
 0x678   :  { %v2747_v7 = vcombine.low %v2739_v46, %v2746_v0 }
 0x67a   :  { %v2767_v34 = vadd.f32 %v2747_v7, %v9346_v63 }
 0x67c   :  { %v2776_v23 = vrot.slane %v2767_v34, 4  ;;  %v4281_v45 = vmul.f32 -1.442695, %v2767_v34  ;;  %v9348_v34 = vld [vmem:[#allocation156_spill] sm:$0xff] }
 0x67e   :  { %v4282_v43 = vmul.f32 -1.442695, %v2776_v23  ;;  %v9347_v23 = vld [vmem:[#allocation154_spill] sm:$0xff] }
 0x680   :  { %6621 = vpow2.f32 %v4282_v43  ;;  %v9349_v43 = vcombine.low %v9347_v23, %v9348_v34 }
 0x681   :  { %6623 = vpow2.f32 %v4281_v45 }
 0x68a   :  { %v6622_v13 = vpop.eup %6621 }
 0x68b   :  { %v6624_v54 = vpop.eup %6623  ;;  %v2781_v19 = vadd.f32 1.0, %v6622_v13 }
 0x68c   :  { %v2772_v0 = vadd.f32 1.0, %v6624_v54 }
 0x68d   :  { %6625 = vrcp.f32 %v2781_v19 }
 0x68e   :  { %6627 = vrcp.f32 %v2772_v0  ;;  %v9351_v0 = vld [vmem:[#allocation127_spill] sm:$0xff] }
 0x697   :  { %v6626_v26 = vpop.eup %6625 }
 0x698   :  { %v2794_v13 = vmul.f32 %v6626_v26, %v7944_v2  ;;  %v9350_v26 = vld [vmem:[#allocation126_spill] sm:$0xff] }
 0x6b2   :  { %v2647_v33 = vpop.f32.mrb[26].mxu0  ;;  %v2718_v25 = vpop.f32.mrb[26].mxu1 }
 0x6b3   :  { %v2649_v4 = vpop.f32.mrb[27].mxu0  ;;  %v2720_v35 = vpop.f32.mrb[27].mxu1 }
 0x6b4   :  { %v2748_v29 = vcombine.low %v2647_v33, %v2649_v4  ;;  %v2749_v59 = vcombine.low %v2718_v25, %v2720_v35  ;;  %v6628_v4 = vpop.eup %6627 }
 0x6b6   :  { %v2756_v10 = vrot.slane %v2748_v29, %v7405_v42  ;;  %v2763_v46 = vrot.slane %v2749_v59, %v7405_v42 }
 0x6b8   :  { %v2764_v7 = vcombine.low %v2756_v10, %v2763_v46 }
 0x6ba   :  { %v2768_v45 = vadd.f32 %v2764_v7, %v9349_v43  ;;  %v9352_v7 = vld [vmem:[#allocation128_spill] sm:$0xff]  ;;  %v9353_v43 = vld [vmem:[#allocation129_spill] sm:$0xff] }
 0x6bc   :  { %6629 = vtanh.f32 %v2768_v45  ;;  %v2786_v63 = vrot.slane %v2768_v45, 4  ;;  %v9354_v45 = vld [vmem:[#allocation130_spill] sm:$0xff] }
 0x6be   :  { %v4283_v62 = vmul.f32 -1.442695, %v2786_v63  ;;  %v9355_v63 = vld [vmem:[#allocation131_spill] sm:$0xff] }
 0x6c0   :  { %6631 = vpow2.f32 %v4283_v62 }
 0x6c6   :  { %v6630_v25 = vpop.eup %6629 }
 0x6c7   :  { %v2795_v33 = vmul.f32 %v6630_v25, %v6628_v4  ;;  %v9356_v4 = vld [vmem:[#allocation132_spill] sm:$0xff]  ;;  %v9357_v25 = vld [vmem:[#allocation133_spill] sm:$0xff] }
 0x6c9   :  { %v8095_v35 = vadd.f32 %v2795_v33, %v2794_v13  ;;  %v9358_v13 = vld [vmem:[#allocation134_spill] sm:$0xff]  ;;  %v9359_v33 = vld [vmem:[#allocation135_spill] sm:$0xff] }
 0x6ca   :  { %v6632_v54 = vpop.eup %6631 }
 0x6cb   :  { %v2791_v29 = vadd.f32 1.0, %v6632_v54  ;;  %6633 = vtanh.f32 %v8095_v35  ;;  %v9360_v54 = vld [vmem:[#allocation136_spill] sm:$0xff] }
 0x6cd   :  { %6635 = vrcp.f32 %v2791_v29  ;;  %v9361_v29 = vld [vmem:[#allocation137_spill] sm:$0xff] }
 0x6d5   :  { %v6634_v59 = vpop.eup %6633 }
 0x6d7   :  { %v6636_v19 = vpop.eup %6635 }
 0x6d8   :  { %v2798_v10 = vmul.f32 %v6636_v19, %v6634_v59  ;;  %v9362_v59 = vld [vmem:[#allocation138_spill] sm:$0xff]  ;;  %v9363_v19 = vld [vmem:[#allocation139_spill] sm:$0xff] }
 0x6da   :  { %2800 = vst [vmem:[#allocation3 + $0x8] sm:$0x3] %v2798_v10  ;;  %v2802_v46 = vrot.slane %v2798_v10, 2  ;;  %v8099_v62 = vrot.slane %v2798_v10, %v7405_v42  ;;  %v9364_v10 = vld [vmem:[#allocation140_spill] sm:$0xff] }
 0x6dc   :  { %2805 = vst [vmem:[#allocation4 + $0x6] sm:$0x3] %v2802_v46  ;;  %v2816_v2 = vcombine.high %v8099_v62, %v8099_v62  ;;  %v9365_v46 = vld [vmem:[#allocation141_spill] sm:$0xff] }
 0x6de   :  { %2883 = vmatprep.mubr.f32.mxu0 %v2816_v2  ;;  %2954 = vmatprep.mubr.f32.mxu1 %v2816_v2 }
 0x6df   :  { %2884 = vmatmul.mubr.f32.vlgmr.msra.gmra.mrb[28].mxu0 %v8099_v62  ;;  %2955 = vmatmul.mubr.f32.vlgmr.msra.gmra.mrb[28].mxu1 %v8099_v62 }
 0x6e0   :  { %5843 = vmatpush1.bf16.msra.mxu0 %v8975_v18  ;;  %5907 = vmatpush1.bf16.msra.mxu1 %v8976_v49 }
 0x6e1   :  { %3025 = vmatprep.mubr.f32.mxu0 %v2816_v2  ;;  %3096 = vmatprep.mubr.f32.mxu1 %v2816_v2  ;;  %v9366_v2 = vld [vmem:[#allocation142_spill] sm:$0xff] }
 0x6e2   :  { %5845 = vmatprep.subr.bf16.mxu0 %v8977_v60  ;;  %5909 = vmatprep.subr.bf16.mxu1 %v8978_v22 }
 0x6e4   :  { %5847 = vmatpush1.bf16.msra.mxu0 %v8979_v24  ;;  %5911 = vmatpush1.bf16.msra.mxu1 %v8980_v6 }
 0x6e5   :  { %5849 = vmatprep.subr.bf16.mxu0 %v8981_v53  ;;  %5913 = vmatprep.subr.bf16.mxu1 %v8982_v41 }
 0x6e8   :  { %5851 = vmatpush1.bf16.msra.mxu0 %v8983_v9  ;;  %5915 = vmatpush1.bf16.msra.mxu1 %v8984_v12 }
 0x6e9   :  { %5853 = vmatprep.subr.bf16.mxu0 %v8985_v30  ;;  %5917 = vmatprep.subr.bf16.mxu1 %v8986_v61 }
 0x6ec   :  { %5855 = vmatpush1.bf16.msra.mxu0 %v8987_v5  ;;  %5919 = vmatpush1.bf16.msra.mxu1 %v9072_v21 }
 0x6ed   :  { %5857 = vmatprep.subr.bf16.mxu0 %v9073_v38  ;;  %5921 = vmatprep.subr.bf16.mxu1 %v9074_v39 }
 0x6f0   :  { %5859 = vmatpush1.bf16.msra.mxu0 %v9075_v40  ;;  %5923 = vmatpush1.bf16.msra.mxu1 %v9076_v20 }
 0x6f1   :  { %5861 = vmatprep.subr.bf16.mxu0 %v9077_v16  ;;  %5925 = vmatprep.subr.bf16.mxu1 %v9078_v44 }
 0x6f4   :  { %5863 = vmatpush1.bf16.msra.mxu0 %v9079_v50  ;;  %5927 = vmatpush1.bf16.msra.mxu1 %v9080_v51 }
 0x6f5   :  { %5865 = vmatprep.subr.bf16.mxu0 %v9081_v52  ;;  %5929 = vmatprep.subr.bf16.mxu1 %v9166_v1 }
 0x6f8   :  { %5867 = vmatpush1.bf16.msra.mxu0 %v9167_v36  ;;  %5931 = vmatpush1.bf16.msra.mxu1 %v9168_v55 }
 0x6f9   :  { %5869 = vmatprep.subr.bf16.mxu0 %v9169_v31  ;;  %5933 = vmatprep.subr.bf16.mxu1 %v9170_v58 }
 0x6fc   :  { %5871 = vmatpush1.bf16.msra.mxu0 %v9087_v27  ;;  %5935 = vmatpush1.bf16.msra.mxu1 %v9171_v47 }
 0x6fd   :  { %5873 = vmatprep.subr.bf16.mxu0 %v9089_v17  ;;  %5937 = vmatprep.subr.bf16.mxu1 %v9090_v28 }
 0x700   :  { %5875 = vmatpush1.bf16.msra.mxu0 %v9091_v32  ;;  %5939 = vmatpush1.bf16.msra.mxu1 %v9092_v11 }
 0x701   :  { %5877 = vmatprep.subr.bf16.mxu0 %v9093_v8  ;;  %5941 = vmatprep.subr.bf16.mxu1 %v9094_v15 }
 0x704   :  { %5879 = vmatpush1.bf16.msra.mxu0 %v9095_v14  ;;  %5943 = vmatpush1.bf16.msra.mxu1 %v9096_v56 }
 0x705   :  { %5881 = vmatprep.subr.bf16.mxu0 %v9097_v37  ;;  %5945 = vmatprep.subr.bf16.mxu1 %v9014_v57 }
 0x708   :  { %5883 = vmatpush1.bf16.msra.mxu0 %v9256_v48  ;;  %5947 = vmatpush1.bf16.msra.mxu1 %v9257_v3 }
 0x709   :  { %5885 = vmatprep.subr.bf16.mxu0 %v9350_v26  ;;  %5949 = vmatprep.subr.bf16.mxu1 %v9351_v0 }
 0x70c   :  { %5887 = vmatpush1.bf16.msra.mxu0 %v9352_v7  ;;  %5951 = vmatpush1.bf16.msra.mxu1 %v9353_v43  ;;  %v9437_v43 = vld [vmem:[#allocation150_spill] sm:$0xff] }
 0x70d   :  { %5889 = vmatprep.subr.bf16.mxu0 %v9354_v45  ;;  %5953 = vmatprep.subr.bf16.mxu1 %v9355_v63 }
 0x710   :  { %5891 = vmatpush1.bf16.msra.mxu0 %v9356_v4  ;;  %5955 = vmatpush1.bf16.msra.mxu1 %v9357_v25  ;;  %v9367_v4 = vld [vmem:[#allocation143_spill] sm:$0xff]  ;;  %v9368_v25 = vld [vmem:[#allocation144_spill] sm:$0xff] }
 0x711   :  { %5893 = vmatprep.subr.bf16.mxu0 %v9358_v13  ;;  %5957 = vmatprep.subr.bf16.mxu1 %v9359_v33  ;;  %v9369_v13 = vld [vmem:[#allocation145_spill] sm:$0xff]  ;;  %v9370_v33 = vld [vmem:[#allocation18_spill] sm:$0xff] }
 0x714   :  { %5895 = vmatpush1.bf16.msra.mxu0 %v9360_v54  ;;  %5959 = vmatpush1.bf16.msra.mxu1 %v9361_v29  ;;  %v9371_v54 = vld [vmem:[#allocation19_spill] sm:$0xff] }
 0x715   :  { %5897 = vmatprep.subr.bf16.mxu0 %v9362_v59  ;;  %5961 = vmatprep.subr.bf16.mxu1 %v9363_v19  ;;  %v9372_v19 = vld [vmem:[#allocation20_spill] sm:$0xff]  ;;  %v9381_v59 = vld [vmem:[#allocation29_spill] sm:$0xff] }
 0x718   :  { %5899 = vmatpush1.bf16.msra.mxu0 %v9364_v10  ;;  %5963 = vmatpush1.bf16.msra.mxu1 %v9365_v46  ;;  %v9373_v10 = vld [vmem:[#allocation21_spill] sm:$0xff]  ;;  %v9374_v46 = vld [vmem:[#allocation22_spill] sm:$0xff] }
 0x719   :  { %5901 = vmatprep.subr.bf16.mxu0 %v9366_v2  ;;  %5965 = vmatprep.subr.bf16.mxu1 %v9367_v4  ;;  %v9375_v2 = vld [vmem:[#allocation23_spill] sm:$0xff]  ;;  %v9376_v4 = vld [vmem:[#allocation24_spill] sm:$0xff] }
 0x71c   :  { %5903 = vmatpush1.bf16.msra.mxu0 %v9368_v25  ;;  %5967 = vmatpush1.bf16.msra.mxu1 %v9369_v13  ;;  %v9377_v25 = vld [vmem:[#allocation25_spill] sm:$0xff]  ;;  %v9378_v13 = vld [vmem:[#allocation26_spill] sm:$0xff] }
 0x71d   :  { %5969 = vmatprep.subr.bf16.mxu0 %v9370_v33  ;;  %6033 = vmatprep.subr.bf16.mxu1 %v9371_v54  ;;  %v9379_v33 = vld [vmem:[#allocation27_spill] sm:$0xff]  ;;  %v9380_v54 = vld [vmem:[#allocation28_spill] sm:$0xff] }
 0x71f   :  { %3026 = vmatmul.mubr.f32.vlgmr.msra.gmra.mrb[30].mxu0 %v8099_v62  ;;  %3097 = vmatmul.mubr.f32.vlgmr.msra.gmra.mrb[30].mxu1 %v8099_v62  ;;  %v9382_v62 = vld [vmem:[#allocation30_spill] sm:$0xff] }
 0x720   :  { %5971 = vmatpush1.bf16.msra.mxu0 %v9372_v19  ;;  %6035 = vmatpush1.bf16.msra.mxu1 %v9373_v10  ;;  %v9383_v19 = vld [vmem:[#allocation31_spill] sm:$0xff]  ;;  %v9384_v10 = vld [vmem:[#allocation32_spill] sm:$0xff] }
 0x721   :  { %5973 = vmatprep.subr.bf16.mxu0 %v9374_v46  ;;  %6037 = vmatprep.subr.bf16.mxu1 %v9375_v2  ;;  %v9385_v46 = vld [vmem:[#allocation33_spill] sm:$0xff]  ;;  %v9386_v2 = vld [vmem:[#allocation34_spill] sm:$0xff] }
 0x724   :  { %5975 = vmatpush1.bf16.msra.mxu0 %v9376_v4  ;;  %6039 = vmatpush1.bf16.msra.mxu1 %v9377_v25  ;;  %v9387_v4 = vld [vmem:[#allocation35_spill] sm:$0xff]  ;;  %v9388_v25 = vld [vmem:[#allocation36_spill] sm:$0xff] }
 0x725   :  { %5977 = vmatprep.subr.bf16.mxu0 %v9378_v13  ;;  %6041 = vmatprep.subr.bf16.mxu1 %v9379_v33  ;;  %v9389_v13 = vld [vmem:[#allocation37_spill] sm:$0xff]  ;;  %v9390_v33 = vld [vmem:[#allocation38_spill] sm:$0xff] }
 0x728   :  { %5979 = vmatpush1.bf16.msra.mxu0 %v9380_v54  ;;  %6043 = vmatpush1.bf16.msra.mxu1 %v9381_v59  ;;  %v9391_v54 = vld [vmem:[#allocation39_spill] sm:$0xff]  ;;  %v9392_v59 = vld [vmem:[#allocation40_spill] sm:$0xff] }
 0x729   :  { %5981 = vmatprep.subr.bf16.mxu0 %v9382_v62  ;;  %6045 = vmatprep.subr.bf16.mxu1 %v9383_v19  ;;  %v9393_v62 = vld [vmem:[#allocation41_spill] sm:$0xff]  ;;  %v9394_v19 = vld [vmem:[#allocation42_spill] sm:$0xff] }
 0x72c   :  { %5983 = vmatpush1.bf16.msra.mxu0 %v9384_v10  ;;  %6047 = vmatpush1.bf16.msra.mxu1 %v9385_v46  ;;  %v9395_v10 = vld [vmem:[#allocation43_spill] sm:$0xff]  ;;  %v9396_v46 = vld [vmem:[#allocation44_spill] sm:$0xff] }
 0x72d   :  { %5985 = vmatprep.subr.bf16.mxu0 %v9386_v2  ;;  %6049 = vmatprep.subr.bf16.mxu1 %v9387_v4  ;;  %v9397_v2 = vld [vmem:[#allocation45_spill] sm:$0xff]  ;;  %v9398_v4 = vld [vmem:[#allocation46_spill] sm:$0xff] }
 0x730   :  { %5987 = vmatpush1.bf16.msra.mxu0 %v9388_v25  ;;  %6051 = vmatpush1.bf16.msra.mxu1 %v9389_v13  ;;  %v9399_v25 = vld [vmem:[#allocation47_spill] sm:$0xff]  ;;  %v9400_v13 = vld [vmem:[#allocation48_spill] sm:$0xff] }
 0x731   :  { %5989 = vmatprep.subr.bf16.mxu0 %v9390_v33  ;;  %6053 = vmatprep.subr.bf16.mxu1 %v9391_v54  ;;  %v9401_v33 = vld [vmem:[#allocation49_spill] sm:$0xff]  ;;  %v9402_v54 = vld [vmem:[#allocation50_spill] sm:$0xff] }
 0x734   :  { %5991 = vmatpush1.bf16.msra.mxu0 %v9392_v59  ;;  %6055 = vmatpush1.bf16.msra.mxu1 %v9393_v62  ;;  %v9403_v59 = vld [vmem:[#allocation51_spill] sm:$0xff]  ;;  %v9404_v62 = vld [vmem:[#allocation52_spill] sm:$0xff] }
 0x735   :  { %5993 = vmatprep.subr.bf16.mxu0 %v9394_v19  ;;  %6057 = vmatprep.subr.bf16.mxu1 %v9395_v10  ;;  %v9405_v19 = vld [vmem:[#allocation53_spill] sm:$0xff]  ;;  %v9406_v10 = vld [vmem:[#allocation54_spill] sm:$0xff] }
 0x738   :  { %5995 = vmatpush1.bf16.msra.mxu0 %v9396_v46  ;;  %6059 = vmatpush1.bf16.msra.mxu1 %v9397_v2  ;;  %v9407_v46 = vld [vmem:[#allocation55_spill] sm:$0xff]  ;;  %v9408_v2 = vld [vmem:[#allocation56_spill] sm:$0xff] }
 0x739   :  { %5997 = vmatprep.subr.bf16.mxu0 %v9398_v4  ;;  %6061 = vmatprep.subr.bf16.mxu1 %v9399_v25  ;;  %v9409_v4 = vld [vmem:[#allocation57_spill] sm:$0xff]  ;;  %v9410_v25 = vld [vmem:[#allocation58_spill] sm:$0xff] }
 0x73c   :  { %5999 = vmatpush1.bf16.msra.mxu0 %v9400_v13  ;;  %6063 = vmatpush1.bf16.msra.mxu1 %v9401_v33  ;;  %v9411_v13 = vld [vmem:[#allocation59_spill] sm:$0xff]  ;;  %v9412_v33 = vld [vmem:[#allocation60_spill] sm:$0xff] }
 0x73d   :  { %6001 = vmatprep.subr.bf16.mxu0 %v9402_v54  ;;  %6065 = vmatprep.subr.bf16.mxu1 %v9403_v59  ;;  %v9413_v54 = vld [vmem:[#allocation61_spill] sm:$0xff]  ;;  %v9414_v59 = vld [vmem:[#allocation62_spill] sm:$0xff] }
 0x740   :  { %6003 = vmatpush1.bf16.msra.mxu0 %v9404_v62  ;;  %6067 = vmatpush1.bf16.msra.mxu1 %v9405_v19  ;;  %v9415_v62 = vld [vmem:[#allocation63_spill] sm:$0xff]  ;;  %v9416_v19 = vld [vmem:[#allocation64_spill] sm:$0xff] }
 0x741   :  { %6005 = vmatprep.subr.bf16.mxu0 %v9406_v10  ;;  %6069 = vmatprep.subr.bf16.mxu1 %v9407_v46  ;;  %v9417_v10 = vld [vmem:[#allocation65_spill] sm:$0xff]  ;;  %v9418_v46 = vld [vmem:[#allocation66_spill] sm:$0xff] }
 0x744   :  { %6007 = vmatpush1.bf16.msra.mxu0 %v9408_v2  ;;  %6071 = vmatpush1.bf16.msra.mxu1 %v9409_v4  ;;  %v9419_v2 = vld [vmem:[#allocation67_spill] sm:$0xff]  ;;  %v9420_v4 = vld [vmem:[#allocation68_spill] sm:$0xff] }
 0x745   :  { %6009 = vmatprep.subr.bf16.mxu0 %v9410_v25  ;;  %6073 = vmatprep.subr.bf16.mxu1 %v9411_v13  ;;  %v9421_v25 = vld [vmem:[#allocation69_spill] sm:$0xff]  ;;  %v9422_v13 = vld [vmem:[#allocation70_spill] sm:$0xff] }
 0x748   :  { %6011 = vmatpush1.bf16.msra.mxu0 %v9412_v33  ;;  %6075 = vmatpush1.bf16.msra.mxu1 %v9413_v54  ;;  %v9423_v33 = vld [vmem:[#allocation71_spill] sm:$0xff]  ;;  %v9424_v54 = vld [vmem:[#allocation72_spill] sm:$0xff] }
 0x749   :  { %6013 = vmatprep.subr.bf16.mxu0 %v9414_v59  ;;  %6077 = vmatprep.subr.bf16.mxu1 %v9415_v62  ;;  %v9425_v59 = vld [vmem:[#allocation73_spill] sm:$0xff]  ;;  %v9426_v62 = vld [vmem:[#allocation74_spill] sm:$0xff] }
 0x74c   :  { %6015 = vmatpush1.bf16.msra.mxu0 %v9416_v19  ;;  %6079 = vmatpush1.bf16.msra.mxu1 %v9417_v10  ;;  %v9427_v19 = vld [vmem:[#allocation75_spill] sm:$0xff]  ;;  %v9428_v10 = vld [vmem:[#allocation76_spill] sm:$0xff] }
 0x74d   :  { %6017 = vmatprep.subr.bf16.mxu0 %v9418_v46  ;;  %6081 = vmatprep.subr.bf16.mxu1 %v9419_v2  ;;  %v9429_v46 = vld [vmem:[#allocation77_spill] sm:$0xff]  ;;  %v9430_v2 = vld [vmem:[#allocation78_spill] sm:$0xff] }
 0x750   :  { %6019 = vmatpush1.bf16.msra.mxu0 %v9420_v4  ;;  %6083 = vmatpush1.bf16.msra.mxu1 %v9421_v25  ;;  %v9431_v4 = vld [vmem:[#allocation79_spill] sm:$0xff]  ;;  %v9432_v25 = vld [vmem:[#allocation80_spill] sm:$0xff] }
 0x751   :  { %6021 = vmatprep.subr.bf16.mxu0 %v9422_v13  ;;  %6085 = vmatprep.subr.bf16.mxu1 %v9423_v33  ;;  %v9433_v13 = vld [vmem:[#allocation81_spill] sm:$0xff]  ;;  %v9434_v33 = vld [vmem:[#allocation82_spill] sm:$0xff] }
 0x754   :  { %6023 = vmatpush1.bf16.msra.mxu0 %v9424_v54  ;;  %6087 = vmatpush1.bf16.msra.mxu1 %v9425_v59  ;;  %v9435_v54 = vld [vmem:[#allocation83_spill] sm:$0xff] }
 0x755   :  { %6025 = vmatprep.subr.bf16.mxu0 %v9426_v62  ;;  %6089 = vmatprep.subr.bf16.mxu1 %v9427_v19 }
 0x758   :  { %6027 = vmatpush1.bf16.msra.mxu0 %v9428_v10  ;;  %6091 = vmatpush1.bf16.msra.mxu1 %v9429_v46 }
 0x759   :  { %6029 = vmatprep.subr.bf16.mxu0 %v9430_v2  ;;  %6093 = vmatprep.subr.bf16.mxu1 %v9431_v4  ;;  %v9436_v4 = vld [vmem:[#allocation148_spill] sm:$0xff] }
 0x75c   :  { %6031 = vmatpush1.bf16.msra.mxu0 %v9432_v25  ;;  %6095 = vmatpush1.bf16.msra.mxu1 %v9433_v13  ;;  %v9438_v25 = vcombine.high %v9436_v4, %v9437_v43 }
 0x75d   :  { %6097 = vmatprep.subr.bf16.mxu0 %v9434_v33  ;;  %6161 = vmatprep.subr.bf16.mxu1 %v9435_v54 }
 0x7b2   :  { %v2885_v59 = vpop.f32.mrb[28].mxu0  ;;  %v2956_v62 = vpop.f32.mrb[28].mxu1 }
 0x7b3   :  { %v2887_v29 = vpop.f32.mrb[29].mxu0  ;;  %v2958_v19 = vpop.f32.mrb[29].mxu1 }
 0x7b4   :  { %v3111_v63 = vcombine.low %v2885_v59, %v2887_v29  ;;  %v3112_v10 = vcombine.low %v2956_v62, %v2958_v19 }
 0x7b6   :  { %v3119_v46 = vrot.slane %v3111_v63, %v7405_v42  ;;  %v3126_v2 = vrot.slane %v3112_v10, %v7405_v42 }
 0x7b8   :  { %v3127_v45 = vcombine.low %v3119_v46, %v3126_v2 }
 0x7ba   :  { %v3147_v7 = vadd.f32 %v3127_v45, %v9438_v25 }
 0x7bc   :  { %v3156_v13 = vrot.slane %v3147_v7, 4  ;;  %v4284_v33 = vmul.f32 -1.442695, %v3147_v7 }
 0x7be   :  { %v4285_v0 = vmul.f32 -1.442695, %v3156_v13 }
 0x7c0   :  { %6637 = vpow2.f32 %v4285_v0  ;;  %v9439_v0 = vcombine.high %v9347_v23, %v9348_v34 }
 0x7c1   :  { %6639 = vpow2.f32 %v4284_v33 }
 0x7ca   :  { %v6638_v3 = vpop.eup %6637 }
 0x7cb   :  { %v6640_v59 = vpop.eup %6639  ;;  %v3161_v62 = vadd.f32 1.0, %v6638_v3 }
 0x7cc   :  { %v3152_v43 = vadd.f32 1.0, %v6640_v59 }
 0x7cd   :  { %6641 = vrcp.f32 %v3161_v62  ;;  %v9440_v62 = vld [vmem:[#allocation124_spill] sm:$0xff] }
 0x7ce   :  { %6643 = vrcp.f32 %v3152_v43  ;;  %v9443_v43 = vld [vmem:[#allocation127_spill] sm:$0xff] }
 0x7d7   :  { %v6642_v13 = vpop.eup %6641 }
 0x7d8   :  { %v3174_v3 = vmul.f32 %v6642_v13, %v8095_v35  ;;  %v9449_v13 = vld [vmem:[#allocation133_spill] sm:$0xff] }
 0x7f2   :  { %v3027_v54 = vpop.f32.mrb[30].mxu0  ;;  %v3098_v26 = vpop.f32.mrb[30].mxu1 }
 0x7f3   :  { %v3029_v48 = vpop.f32.mrb[31].mxu0  ;;  %v3100_v29 = vpop.f32.mrb[31].mxu1 }
 0x7f4   :  { %v3128_v19 = vcombine.low %v3027_v54, %v3029_v48  ;;  %v3129_v63 = vcombine.low %v3098_v26, %v3100_v29  ;;  %v6644_v48 = vpop.eup %6643 }
 0x7f6   :  { %v3136_v10 = vrot.slane %v3128_v19, %v7405_v42  ;;  %v3143_v46 = vrot.slane %v3129_v63, %v7405_v42 }
 0x7f8   :  { %v3144_v45 = vcombine.low %v3136_v10, %v3143_v46  ;;  %v9441_v10 = vld [vmem:[#allocation125_spill] sm:$0xff]  ;;  %v9442_v46 = vld [vmem:[#allocation126_spill] sm:$0xff] }
 0x7fa   :  { %v3148_v7 = vadd.f32 %v3144_v45, %v9439_v0  ;;  %v9444_v45 = vld [vmem:[#allocation128_spill] sm:$0xff]  ;;  %v9445_v0 = vld [vmem:[#allocation129_spill] sm:$0xff] }
 0x7fc   :  { %6645 = vtanh.f32 %v3148_v7  ;;  %v3166_v4 = vrot.slane %v3148_v7, 4  ;;  %v9446_v7 = vld [vmem:[#allocation130_spill] sm:$0xff] }
 0x7fe   :  { %v4286_v25 = vmul.f32 -1.442695, %v3166_v4  ;;  %v9447_v4 = vld [vmem:[#allocation131_spill] sm:$0xff] }
 0x800   :  { %6647 = vpow2.f32 %v4286_v25  ;;  %v9448_v25 = vld [vmem:[#allocation132_spill] sm:$0xff] }
 0x806   :  { %v6646_v26 = vpop.eup %6645 }
 0x807   :  { %v3175_v33 = vmul.f32 %v6646_v26, %v6644_v48  ;;  %v9450_v48 = vld [vmem:[#allocation134_spill] sm:$0xff]  ;;  %v9451_v26 = vld [vmem:[#allocation135_spill] sm:$0xff] }
 0x809   :  { %v8246_v54 = vadd.f32 %v3175_v33, %v3174_v3  ;;  %v9452_v3 = vld [vmem:[#allocation136_spill] sm:$0xff]  ;;  %v9453_v33 = vld [vmem:[#allocation137_spill] sm:$0xff] }
 0x80a   :  { %v6648_v2 = vpop.eup %6647 }
 0x80b   :  { %v3171_v29 = vadd.f32 1.0, %v6648_v2  ;;  %6649 = vtanh.f32 %v8246_v54  ;;  %v9454_v2 = vld [vmem:[#allocation138_spill] sm:$0xff] }
 0x80d   :  { %6651 = vrcp.f32 %v3171_v29  ;;  %v9455_v29 = vld [vmem:[#allocation139_spill] sm:$0xff] }
 0x815   :  { %v6650_v23 = vpop.eup %6649 }
 0x817   :  { %v6652_v34 = vpop.eup %6651 }
 0x818   :  { %v3178_v59 = vmul.f32 %v6652_v34, %v6650_v23  ;;  %v9456_v23 = vld [vmem:[#allocation140_spill] sm:$0xff]  ;;  %v9457_v34 = vld [vmem:[#allocation141_spill] sm:$0xff] }
 0x81a   :  { %3180 = vst [vmem:[#allocation3 + $0xa] sm:$0x3] %v3178_v59  ;;  %v3182_v19 = vrot.slane %v3178_v59, 2  ;;  %v8250_v63 = vrot.slane %v3178_v59, %v7405_v42  ;;  %v9458_v59 = vld [vmem:[#allocation142_spill] sm:$0xff] }
 0x81c   :  { %3185 = vst [vmem:[#allocation4 + $0x4] sm:$0x3] %v3182_v19  ;;  %v3196_v35 = vcombine.high %v8250_v63, %v8250_v63  ;;  %v9459_v19 = vld [vmem:[#allocation143_spill] sm:$0xff] }
 0x81e   :  { %3263 = vmatprep.mubr.f32.mxu0 %v3196_v35  ;;  %3334 = vmatprep.mubr.f32.mxu1 %v3196_v35 }
 0x81f   :  { %3264 = vmatmul.mubr.f32.vlgmr.msra.gmra.mrb[32].mxu0 %v8250_v63  ;;  %3335 = vmatmul.mubr.f32.vlgmr.msra.gmra.mrb[32].mxu1 %v8250_v63 }
 0x820   :  { %6099 = vmatpush1.bf16.msra.mxu0 %v8975_v18  ;;  %6163 = vmatpush1.bf16.msra.mxu1 %v8976_v49 }
 0x821   :  { %3405 = vmatprep.mubr.f32.mxu0 %v3196_v35  ;;  %3476 = vmatprep.mubr.f32.mxu1 %v3196_v35  ;;  %v9460_v35 = vld [vmem:[#allocation144_spill] sm:$0xff] }
 0x822   :  { %6101 = vmatprep.subr.bf16.mxu0 %v8977_v60  ;;  %6165 = vmatprep.subr.bf16.mxu1 %v8978_v22 }
 0x824   :  { %6103 = vmatpush1.bf16.msra.mxu0 %v8979_v24  ;;  %6167 = vmatpush1.bf16.msra.mxu1 %v8980_v6 }
 0x825   :  { %6105 = vmatprep.subr.bf16.mxu0 %v8981_v53  ;;  %6169 = vmatprep.subr.bf16.mxu1 %v8982_v41 }
 0x828   :  { %6107 = vmatpush1.bf16.msra.mxu0 %v8983_v9  ;;  %6171 = vmatpush1.bf16.msra.mxu1 %v8984_v12 }
 0x829   :  { %6109 = vmatprep.subr.bf16.mxu0 %v8985_v30  ;;  %6173 = vmatprep.subr.bf16.mxu1 %v8986_v61 }
 0x82c   :  { %6111 = vmatpush1.bf16.msra.mxu0 %v8987_v5  ;;  %6175 = vmatpush1.bf16.msra.mxu1 %v9072_v21 }
 0x82d   :  { %6113 = vmatprep.subr.bf16.mxu0 %v9073_v38  ;;  %6177 = vmatprep.subr.bf16.mxu1 %v9074_v39 }
 0x830   :  { %6115 = vmatpush1.bf16.msra.mxu0 %v9075_v40  ;;  %6179 = vmatpush1.bf16.msra.mxu1 %v9076_v20 }
 0x831   :  { %6117 = vmatprep.subr.bf16.mxu0 %v9077_v16  ;;  %6181 = vmatprep.subr.bf16.mxu1 %v9078_v44 }
 0x834   :  { %6119 = vmatpush1.bf16.msra.mxu0 %v9079_v50  ;;  %6183 = vmatpush1.bf16.msra.mxu1 %v9080_v51 }
 0x835   :  { %6121 = vmatprep.subr.bf16.mxu0 %v9081_v52  ;;  %6185 = vmatprep.subr.bf16.mxu1 %v9166_v1 }
 0x838   :  { %6123 = vmatpush1.bf16.msra.mxu0 %v9167_v36  ;;  %6187 = vmatpush1.bf16.msra.mxu1 %v9168_v55 }
 0x839   :  { %6125 = vmatprep.subr.bf16.mxu0 %v9169_v31  ;;  %6189 = vmatprep.subr.bf16.mxu1 %v9170_v58 }
 0x83c   :  { %6127 = vmatpush1.bf16.msra.mxu0 %v9087_v27  ;;  %6191 = vmatpush1.bf16.msra.mxu1 %v9171_v47 }
 0x83d   :  { %6129 = vmatprep.subr.bf16.mxu0 %v9089_v17  ;;  %6193 = vmatprep.subr.bf16.mxu1 %v9090_v28 }
 0x840   :  { %6131 = vmatpush1.bf16.msra.mxu0 %v9091_v32  ;;  %6195 = vmatpush1.bf16.msra.mxu1 %v9092_v11 }
 0x841   :  { %6133 = vmatprep.subr.bf16.mxu0 %v9093_v8  ;;  %6197 = vmatprep.subr.bf16.mxu1 %v9094_v15 }
 0x844   :  { %6135 = vmatpush1.bf16.msra.mxu0 %v9095_v14  ;;  %6199 = vmatpush1.bf16.msra.mxu1 %v9096_v56 }
 0x845   :  { %6137 = vmatprep.subr.bf16.mxu0 %v9097_v37  ;;  %6201 = vmatprep.subr.bf16.mxu1 %v9014_v57 }
 0x848   :  { %6139 = vmatpush1.bf16.msra.mxu0 %v9440_v62  ;;  %6203 = vmatpush1.bf16.msra.mxu1 %v9441_v10 }
 0x849   :  { %6141 = vmatprep.subr.bf16.mxu0 %v9442_v46  ;;  %6205 = vmatprep.subr.bf16.mxu1 %v9443_v43 }
 0x84c   :  { %6143 = vmatpush1.bf16.msra.mxu0 %v9444_v45  ;;  %6207 = vmatpush1.bf16.msra.mxu1 %v9445_v0 }
 0x84d   :  { %6145 = vmatprep.subr.bf16.mxu0 %v9446_v7  ;;  %6209 = vmatprep.subr.bf16.mxu1 %v9447_v4  ;;  %v9529_v4 = vld [vmem:[#allocation151_spill] sm:$0xff] }
 0x850   :  { %6147 = vmatpush1.bf16.msra.mxu0 %v9448_v25  ;;  %6211 = vmatpush1.bf16.msra.mxu1 %v9449_v13 }
 0x851   :  { %6149 = vmatprep.subr.bf16.mxu0 %v9450_v48  ;;  %6213 = vmatprep.subr.bf16.mxu1 %v9451_v26  ;;  %v9461_v48 = vld [vmem:[#allocation145_spill] sm:$0xff]  ;;  %v9462_v26 = vld [vmem:[#allocation18_spill] sm:$0xff] }
 0x854   :  { %6151 = vmatpush1.bf16.msra.mxu0 %v9452_v3  ;;  %6215 = vmatpush1.bf16.msra.mxu1 %v9453_v33  ;;  %v9463_v3 = vld [vmem:[#allocation19_spill] sm:$0xff] }
 0x855   :  { %6153 = vmatprep.subr.bf16.mxu0 %v9454_v2  ;;  %6217 = vmatprep.subr.bf16.mxu1 %v9455_v29  ;;  %v9464_v29 = vld [vmem:[#allocation20_spill] sm:$0xff]  ;;  %v9473_v2 = vld [vmem:[#allocation29_spill] sm:$0xff] }
 0x858   :  { %6155 = vmatpush1.bf16.msra.mxu0 %v9456_v23  ;;  %6219 = vmatpush1.bf16.msra.mxu1 %v9457_v34  ;;  %v9465_v23 = vld [vmem:[#allocation21_spill] sm:$0xff]  ;;  %v9466_v34 = vld [vmem:[#allocation22_spill] sm:$0xff] }
 0x859   :  { %6157 = vmatprep.subr.bf16.mxu0 %v9458_v59  ;;  %6221 = vmatprep.subr.bf16.mxu1 %v9459_v19  ;;  %v9467_v59 = vld [vmem:[#allocation23_spill] sm:$0xff]  ;;  %v9468_v19 = vld [vmem:[#allocation24_spill] sm:$0xff] }
 0x85c   :  { %6159 = vmatpush1.bf16.msra.mxu0 %v9460_v35  ;;  %6223 = vmatpush1.bf16.msra.mxu1 %v9461_v48  ;;  %v9469_v35 = vld [vmem:[#allocation25_spill] sm:$0xff]  ;;  %v9470_v48 = vld [vmem:[#allocation26_spill] sm:$0xff] }
 0x85d   :  { %6225 = vmatprep.subr.bf16.mxu0 %v9462_v26  ;;  %6289 = vmatprep.subr.bf16.mxu1 %v9463_v3  ;;  %v9471_v26 = vld [vmem:[#allocation27_spill] sm:$0xff]  ;;  %v9472_v3 = vld [vmem:[#allocation28_spill] sm:$0xff] }
 0x85f   :  { %3406 = vmatmul.mubr.f32.vlgmr.msra.gmra.mrb[34].mxu0 %v8250_v63  ;;  %3477 = vmatmul.mubr.f32.vlgmr.msra.gmra.mrb[34].mxu1 %v8250_v63  ;;  %v9474_v63 = vld [vmem:[#allocation30_spill] sm:$0xff] }
 0x860   :  { %6227 = vmatpush1.bf16.msra.mxu0 %v9464_v29  ;;  %6291 = vmatpush1.bf16.msra.mxu1 %v9465_v23  ;;  %v9475_v29 = vld [vmem:[#allocation31_spill] sm:$0xff]  ;;  %v9476_v23 = vld [vmem:[#allocation32_spill] sm:$0xff] }
 0x861   :  { %6229 = vmatprep.subr.bf16.mxu0 %v9466_v34  ;;  %6293 = vmatprep.subr.bf16.mxu1 %v9467_v59  ;;  %v9477_v34 = vld [vmem:[#allocation33_spill] sm:$0xff]  ;;  %v9478_v59 = vld [vmem:[#allocation34_spill] sm:$0xff] }
 0x864   :  { %6231 = vmatpush1.bf16.msra.mxu0 %v9468_v19  ;;  %6295 = vmatpush1.bf16.msra.mxu1 %v9469_v35  ;;  %v9479_v19 = vld [vmem:[#allocation35_spill] sm:$0xff]  ;;  %v9480_v35 = vld [vmem:[#allocation36_spill] sm:$0xff] }
 0x865   :  { %6233 = vmatprep.subr.bf16.mxu0 %v9470_v48  ;;  %6297 = vmatprep.subr.bf16.mxu1 %v9471_v26  ;;  %v9481_v48 = vld [vmem:[#allocation37_spill] sm:$0xff]  ;;  %v9482_v26 = vld [vmem:[#allocation38_spill] sm:$0xff] }
 0x868   :  { %6235 = vmatpush1.bf16.msra.mxu0 %v9472_v3  ;;  %6299 = vmatpush1.bf16.msra.mxu1 %v9473_v2  ;;  %v9483_v3 = vld [vmem:[#allocation39_spill] sm:$0xff]  ;;  %v9484_v2 = vld [vmem:[#allocation40_spill] sm:$0xff] }
 0x869   :  { %6237 = vmatprep.subr.bf16.mxu0 %v9474_v63  ;;  %6301 = vmatprep.subr.bf16.mxu1 %v9475_v29  ;;  %v9485_v63 = vld [vmem:[#allocation41_spill] sm:$0xff]  ;;  %v9486_v29 = vld [vmem:[#allocation42_spill] sm:$0xff] }
 0x86c   :  { %6239 = vmatpush1.bf16.msra.mxu0 %v9476_v23  ;;  %6303 = vmatpush1.bf16.msra.mxu1 %v9477_v34  ;;  %v9487_v23 = vld [vmem:[#allocation43_spill] sm:$0xff]  ;;  %v9488_v34 = vld [vmem:[#allocation44_spill] sm:$0xff] }
 0x86d   :  { %6241 = vmatprep.subr.bf16.mxu0 %v9478_v59  ;;  %6305 = vmatprep.subr.bf16.mxu1 %v9479_v19  ;;  %v9489_v59 = vld [vmem:[#allocation45_spill] sm:$0xff]  ;;  %v9490_v19 = vld [vmem:[#allocation46_spill] sm:$0xff] }
 0x870   :  { %6243 = vmatpush1.bf16.msra.mxu0 %v9480_v35  ;;  %6307 = vmatpush1.bf16.msra.mxu1 %v9481_v48  ;;  %v9491_v35 = vld [vmem:[#allocation47_spill] sm:$0xff]  ;;  %v9492_v48 = vld [vmem:[#allocation48_spill] sm:$0xff] }
 0x871   :  { %6245 = vmatprep.subr.bf16.mxu0 %v9482_v26  ;;  %6309 = vmatprep.subr.bf16.mxu1 %v9483_v3  ;;  %v9493_v26 = vld [vmem:[#allocation49_spill] sm:$0xff]  ;;  %v9494_v3 = vld [vmem:[#allocation50_spill] sm:$0xff] }
 0x874   :  { %6247 = vmatpush1.bf16.msra.mxu0 %v9484_v2  ;;  %6311 = vmatpush1.bf16.msra.mxu1 %v9485_v63  ;;  %v9495_v2 = vld [vmem:[#allocation51_spill] sm:$0xff]  ;;  %v9496_v63 = vld [vmem:[#allocation52_spill] sm:$0xff] }
 0x875   :  { %6249 = vmatprep.subr.bf16.mxu0 %v9486_v29  ;;  %6313 = vmatprep.subr.bf16.mxu1 %v9487_v23  ;;  %v9497_v29 = vld [vmem:[#allocation53_spill] sm:$0xff]  ;;  %v9498_v23 = vld [vmem:[#allocation54_spill] sm:$0xff] }
 0x878   :  { %6251 = vmatpush1.bf16.msra.mxu0 %v9488_v34  ;;  %6315 = vmatpush1.bf16.msra.mxu1 %v9489_v59  ;;  %v9499_v34 = vld [vmem:[#allocation55_spill] sm:$0xff]  ;;  %v9500_v59 = vld [vmem:[#allocation56_spill] sm:$0xff] }
 0x879   :  { %6253 = vmatprep.subr.bf16.mxu0 %v9490_v19  ;;  %6317 = vmatprep.subr.bf16.mxu1 %v9491_v35  ;;  %v9501_v19 = vld [vmem:[#allocation57_spill] sm:$0xff]  ;;  %v9502_v35 = vld [vmem:[#allocation58_spill] sm:$0xff] }
 0x87c   :  { %6255 = vmatpush1.bf16.msra.mxu0 %v9492_v48  ;;  %6319 = vmatpush1.bf16.msra.mxu1 %v9493_v26  ;;  %v9503_v48 = vld [vmem:[#allocation59_spill] sm:$0xff]  ;;  %v9504_v26 = vld [vmem:[#allocation60_spill] sm:$0xff] }
 0x87d   :  { %6257 = vmatprep.subr.bf16.mxu0 %v9494_v3  ;;  %6321 = vmatprep.subr.bf16.mxu1 %v9495_v2  ;;  %v9505_v3 = vld [vmem:[#allocation61_spill] sm:$0xff]  ;;  %v9506_v2 = vld [vmem:[#allocation62_spill] sm:$0xff] }
 0x880   :  { %6259 = vmatpush1.bf16.msra.mxu0 %v9496_v63  ;;  %6323 = vmatpush1.bf16.msra.mxu1 %v9497_v29  ;;  %v9507_v63 = vld [vmem:[#allocation63_spill] sm:$0xff]  ;;  %v9508_v29 = vld [vmem:[#allocation64_spill] sm:$0xff] }
 0x881   :  { %6261 = vmatprep.subr.bf16.mxu0 %v9498_v23  ;;  %6325 = vmatprep.subr.bf16.mxu1 %v9499_v34  ;;  %v9509_v23 = vld [vmem:[#allocation65_spill] sm:$0xff]  ;;  %v9510_v34 = vld [vmem:[#allocation66_spill] sm:$0xff] }
 0x884   :  { %6263 = vmatpush1.bf16.msra.mxu0 %v9500_v59  ;;  %6327 = vmatpush1.bf16.msra.mxu1 %v9501_v19  ;;  %v9511_v59 = vld [vmem:[#allocation67_spill] sm:$0xff]  ;;  %v9512_v19 = vld [vmem:[#allocation68_spill] sm:$0xff] }
 0x885   :  { %6265 = vmatprep.subr.bf16.mxu0 %v9502_v35  ;;  %6329 = vmatprep.subr.bf16.mxu1 %v9503_v48  ;;  %v9513_v35 = vld [vmem:[#allocation69_spill] sm:$0xff]  ;;  %v9514_v48 = vld [vmem:[#allocation70_spill] sm:$0xff] }
 0x888   :  { %6267 = vmatpush1.bf16.msra.mxu0 %v9504_v26  ;;  %6331 = vmatpush1.bf16.msra.mxu1 %v9505_v3  ;;  %v9515_v26 = vld [vmem:[#allocation71_spill] sm:$0xff]  ;;  %v9516_v3 = vld [vmem:[#allocation72_spill] sm:$0xff] }
 0x889   :  { %6269 = vmatprep.subr.bf16.mxu0 %v9506_v2  ;;  %6333 = vmatprep.subr.bf16.mxu1 %v9507_v63  ;;  %v9517_v2 = vld [vmem:[#allocation73_spill] sm:$0xff]  ;;  %v9518_v63 = vld [vmem:[#allocation74_spill] sm:$0xff] }
 0x88c   :  { %6271 = vmatpush1.bf16.msra.mxu0 %v9508_v29  ;;  %6335 = vmatpush1.bf16.msra.mxu1 %v9509_v23  ;;  %v9519_v29 = vld [vmem:[#allocation75_spill] sm:$0xff]  ;;  %v9520_v23 = vld [vmem:[#allocation76_spill] sm:$0xff] }
 0x88d   :  { %6273 = vmatprep.subr.bf16.mxu0 %v9510_v34  ;;  %6337 = vmatprep.subr.bf16.mxu1 %v9511_v59  ;;  %v9521_v34 = vld [vmem:[#allocation77_spill] sm:$0xff]  ;;  %v9522_v59 = vld [vmem:[#allocation78_spill] sm:$0xff] }
 0x890   :  { %6275 = vmatpush1.bf16.msra.mxu0 %v9512_v19  ;;  %6339 = vmatpush1.bf16.msra.mxu1 %v9513_v35  ;;  %v9523_v19 = vld [vmem:[#allocation79_spill] sm:$0xff]  ;;  %v9524_v35 = vld [vmem:[#allocation80_spill] sm:$0xff] }
 0x891   :  { %6277 = vmatprep.subr.bf16.mxu0 %v9514_v48  ;;  %6341 = vmatprep.subr.bf16.mxu1 %v9515_v26  ;;  %v9525_v48 = vld [vmem:[#allocation81_spill] sm:$0xff]  ;;  %v9526_v26 = vld [vmem:[#allocation82_spill] sm:$0xff] }
 0x894   :  { %6279 = vmatpush1.bf16.msra.mxu0 %v9516_v3  ;;  %6343 = vmatpush1.bf16.msra.mxu1 %v9517_v2  ;;  %v9527_v3 = vld [vmem:[#allocation83_spill] sm:$0xff] }
 0x895   :  { %6281 = vmatprep.subr.bf16.mxu0 %v9518_v63  ;;  %6345 = vmatprep.subr.bf16.mxu1 %v9519_v29 }
 0x898   :  { %6283 = vmatpush1.bf16.msra.mxu0 %v9520_v23  ;;  %6347 = vmatpush1.bf16.msra.mxu1 %v9521_v34 }
 0x899   :  { %6285 = vmatprep.subr.bf16.mxu0 %v9522_v59  ;;  %6349 = vmatprep.subr.bf16.mxu1 %v9523_v19  ;;  %v9528_v19 = vld [vmem:[#allocation149_spill] sm:$0xff] }
 0x89c   :  { %6287 = vmatpush1.bf16.msra.mxu0 %v9524_v35  ;;  %6351 = vmatpush1.bf16.msra.mxu1 %v9525_v48  ;;  %v9530_v35 = vcombine.low %v9528_v19, %v9529_v4 }
 0x89d   :  { %6353 = vmatprep.subr.bf16.mxu0 %v9526_v26  ;;  %6417 = vmatprep.subr.bf16.mxu1 %v9527_v3 }
 0x8f2   :  { %v3265_v2 = vpop.f32.mrb[32].mxu0  ;;  %v3336_v63 = vpop.f32.mrb[32].mxu1 }
 0x8f3   :  { %v3267_v33 = vpop.f32.mrb[33].mxu0  ;;  %v3338_v29 = vpop.f32.mrb[33].mxu1 }
 0x8f4   :  { %v3491_v13 = vcombine.low %v3265_v2, %v3267_v33  ;;  %v3492_v23 = vcombine.low %v3336_v63, %v3338_v29 }
 0x8f6   :  { %v3499_v34 = vrot.slane %v3491_v13, %v7405_v42  ;;  %v3506_v59 = vrot.slane %v3492_v23, %v7405_v42 }
 0x8f8   :  { %v3507_v25 = vcombine.low %v3499_v34, %v3506_v59 }
 0x8fa   :  { %v3527_v7 = vadd.f32 %v3507_v25, %v9530_v35  ;;  %v9531_v35 = vld [vmem:[#allocation155_spill] sm:$0xff] }
 0x8fc   :  { %v3536_v48 = vrot.slane %v3527_v7, 4  ;;  %v4287_v26 = vmul.f32 -1.442695, %v3527_v7  ;;  %v9532_v7 = vld [vmem:[#allocation157_spill] sm:$0xff] }
 0x8fe   :  { %v4288_v0 = vmul.f32 -1.442695, %v3536_v48 }
 0x900   :  { %6653 = vpow2.f32 %v4288_v0  ;;  %v9533_v0 = vcombine.low %v9531_v35, %v9532_v7 }
 0x901   :  { %6655 = vpow2.f32 %v4287_v26 }
 0x90a   :  { %v6654_v43 = vpop.eup %6653 }
 0x90b   :  { %v6656_v2 = vpop.eup %6655  ;;  %v3541_v29 = vadd.f32 1.0, %v6654_v43 }
 0x90c   :  { %v3532_v59 = vadd.f32 1.0, %v6656_v2 }
 0x90d   :  { %6657 = vrcp.f32 %v3541_v29 }
 0x90e   :  { %6659 = vrcp.f32 %v3532_v59 }
 0x917   :  { %v6658_v19 = vpop.eup %6657 }
 0x918   :  { %v3554_v43 = vmul.f32 %v6658_v19, %v8246_v54  ;;  %v3966_v19 = vld [vmem:[#allocation11 + $0x28] sm:$0xff] }
 0x932   :  { %v3407_v3 = vpop.f32.mrb[34].mxu0  ;;  %v3478_v45 = vpop.f32.mrb[34].mxu1 }
 0x933   :  { %v3409_v46 = vpop.f32.mrb[35].mxu0  ;;  %v3480_v33 = vpop.f32.mrb[35].mxu1 }
 0x934   :  { %v3508_v63 = vcombine.low %v3407_v3, %v3409_v46  ;;  %v3509_v13 = vcombine.low %v3478_v45, %v3480_v33  ;;  %v6660_v46 = vpop.eup %6659 }
 0x936   :  { %v3516_v23 = vrot.slane %v3508_v63, %v7405_v42  ;;  %v3523_v34 = vrot.slane %v3509_v13, %v7405_v42 }
 0x938   :  { %v3524_v25 = vcombine.low %v3516_v23, %v3523_v34 }
 0x93a   :  { %v3528_v48 = vadd.f32 %v3524_v25, %v9533_v0  ;;  %v3981_v25 = vld [vmem:[#allocation11 + $0xa0] sm:$0xff]  ;;  %v3982_v0 = vld [vmem:[#allocation11 + $0xa8] sm:$0xff] }
 0x93c   :  { %6661 = vtanh.f32 %v3528_v48  ;;  %v3546_v26 = vrot.slane %v3528_v48, 4  ;;  %v6488_v48 = vpack.c.bf16 %v3982_v0, %v3981_v25 }
 0x93e   :  { %v4289_v4 = vmul.f32 -1.442695, %v3546_v26  ;;  %v3967_v26 = vld [vmem:[#allocation11 + $0x30] sm:$0xff] }
 0x940   :  { %6663 = vpow2.f32 %v4289_v4 }
 0x946   :  { %v6662_v45 = vpop.eup %6661 }
 0x947   :  { %v3555_v3 = vmul.f32 %v6662_v45, %v6660_v46  ;;  %v3968_v46 = vld [vmem:[#allocation11 + $0x38] sm:$0xff] }
 0x948   :  { %v6524_v45 = vpack.c.bf16 %v3968_v46, %v3967_v26 }
 0x949   :  { %v8397_v33 = vadd.f32 %v3555_v3, %v3554_v43  ;;  %v3983_v43 = vld [vmem:[#allocation11 + $0xb0] sm:$0xff]  ;;  %v3984_v3 = vld [vmem:[#allocation11 + $0xb8] sm:$0xff] }
 0x94a   :  { %v6664_v2 = vpop.eup %6663 }
 0x94b   :  { %v3551_v63 = vadd.f32 1.0, %v6664_v2  ;;  %6665 = vtanh.f32 %v8397_v33  ;;  %v6492_v2 = vpack.c.bf16 %v3984_v3, %v3983_v43 }
 0x94d   :  { %6667 = vrcp.f32 %v3551_v63  ;;  %v3969_v63 = vld [vmem:[#allocation11 + $0x40] sm:$0xff] }
 0x955   :  { %v6666_v13 = vpop.eup %6665 }
 0x957   :  { %v6668_v29 = vpop.eup %6667 }
 0x958   :  { %v3558_v23 = vmul.f32 %v6668_v29, %v6666_v13  ;;  %v3970_v13 = vld [vmem:[#allocation11 + $0x48] sm:$0xff] }
 0x959   :  { %v6528_v29 = vpack.c.bf16 %v3970_v13, %v3969_v63 }
 0x95a   :  { %3560 = vst [vmem:[#allocation3 + $0xc] sm:$0x3] %v3558_v23  ;;  %v3562_v34 = vrot.slane %v3558_v23, 2  ;;  %v8401_v4 = vrot.slane %v3558_v23, %v7405_v42  ;;  %v3985_v23 = vld [vmem:[#allocation11 + $0xc0] sm:$0xff] }
 0x95c   :  { %3565 = vst [vmem:[#allocation4 + $0x2] sm:$0x3] %v3562_v34  ;;  %v3576_v54 = vcombine.high %v8401_v4, %v8401_v4  ;;  %v3986_v34 = vld [vmem:[#allocation11 + $0xc8] sm:$0xff] }
 0x95e   :  { %3643 = vmatprep.mubr.f32.mxu0 %v3576_v54  ;;  %3714 = vmatprep.mubr.f32.mxu1 %v3576_v54 }
 0x95f   :  { %3644 = vmatmul.mubr.f32.vlgmr.msra.gmra.mrb[36].mxu0 %v8401_v4  ;;  %3715 = vmatmul.mubr.f32.vlgmr.msra.gmra.mrb[36].mxu1 %v8401_v4 }
 0x960   :  { %6355 = vmatpush1.bf16.msra.mxu0 %v8975_v18  ;;  %6419 = vmatpush1.bf16.msra.mxu1 %v8976_v49  ;;  %v9534_v18 = vld [vmem:[#allocation126_spill] sm:$0xff]  ;;  %v9535_v49 = vld [vmem:[#allocation127_spill] sm:$0xff] }
 0x961   :  { %3785 = vmatprep.mubr.f32.mxu0 %v3576_v54  ;;  %3856 = vmatprep.mubr.f32.mxu1 %v3576_v54  ;;  %v3971_v54 = vld [vmem:[#allocation11 + $0x50] sm:$0xff] }
 0x962   :  { %6357 = vmatprep.subr.bf16.mxu0 %v8977_v60  ;;  %6421 = vmatprep.subr.bf16.mxu1 %v8978_v22  ;;  %v9536_v60 = vld [vmem:[#allocation128_spill] sm:$0xff]  ;;  %v9537_v22 = vld [vmem:[#allocation129_spill] sm:$0xff] }
 0x964   :  { %6359 = vmatpush1.bf16.msra.mxu0 %v8979_v24  ;;  %6423 = vmatpush1.bf16.msra.mxu1 %v8980_v6  ;;  %v9538_v24 = vld [vmem:[#allocation130_spill] sm:$0xff]  ;;  %v9539_v6 = vld [vmem:[#allocation131_spill] sm:$0xff] }
 0x965   :  { %6361 = vmatprep.subr.bf16.mxu0 %v8981_v53  ;;  %6425 = vmatprep.subr.bf16.mxu1 %v8982_v41  ;;  %v9540_v53 = vld [vmem:[#allocation132_spill] sm:$0xff]  ;;  %v9541_v41 = vld [vmem:[#allocation133_spill] sm:$0xff] }
 0x968   :  { %6363 = vmatpush1.bf16.msra.mxu0 %v8983_v9  ;;  %6427 = vmatpush1.bf16.msra.mxu1 %v8984_v12  ;;  %v9542_v9 = vld [vmem:[#allocation134_spill] sm:$0xff]  ;;  %v9543_v12 = vld [vmem:[#allocation135_spill] sm:$0xff] }
 0x969   :  { %6365 = vmatprep.subr.bf16.mxu0 %v8985_v30  ;;  %6429 = vmatprep.subr.bf16.mxu1 %v8986_v61  ;;  %v3948_v30 = vld [vmem:[#allocation3 + $0x6] sm:$0x3]  ;;  %v9544_v61 = vld [vmem:[#allocation136_spill] sm:$0xff] }
 0x96c   :  { %6367 = vmatpush1.bf16.msra.mxu0 %v8987_v5  ;;  %6431 = vmatpush1.bf16.msra.mxu1 %v9072_v21  ;;  %v9545_v5 = vld [vmem:[#allocation137_spill] sm:$0xff]  ;;  %v9547_v21 = vld [vmem:[#allocation139_spill] sm:$0xff] }
 0x96d   :  { %6369 = vmatprep.subr.bf16.mxu0 %v9073_v38  ;;  %6433 = vmatprep.subr.bf16.mxu1 %v9074_v39  ;;  %v3946_v38 = vld [vmem:[#allocation3 + $0x2] sm:$0x3]  ;;  %v3947_v39 = vld [vmem:[#allocation3 + $0x4] sm:$0x3] }
 0x970   :  { %6371 = vmatpush1.bf16.msra.mxu0 %v9075_v40  ;;  %6435 = vmatpush1.bf16.msra.mxu1 %v9076_v20  ;;  %v4121_v40 = vcombine.low %v3947_v39, %v3948_v30  ;;  %v3945_v20 = vld [vmem:[#allocation3] sm:$0x3] }
 0x971   :  { %6373 = vmatprep.subr.bf16.mxu0 %v9077_v16  ;;  %6437 = vmatprep.subr.bf16.mxu1 %v9078_v44  ;;  %v9548_v16 = vld [vmem:[#allocation140_spill] sm:$0xff]  ;;  %v9549_v44 = vld [vmem:[#allocation141_spill] sm:$0xff] }
 0x974   :  { %6375 = vmatpush1.bf16.msra.mxu0 %v9079_v50  ;;  %6439 = vmatpush1.bf16.msra.mxu1 %v9080_v51  ;;  %v4120_v50 = vcombine.low %v3945_v20, %v3946_v38  ;;  %v9550_v51 = vld [vmem:[#allocation142_spill] sm:$0xff]  ;;  %v3992_v38 = vld [vmem:[#allocation11 + $0xf8] sm:$0xff] }
 0x975   :  { %6377 = vmatprep.subr.bf16.mxu0 %v9081_v52  ;;  %6441 = vmatprep.subr.bf16.mxu1 %v9166_v1  ;;  %v9551_v52 = vld [vmem:[#allocation143_spill] sm:$0xff] }
 0x978   :  { %6379 = vmatpush1.bf16.msra.mxu0 %v9167_v36  ;;  %6443 = vmatpush1.bf16.msra.mxu1 %v9168_v55  ;;  %v3963_v36 = vld [vmem:[#allocation11 + $0x10] sm:$0xff]  ;;  %v3964_v55 = vld [vmem:[#allocation11 + $0x18] sm:$0xff] }
 0x979   :  { %6381 = vmatprep.subr.bf16.mxu0 %v9169_v31  ;;  %6445 = vmatprep.subr.bf16.mxu1 %v9170_v58  ;;  %v6516_v31 = vpack.c.bf16 %v3964_v55, %v3963_v36  ;;  %v3979_v58 = vld [vmem:[#allocation11 + $0x90] sm:$0xff] }
 0x97c   :  { %6383 = vmatpush1.bf16.msra.mxu0 %v9087_v27  ;;  %6447 = vmatpush1.bf16.msra.mxu1 %v9171_v47  ;;  %v3961_v27 = vld [vmem:[#allocation11] sm:$0xff]  ;;  %v3980_v47 = vld [vmem:[#allocation11 + $0x98] sm:$0xff] }
 0x97d   :  { %6385 = vmatprep.subr.bf16.mxu0 %v9089_v17  ;;  %6449 = vmatprep.subr.bf16.mxu1 %v9090_v28  ;;  %v3962_v17 = vld [vmem:[#allocation11 + $0x8] sm:$0xff] }
 0x97e   :  { %v6512_v28 = vpack.c.bf16 %v3962_v17, %v3961_v27 }
 0x980   :  { %6387 = vmatpush1.bf16.msra.mxu0 %v9091_v32  ;;  %6451 = vmatpush1.bf16.msra.mxu1 %v9092_v11  ;;  %v3977_v32 = vld [vmem:[#allocation11 + $0x80] sm:$0xff]  ;;  %v3978_v11 = vld [vmem:[#allocation11 + $0x88] sm:$0xff] }
 0x981   :  { %6389 = vmatprep.subr.bf16.mxu0 %v9093_v8  ;;  %6453 = vmatprep.subr.bf16.mxu1 %v9094_v15  ;;  %v4135_v8 = vrot.slane %v4121_v40, %v7405_v42  ;;  %v9552_v15 = vld [vmem:[#allocation144_spill] sm:$0xff]  ;;  %v6480_v1 = vpack.c.bf16 %v3978_v11, %v3977_v32 }
 0x984   :  { %6391 = vmatpush1.bf16.msra.mxu0 %v9095_v14  ;;  %6455 = vmatpush1.bf16.msra.mxu1 %v9096_v56  ;;  %v9553_v14 = vld [vmem:[#allocation145_spill] sm:$0xff]  ;;  %v4128_v56 = vrot.slane %v4120_v50, %v7405_v42 }
 0x985   :  { %6393 = vmatprep.subr.bf16.mxu0 %v9097_v37  ;;  %6457 = vmatprep.subr.bf16.mxu1 %v9014_v57  ;;  %v9546_v57 = vld [vmem:[#allocation138_spill] sm:$0xff] }
 0x986   :  { %v4136_v37 = vcombine.low %v4128_v56, %v4135_v8  ;;  %v9555_v56 = vld [vmem:[#allocation151_spill] sm:$0xff] }
 0x988   :  { %6395 = vmatpush1.bf16.msra.mxu0 %v9440_v62  ;;  %6459 = vmatpush1.bf16.msra.mxu1 %v9441_v10  ;;  %v6484_v62 = vpack.c.bf16 %v3980_v47, %v3979_v58  ;;  %v3965_v10 = vld [vmem:[#allocation11 + $0x20] sm:$0xff] }
 0x989   :  { %6397 = vmatprep.subr.bf16.mxu0 %v9534_v18  ;;  %6461 = vmatprep.subr.bf16.mxu1 %v9535_v49  ;;  %v6520_v59 = vpack.c.bf16 %v3966_v19, %v3965_v10  ;;  %v3972_v18 = vld [vmem:[#allocation11 + $0x58] sm:$0xff] }
 0x98a   :  { %v6532_v49 = vpack.c.bf16 %v3972_v18, %v3971_v54  ;;  %v3950_v18 = vld [vmem:[#allocation3 + $0xa] sm:$0x3] }
 0x98c   :  { %6399 = vmatpush1.bf16.msra.mxu0 %v9536_v60  ;;  %6463 = vmatpush1.bf16.msra.mxu1 %v9537_v22  ;;  %v3987_v60 = vld [vmem:[#allocation11 + $0xd0] sm:$0xff]  ;;  %v3988_v22 = vld [vmem:[#allocation11 + $0xd8] sm:$0xff] }
 0x98d   :  { %6401 = vmatprep.subr.bf16.mxu0 %v9538_v24  ;;  %6465 = vmatprep.subr.bf16.mxu1 %v9539_v6  ;;  %v3973_v24 = vld [vmem:[#allocation11 + $0x60] sm:$0xff]  ;;  %v6500_v6 = vpack.c.bf16 %v3988_v22, %v3987_v60  ;;  %v3949_v60 = vld [vmem:[#allocation3 + $0x8] sm:$0x3] }
 0x98e   :  { %v3955_v22 = vld [vmem:[#allocation4 + $0x4] sm:$0x3] }
 0x990   :  { %6403 = vmatpush1.bf16.msra.mxu0 %v9540_v53  ;;  %6467 = vmatpush1.bf16.msra.mxu1 %v9541_v41  ;;  %v3974_v53 = vld [vmem:[#allocation11 + $0x68] sm:$0xff]  ;;  %v3989_v41 = vld [vmem:[#allocation11 + $0xe0] sm:$0xff] }
 0x991   :  { %6405 = vmatprep.subr.bf16.mxu0 %v9542_v9  ;;  %6469 = vmatprep.subr.bf16.mxu1 %v9543_v12  ;;  %v3990_v9 = vld [vmem:[#allocation11 + $0xe8] sm:$0xff]  ;;  %v6536_v12 = vpack.c.bf16 %v3974_v53, %v3973_v24  ;;  %v4137_v24 = vcombine.low %v3949_v60, %v3950_v18 }
 0x992   :  { %v6504_v30 = vpack.c.bf16 %v3990_v9, %v3989_v41  ;;  %v3959_v53 = vld [vmem:[#allocation4 + $0xc] sm:$0x3]  ;;  %v3956_v9 = vld [vmem:[#allocation4 + $0x6] sm:$0x3] }
 0x994   :  { %6407 = vmatpush1.bf16.msra.mxu0 %v9544_v61  ;;  %6471 = vmatpush1.bf16.msra.mxu1 %v9545_v5  ;;  %v3975_v61 = vld [vmem:[#allocation11 + $0x70] sm:$0xff]  ;;  %v3976_v5 = vld [vmem:[#allocation11 + $0x78] sm:$0xff] }
 0x995   :  { %6409 = vmatprep.subr.bf16.mxu0 %v9546_v57  ;;  %6473 = vmatprep.subr.bf16.mxu1 %v9547_v21  ;;  %v3991_v57 = vld [vmem:[#allocation11 + $0xf0] sm:$0xff]  ;;  %v6540_v21 = vpack.c.bf16 %v3976_v5, %v3975_v61  ;;  %v4002_v61 = vcombine.low %v3955_v22, %v3956_v9  ;;  %v3960_v5 = vld [vmem:[#allocation4 + $0xe] sm:$0x3] }
 0x996   :  { %v6508_v39 = vpack.c.bf16 %v3992_v38, %v3991_v57  ;;  %v4019_v38 = vcombine.low %v3959_v53, %v3960_v5 }
 0x998   :  { %6411 = vmatpush1.bf16.msra.mxu0 %v9548_v16  ;;  %6475 = vmatpush1.bf16.msra.mxu1 %v9549_v44 }
 0x999   :  { %6413 = vmatprep.subr.bf16.mxu0 %v9550_v51  ;;  %6477 = vmatprep.subr.bf16.mxu1 %v9551_v52 }
 0x99c   :  { %6415 = vmatpush1.bf16.msra.mxu0 %v9552_v15  ;;  %6479 = vmatpush1.bf16.msra.mxu1 %v9553_v14  ;;  %v9554_v14 = vld [vmem:[#allocation149_spill] sm:$0xff] }
 0x99d   :  { %6513 = vmatprep.subr.bf16.mxu0 %v6512_v28  ;;  %6481 = vmatprep.subr.bf16.mxu1 %v6480_v1 }
 0x99f   :  { %3786 = vmatmul.mubr.f32.vlgmr.msra.gmra.mrb[38].mxu0 %v8401_v4  ;;  %3857 = vmatmul.mubr.f32.vlgmr.msra.gmra.mrb[38].mxu1 %v8401_v4  ;;  %v6496_v4 = vpack.c.bf16 %v3986_v34, %v3985_v23 }
 0x9a0   :  { %4397 = vmatprep.mubr.f32.mxu0 %v4136_v37  ;;  %6515 = vmatpush3.bf16.msra.mxu0 %v6512_v28  ;;  %v9556_v37 = vcombine.high %v9554_v14, %v9555_v56 }
 0x9a1   :  { %6483 = vmatpush3.bf16.msra.mxu1 %v6480_v1  ;;  %6517 = vmatprep.subr.bf16.mxu0 %v6516_v31 }
 0x9a2   :  { %6485 = vmatprep.subr.bf16.mxu1 %v6484_v62 }
 0x9a4   :  { %6519 = vmatpush3.bf16.msra.mxu0 %v6516_v31 }
 0x9a5   :  { %6487 = vmatpush3.bf16.msra.mxu1 %v6484_v62  ;;  %6521 = vmatprep.subr.bf16.mxu0 %v6520_v59 }
 0x9a6   :  { %6489 = vmatprep.subr.bf16.mxu1 %v6488_v48 }
 0x9a8   :  { %6523 = vmatpush3.bf16.msra.mxu0 %v6520_v59 }
 0x9a9   :  { %6491 = vmatpush3.bf16.msra.mxu1 %v6488_v48  ;;  %6525 = vmatprep.subr.bf16.mxu0 %v6524_v45  ;;  %v9557_v48 = vcombine.high %v9531_v35, %v9532_v7 }
 0x9aa   :  { %6493 = vmatprep.subr.bf16.mxu1 %v6492_v2 }
 0x9ac   :  { %6527 = vmatpush3.bf16.msra.mxu0 %v6524_v45 }
 0x9ad   :  { %6495 = vmatpush3.bf16.msra.mxu1 %v6492_v2  ;;  %6529 = vmatprep.subr.bf16.mxu0 %v6528_v29 }
 0x9ae   :  { %6497 = vmatprep.subr.bf16.mxu1 %v6496_v4 }
 0x9b0   :  { %6531 = vmatpush3.bf16.msra.mxu0 %v6528_v29 }
 0x9b1   :  { %6499 = vmatpush3.bf16.msra.mxu1 %v6496_v4  ;;  %6533 = vmatprep.subr.bf16.mxu0 %v6532_v49 }
 0x9b2   :  { %6501 = vmatprep.subr.bf16.mxu1 %v6500_v6 }
 0x9b4   :  { %6535 = vmatpush3.bf16.msra.mxu0 %v6532_v49  ;;  %v3957_v49 = vld [vmem:[#allocation4 + $0x8] sm:$0x3] }
 0x9b5   :  { %6503 = vmatpush3.bf16.msra.mxu1 %v6500_v6  ;;  %6537 = vmatprep.subr.bf16.mxu0 %v6536_v12  ;;  %v3958_v6 = vld [vmem:[#allocation4 + $0xa] sm:$0x3] }
 0x9b6   :  { %6505 = vmatprep.subr.bf16.mxu1 %v6504_v30 }
 0x9b8   :  { %6539 = vmatpush3.bf16.msra.mxu0 %v6536_v12  ;;  %v4018_v12 = vcombine.low %v3957_v49, %v3958_v6 }
 0x9b9   :  { %6541 = vmatprep.subr.bf16.mxu0 %v6540_v21  ;;  %6507 = vmatpush3.bf16.msra.mxu1 %v6504_v30 }
 0x9ba   :  { %6509 = vmatprep.subr.bf16.mxu1 %v6508_v39 }
 0x9bc   :  { %6543 = vmatpush3.bf16.msra.mxu0 %v6540_v21  ;;  %v3954_v21 = vld [vmem:[#allocation4 + $0x2] sm:$0x3] }
 0x9bd   :  { %6511 = vmatpush3.bf16.msra.mxu1 %v6508_v39  ;;  %v4145_v39 = vrot.slane %v4137_v24, %v7405_v42 }
 0xa32   :  { %v3645_v40 = vpop.f32.mrb[36].mxu0  ;;  %v3716_v20 = vpop.f32.mrb[36].mxu1 }
 0xa33   :  { %v3647_v16 = vpop.f32.mrb[37].mxu0  ;;  %v3718_v44 = vpop.f32.mrb[37].mxu1 }
 0xa34   :  { %v3871_v50 = vcombine.low %v3645_v40, %v3647_v16  ;;  %v3872_v51 = vcombine.low %v3716_v20, %v3718_v44  ;;  %v4026_v16 = vrot.slane %v4018_v12, %v7405_v42 }
 0xa36   :  { %v3879_v52 = vrot.slane %v3871_v50, %v7405_v42  ;;  %v3886_v8 = vrot.slane %v3872_v51, %v7405_v42  ;;  %v4016_v51 = vrot.slane %v4002_v61, %v7405_v42 }
 0xa38   :  { %v3887_v15 = vcombine.low %v3879_v52, %v3886_v8  ;;  %v4033_v52 = vrot.slane %v4019_v38, %v7405_v42 }
 0xa3a   :  { %v3907_v27 = vadd.f32 %v3887_v15, %v9556_v37  ;;  %v4034_v15 = vcombine.low %v4026_v16, %v4033_v52 }
 0xa3c   :  { %v3916_v17 = vrot.slane %v3907_v27, 4  ;;  %v4290_v32 = vmul.f32 -1.442695, %v3907_v27  ;;  %v4293_v27 = vld [vmem:[%s8513_s5] ss:$0 sm:$0xff] }
 0xa3e   :  { %v4291_v28 = vmul.f32 -1.442695, %v3916_v17 }
 0xa40   :  { %6669 = vpow2.f32 %v4291_v28 }
 0xa41   :  { %6671 = vpow2.f32 %v4290_v32 }
 0xa4a   :  { %v6670_v36 = vpop.eup %6669 }
 0xa4b   :  { %v6672_v58 = vpop.eup %6671  ;;  %v3921_v10 = vadd.f32 1.0, %v6670_v36 }
 0xa4c   :  { %v3912_v25 = vadd.f32 1.0, %v6672_v58 }
 0xa4d   :  { %6673 = vrcp.f32 %v3921_v10 }
 0xa4e   :  { %6675 = vrcp.f32 %v3912_v25 }
 0xa57   :  { %v6674_v43 = vpop.eup %6673 }
 0xa58   :  { %v6676_v3 = vpop.eup %6675  ;;  %v3934_v63 = vmul.f32 %v6674_v43, %v8397_v33  ;;  %v3951_v33 = vld [vmem:[#allocation3 + $0xc] sm:$0x3] }
 0xa72   :  { %v3787_v11 = vpop.f32.mrb[38].mxu0  ;;  %v3858_v1 = vpop.f32.mrb[38].mxu1 }
 0xa73   :  { %v3789_v55 = vpop.f32.mrb[39].mxu0  ;;  %v3860_v31 = vpop.f32.mrb[39].mxu1 }
 0xa74   :  { %v3888_v47 = vcombine.low %v3787_v11, %v3789_v55  ;;  %v3889_v62 = vcombine.low %v3858_v1, %v3860_v31 }
 0xa76   :  { %v3896_v19 = vrot.slane %v3888_v47, %v7405_v42  ;;  %v3903_v59 = vrot.slane %v3889_v62, %v7405_v42 }
 0xa78   :  { %v3904_v0 = vcombine.low %v3896_v19, %v3903_v59 }
 0xa7a   :  { %v3908_v26 = vadd.f32 %v3904_v0, %v9557_v48 }
 0xa7c   :  { %6677 = vtanh.f32 %v3908_v26  ;;  %v3926_v46 = vrot.slane %v3908_v26, 4 }
 0xa7e   :  { %v4292_v45 = vmul.f32 -1.442695, %v3926_v46 }
 0xa80   :  { %6679 = vpow2.f32 %v4292_v45 }
 0xa86   :  { %v6678_v2 = vpop.eup %6677 }
 0xa87   :  { %v3935_v13 = vmul.f32 %v6678_v2, %v6676_v3 }
 0xa89   :  { %v3936_v29 = vadd.f32 %v3935_v13, %v3934_v63 }
 0xa8a   :  { %v6680_v23 = vpop.eup %6679 }
 0xa8b   :  { %v3931_v34 = vadd.f32 1.0, %v6680_v23  ;;  %6681 = vtanh.f32 %v3936_v29 }
 0xa8d   :  { %6683 = vrcp.f32 %v3931_v34 }
 0xa95   :  { %v6682_v4 = vpop.eup %6681 }
 0xa97   :  { %v6684_v54 = vpop.eup %6683 }
 0xa98   :  { %v3938_v35 = vmul.f32 %v6684_v54, %v6682_v4 }
 0xa9a   :  { %3940 = vst [vmem:[#allocation3 + $0xe] sm:$0x3] %v3938_v35  ;;  %v3942_v7 = vrot.slane %v3938_v35, 2 }
 0xa9c   :  { %3944 = vst [vmem:[#allocation4] sm:$0x3] %v3942_v7 }
 0xaa1   :  { %v3952_v41 = vld [vmem:[#allocation3 + $0xe] sm:$0x3] }
 0xaa2   :  { %v4138_v30 = vcombine.low %v3951_v33, %v3952_v41 }
 0xaa3   :  { %v3953_v57 = vld [vmem:[#allocation4] sm:$0x3] }
 0xaa4   :  { %v4152_v40 = vrot.slane %v4138_v30, %v7405_v42  ;;  %v4001_v20 = vcombine.low %v3953_v57, %v3954_v21 }
 0xaa6   :  { %v4153_v44 = vcombine.low %v4145_v39, %v4152_v40  ;;  %v4009_v50 = vrot.slane %v4001_v20, %v7405_v42 }
 0xaa8   :  { %4398 = vmatmul.mubr.f32.vlgmr.msra.gmra.mrb[40].mxu0 %v4153_v44  ;;  %v4017_v8 = vcombine.low %v4009_v50, %v4016_v51 }
 0xaaa   :  { %4362 = vmatprep.mubr.f32.mxu1 %v4017_v8 }
 0xaab   :  { %4363 = vmatmul.mubr.f32.vlgmr.msra.gmra.mrb[40].mxu1 %v4034_v15 }
 0xb7b   :  { %v4399_v14 = vpop.f32.mrb[40].mxu0 }
 0xb7c   :  { %v4222_v56 = vpop.f32.mrb[41].mxu0 }
 0xb7e   :  { %v4364_v37 = vpop.f32.mrb[40].mxu1 }
 0xb7f   :  { %v4228_v17 = vadd.f32 %v4399_v14, %v4364_v37  ;;  %v4103_v28 = vpop.f32.mrb[41].mxu1 }
 0xb80   :  { %v4223_v32 = vadd.f32 %v4222_v56, %v4103_v28 }
 0xb81   :  { %v4239_v11 = vadd.f32 %v4293_v27, %v4228_v17 }
 0xb82   :  { %v4238_v1 = vadd.f32 %v4293_v27, %v4223_v32 }
 0xb83   :  { %4241 = vst [vmem:[#allocation13 + $0x8] sm:$0xff] %v4239_v11 }
 0xb84   :  { %4240 = vst [vmem:[#allocation13] sm:$0xff] %v4238_v1 }
 0xb85   :  { %6784 = shalt.err (!%p6781_p8)
}
 0xb86   :  { %s6785_s5 = scalar_lea.hbm %s8514_s6, 256 }
 0xb87   :  { %p6786_p9 = scmp.ne.s32.totalorder %s8514_s6, %s6785_s5  ;;  %p6789_p10 = scmp.lt.u32.totalorder %s6785_s5, %s8514_s6 }
 0xb89   :  { %p6791_p11 = pnand %p6789_p10, %p6786_p9 }
 0xb8b   :  { %6794 = shalt.err (!%p6791_p11)
}
 0xb8c   :  { %4253 = dma.vmem_to_hbm [thread:$0]  %s4248_s26, 256, %s8514_s6, [#allocation7], %s6807_s1, %s6807_s1, %s6808_s21  }
 0xb8d   :  { %6801 = dma.done.wait [#allocation7], 256  }
 0xb8e   :  { %6802 = vsyncadd [#allocation7], 4294967040 }
 0xb8f   :  { %4257 = vsyncpa [#allocation6], 1 }
 0xb90   :  { %4258 = vsyncpa [#allocation9], 1 }
 0xb91   :  { %4259 = vsyncpa [#allocation12], 1 }
 0xb92   :  { %4260 = vsyncpa [#allocation7], 1 }

</bundles_post_ra>
